<compile_context>
chip_gen: v7x
topology: tpu7x:2x2x1
jax: 0.10.0
libtpu: 0.0.40
codegen_flags: <defaults>
</compile_context>

<pallas_src>
import functools
import math

import jax
import jax.numpy as jnp
from jax.experimental import pallas as pl
from jax.experimental.pallas import tpu as pltpu

_CPAD = 8              # pad 3-channel tensors up to 8 channels (sublane multiple)
_MIB = 1024 * 1024


# ---------------------------------------------------------------------------
# layout helpers (wrapper side, cheap)
# ---------------------------------------------------------------------------
def _choose_row_pitch(H, W):
    """Padded row pitch P (>= W + 2), rounded so H*P is a multiple of 128 (lane-dense
    stores) whenever that costs at most 64 extra columns."""
    P = W + 2
    step = 128 // math.gcd(H, 128)
    P_round = ((P + step - 1) // step) * step
    if P_round - P <= 64:
        P = P_round
    return P


def _flatten_padded(x_nchw, P):
    """(N, C, H, W) -> (N, C, (H+3)*P): zero-pad spatially (1 top / 2 bottom / 1 left /
    P-1-W right) and flatten, so pixel (h, w) sits at flat index (h+1)*P + (w+1).
    The extra bottom row keeps all 9 shifted tap windows of length H*P in bounds."""
    N, C, H, W = x_nchw.shape
    xp = jnp.pad(x_nchw, ((0, 0), (0, 0), (1, 2), (1, P - 1 - W)))
    return xp.reshape(N, C, (H + 3) * P)


def _pack_conv_stacked(w, b, *, cin_to=None, cout_to=None):
    """(Cout, Cin, 3, 3) -> (Cout', 9*Cin') bf16 with the 9 taps stacked along the
    contraction dim (tap t = kh*3+kw occupies columns [t*Cin', (t+1)*Cin')), plus a
    (Cout', 1) f32 bias.  Optional zero-padding of channel dims (zero channels
    contribute nothing)."""
    cout, cin = w.shape[0], w.shape[1]
    if cin_to is not None and cin_to > cin:
        w = jnp.pad(w, ((0, 0), (0, cin_to - cin), (0, 0), (0, 0)))
    if cout_to is not None and cout_to > cout:
        w = jnp.pad(w, ((0, cout_to - cout), (0, 0), (0, 0), (0, 0)))
        b = jnp.pad(b, (0, cout_to - cout))
    cout2, cin2 = w.shape[0], w.shape[1]
    wk = jnp.transpose(w, (0, 2, 3, 1)).reshape(cout2, 9 * cin2)
    return wk.astype(jnp.bfloat16), b.reshape(-1, 1).astype(jnp.float32)


def _tap_offsets(P):
    return [(kh - 1) * P + (kw - 1) for kh in range(3) for kw in range(3)]


def _spec(block_shape, index_map, *, single_buffer=False):
    """BlockSpec; the biggest whole-image operands are single-buffered (grid=(N,) can
    hide at most one DMA, and this halves their VMEM residency)."""
    if single_buffer and hasattr(pl, "Buffered"):
        try:
            return pl.BlockSpec(block_shape, index_map, pipeline_mode=pl.Buffered(1))
        except Exception:  # pragma: no cover - older API without pipeline_mode
            pass
    return pl.BlockSpec(block_shape, index_map)


def _vmem_limit(nbytes):
    return int(min(max(2 * nbytes, 16 * _MIB), 96 * _MIB))


# ---------------------------------------------------------------------------
# Kernel A: downsample conv (3->48) + ReLU.
# The 9 shifted (Cin, H*P) slabs are gathered into one stacked (9*Cin, H*P) bf16
# scratch, so the conv is a single MXU matmul with K = 9*Cin.
# ---------------------------------------------------------------------------
def _down_kernel(x_ref, w_ref, b_ref, o_ref, rhs_ref, *, P, HP, CIN):
    base = P + 1  # flat index of pixel (0, 0) inside the padded input
    for t, dr in enumerate(_tap_offsets(P)):
        rhs_ref[pl.ds(t * CIN, CIN), :] = x_ref[0, :, pl.ds(base + dr, HP)]
    acc = jnp.dot(w_ref[...], rhs_ref[...],
                  preferred_element_type=jnp.float32) + b_ref[...]
    o_ref[0] = jnp.maximum(acc, 0.0).astype(o_ref.dtype)


def _down_conv(x_flat, w_stk, b_col, *, H, P):
    N, cin, L = x_flat.shape
    cout = w_stk.shape[0]
    HP = H * P
    kern = functools.partial(_down_kernel, P=P, HP=HP, CIN=cin)

    flops = 2 * N * cout * (9 * cin) * HP
    bytes_acc = x_flat.size * 2 + w_stk.size * 2 + b_col.size * 4 + N * cout * HP * 2
    resident = (2 * cin * L * 2 + 2 * (w_stk.size * 2 + b_col.size * 4)
                + cout * HP * 2 + 9 * cin * HP * 2)

    return pl.pallas_call(
        kern,
        out_shape=jax.ShapeDtypeStruct((N, cout, HP), jnp.bfloat16),
        grid_spec=pltpu.PrefetchScalarGridSpec(
            num_scalar_prefetch=0,
            grid=(N,),
            in_specs=[
                pl.BlockSpec((1, cin, L), lambda n: (n, 0, 0)),
                pl.BlockSpec(w_stk.shape, lambda n: (0, 0)),
                pl.BlockSpec(b_col.shape, lambda n: (0, 0)),
            ],
            out_specs=_spec((1, cout, HP), lambda n: (n, 0, 0), single_buffer=True),
            scratch_shapes=[pltpu.VMEM((9 * cin, HP), jnp.bfloat16)],
        ),
        compiler_params=pltpu.CompilerParams(
            dimension_semantics=("parallel",),
            vmem_limit_bytes=_vmem_limit(resident)),
        cost_estimate=pl.CostEstimate(flops=flops, transcendentals=0,
                                      bytes_accessed=bytes_acc),
    )(x_flat, w_stk, b_col)


# ---------------------------------------------------------------------------
# Kernel B: fused tail  up1+ReLU -> up2 -> +x -> ref1+ReLU -> ref2.
# Each conv is one tap-stacked MXU matmul.  Intermediate activations are scattered
# (masked) into zero-haloed stacked scratches; the halos are zeroed ONCE at program 0
# (scratch persists across grid iterations), so nothing is written twice per image.
# ---------------------------------------------------------------------------
def _tail_kernel(r_ref, x_ref, w1_ref, b1_ref, w2_ref, b2_ref, w3_ref, b3_ref,
                 w4_ref, b4_ref, o_ref, sA, sB, sC, sD,
                 *, P, HP, W, SB, C, CMID):
    base = P + 1
    taps = _tap_offsets(P)

    # One-time zero of the scatter scratches.  Only the halo cells strictly need it
    # (every interior write-window is fully rewritten each image), but a full zero at
    # program 0 is the simplest correct form.  Grid axis is "arbitrary" (sequential),
    # so program 0 runs first on the core that owns the scratch.
    @pl.when(pl.program_id(0) == 0)
    def _init():
        sB[...] = jnp.zeros_like(sB)
        sC[...] = jnp.zeros_like(sC)
        sD[...] = jnp.zeros_like(sD)

    # Right-pad mask generated in-kernel (columns with w >= W carry conv zero-pad).
    # Float divide-by-constant (exact over these ranges) avoids integer div/rem.
    col = jax.lax.broadcasted_iota(jnp.int32, (1, HP), 1).astype(jnp.float32)
    row = jnp.floor((col + 0.5) * (1.0 / P))
    mask = ((col - row * P) < W).astype(jnp.float32)          # (1, HP)

    def scatter(scr, cin, val_f32):
        # Re-pad `val`: write its masked interior into the 9 tap row-blocks at shifted
        # column bases; the matmul then reads the lane-aligned [SB, SB+HP) window.
        v = (val_f32 * mask).astype(scr.dtype)
        for t, dr in enumerate(taps):
            scr[pl.ds(t * cin, cin), pl.ds(SB - dr, HP)] = v

    def conv(scr, w_ref, b_ref):
        return jnp.dot(w_ref[...], scr[:, pl.ds(SB, HP)],
                       preferred_element_type=jnp.float32) + b_ref[...]

    # upsample[0]: 48 -> 48, ReLU  (RHS gathered straight from the zero-padded input)
    for t, dr in enumerate(taps):
        sA[pl.ds(t * C, C), :] = r_ref[0, :, pl.ds(base + dr, HP)]
    h1 = jnp.maximum(
        jnp.dot(w1_ref[...], sA[...], preferred_element_type=jnp.float32)
        + b1_ref[...], 0.0)

    # upsample[2]: 48 -> 3 (Cout padded to 8), then residual add with the input image
    scatter(sB, C, h1)
    out2 = conv(sB, w2_ref, b2_ref) + x_ref[0, :, pl.ds(base, HP)].astype(jnp.float32)

    # refine_net[0]: 3 -> 32, ReLU
    scatter(sC, _CPAD, out2)
    h3 = jnp.maximum(conv(sC, w3_ref, b3_ref), 0.0)

    # refine_net[2]: 32 -> 3; store only the 3 real channels
    scatter(sD, CMID, h3)
    o_ref[0] = conv(sD, w4_ref, b4_ref).astype(o_ref.dtype)


def _fused_tail(r_flat, x_flat, w1, b1, w2, b2, w3, b3, w4, b4, *, H, W, P, C):
    N, _, L = r_flat.shape
    cmid = w3.shape[0]                                 # 32
    cout = w4.shape[0]                                 # 3
    HP = H * P
    SB = ((P + 2 + 127) // 128) * 128                  # 128-aligned scratch base
    LS = ((SB + HP + P + 2 + 127) // 128) * 128        # scatter-scratch length

    kern = functools.partial(_tail_kernel, P=P, HP=HP, W=W, SB=SB, C=C, CMID=cmid)

    w_bytes = ((w1.size + w2.size + w3.size + w4.size) * 2
               + (b1.size + b2.size + b3.size + b4.size) * 4)
    flops = 2 * N * HP * (C * 9 * C + _CPAD * 9 * C + cmid * 9 * _CPAD
                          + cout * 9 * cmid)
    bytes_acc = (r_flat.size + x_flat.size) * 2 + w_bytes + N * cout * HP * 4
    scratch_bytes = (9 * C * HP + (9 * C + 9 * _CPAD + 9 * cmid) * LS) * 2
    resident = (C * L * 2                  # r block (single-buffered)
                + 2 * _CPAD * L * 2        # x blocks (double-buffered)
                + 2 * w_bytes
                + cout * HP * 4            # out block (single-buffered)
                + scratch_bytes)

    const2 = lambda n: (0, 0)
    return pl.pallas_call(
        kern,
        out_shape=jax.ShapeDtypeStruct((N, cout, HP), jnp.float32),
        grid_spec=pltpu.PrefetchScalarGridSpec(
            num_scalar_prefetch=0,
            grid=(N,),
            in_specs=[
                _spec((1, C, L), lambda n: (n, 0, 0), single_buffer=True),
                pl.BlockSpec((1, _CPAD, L), lambda n: (n, 0, 0)),
                pl.BlockSpec(w1.shape, const2), pl.BlockSpec(b1.shape, const2),
                pl.BlockSpec(w2.shape, const2), pl.BlockSpec(b2.shape, const2),
                pl.BlockSpec(w3.shape, const2), pl.BlockSpec(b3.shape, const2),
                pl.BlockSpec(w4.shape, const2), pl.BlockSpec(b4.shape, const2),
            ],
            out_specs=_spec((1, cout, HP), lambda n: (n, 0, 0), single_buffer=True),
            scratch_shapes=[
                pltpu.VMEM((9 * C, HP), jnp.bfloat16),      # sA: up1 RHS (gathered)
                pltpu.VMEM((9 * C, LS), jnp.bfloat16),      # sB: up2 RHS (scattered)
                pltpu.VMEM((9 * _CPAD, LS), jnp.bfloat16),  # sC: ref1 RHS
                pltpu.VMEM((9 * cmid, LS), jnp.bfloat16),   # sD: ref2 RHS
            ],
        ),
        # "arbitrary" (sequential) so the one-time scratch init at program 0 is valid;
        # a future row-tile grid axis (see TODO) would carry the "parallel" semantics.
        compiler_params=pltpu.CompilerParams(
            dimension_semantics=("arbitrary",),
            vmem_limit_bytes=_vmem_limit(resident)),
        cost_estimate=pl.CostEstimate(flops=flops, transcendentals=0,
                                      bytes_accessed=bytes_acc),
    )(r_flat, x_flat, w1, b1, w2, b2, w3, b3, w4, b4)


# ---------------------------------------------------------------------------
# Deterministic parameter construction (matches the nn.Module __init__ shapes)
# ---------------------------------------------------------------------------
def _conv_params(key, cout, cin):
    kw, kb = jax.random.split(key)
    scale = 1.0 / jnp.sqrt(cin * 9.0)
    w = jax.random.uniform(kw, (cout, cin, 3, 3), jnp.float32, -scale, scale)
    b = jax.random.uniform(kb, (cout,), jnp.float32, -scale, scale)
    return w, b


def init_fdvmnet_params(key, num_channels=48):
    k = jax.random.split(key, 5)
    return {
        "down": _conv_params(k[0], num_channels, 3),
        "up1":  _conv_params(k[1], num_channels, num_channels),
        "up2":  _conv_params(k[2], 3, num_channels),
        "ref1": _conv_params(k[3], 32, 3),
        "ref2": _conv_params(k[4], 3, 32),
    }


# ---------------------------------------------------------------------------
# FDVMNet forward (NCHW in / NCHW out, matching the PyTorch module)
# ---------------------------------------------------------------------------
def fdvmnet_forward(x_nchw, params):
    N, Cx, H, W = x_nchw.shape
    C = params["down"][0].shape[0]          # num_channels (48)
    P = _choose_row_pitch(H, W)

    # pack conv params as tap-stacked bf16 matrices (3-channel dims padded to 8)
    w0, b0 = _pack_conv_stacked(*params["down"], cin_to=_CPAD)   # (C, 72)
    w1, b1 = _pack_conv_stacked(*params["up1"])                  # (C, 9C)
    w2, b2 = _pack_conv_stacked(*params["up2"], cout_to=_CPAD)   # (8, 9C)
    w3, b3 = _pack_conv_stacked(*params["ref1"], cin_to=_CPAD)   # (32, 72)
    w4, b4 = _pack_conv_stacked(*params["ref2"])                 # (3, 288)

    x = x_nchw.astype(jnp.float32)
    x8 = jnp.pad(x, ((0, 0), (0, _CPAD - Cx), (0, 0), (0, 0)))
    x_flat = _flatten_padded(x8, P).astype(jnp.bfloat16)         # (N, 8, L)

    # downsample = Conv2d(3, C, 3, 1, 1) + ReLU  (Pallas, single stacked matmul)
    f0 = _down_conv(x_flat, w0, b0, H=H, P=P)                    # (N, C, H*P) bf16
    f0 = f0.reshape(N, C, H, P)[:, :, :, :W].astype(jnp.float32)

    # FFT feature split (complex-valued -> plain JAX; no complex dtype in Pallas TPU)
    fft_features = jnp.fft.fft2(f0, axes=(-2, -1))
    phase = jnp.angle(fft_features)
    amplitude = jnp.abs(fft_features)

    # TODO(synk): CSSMBlock / CrossAttention definitions were not provided with the
    # module source, so phase_path / amplitude_path / cross_attentions are identity.
    combined = phase + amplitude
    # torch.polar(combined, phase) == combined * exp(1j * phase)
    restored = jnp.real(
        jnp.fft.ifft2(combined * jnp.exp(1j * phase), axes=(-2, -1))
    ).astype(jnp.float32)

    # fused tail: up1+ReLU -> up2 -> +x -> ref1+ReLU -> ref2  (single Pallas call)
    r_flat = _flatten_padded(restored, P).astype(jnp.bfloat16)   # (N, C, L)
    out = _fused_tail(r_flat, x_flat, w1, b1, w2, b2, w3, b3, w4, b4,
                      H=H, W=W, P=P, C=C)                        # (N, 3, H*P) f32
    return out.reshape(N, 3, H, P)[:, :, :, :W]


if __name__ == "__main__":
    key = jax.random.PRNGKey(0)
    k_x, k_p = jax.random.split(key)

    # Small shapes consistent with the module: batch=2, 3 input channels, 16x16.
    x = jax.random.normal(k_x, (2, 3, 16, 16), dtype=jnp.float32)
    params = init_fdvmnet_params(k_p, num_channels=48)

    fwd = jax.jit(fdvmnet_forward)
    y = fwd(x, params)
    jax.block_until_ready(y)
    assert y.shape == (2, 3, 16, 16), y.shape
    print("KERNEL_OK")
</pallas_src>

<mosaic_0001>
module attributes {stable_mosaic.version = 11 : i64} {
  func.func @_down_kernel(%arg0: i32, %arg1: memref<1x8x456xbf16, #tpu.memory_space<vmem>>, %arg2: memref<48x72xbf16, #tpu.memory_space<vmem>>, %arg3: memref<48x1xf32, #tpu.memory_space<vmem>>, %arg4: memref<1x48x384xbf16, #tpu.memory_space<vmem>>, %arg5: memref<72x384xbf16, #tpu.memory_space<vmem>>) attributes {dimension_semantics = [#tpu.dimension_semantics<parallel>], iteration_bounds = array<i64: 2>, scalar_prefetch = 0 : i64, scratch_operands = 1 : i64, tpu.core_type = #tpu.core_type<tc>, window_params = [{transform_indices = @transform_0, window_bounds = array<i64: 1, 8, 456>}, {pipeline_mode = #tpu.pipeline_mode<synchronous>, transform_indices = @transform_1, window_bounds = array<i64: 48, 72>}, {pipeline_mode = #tpu.pipeline_mode<synchronous>, transform_indices = @transform_2, window_bounds = array<i64: 48, 1>}, {pipeline_mode = #tpu.pipeline_mode<synchronous>, transform_indices = @transform_3, window_bounds = array<i64: 1, 48, 384>}]} {
    %c0 = arith.constant 0 : index
    %c0_0 = arith.constant 0 : index
    %c0_1 = arith.constant 0 : index
    %0 = vector.load %arg1[%c0, %c0_0, %c0_1] : memref<1x8x456xbf16, #tpu.memory_space<vmem>>, vector<1x8x384xbf16>
    %1 = vector.shape_cast %0 : vector<1x8x384xbf16> to vector<8x384xbf16>
    %c0_2 = arith.constant 0 : index
    %c0_3 = arith.constant 0 : index
    %2 = vector.load %arg5[%c0_2, %c0_3] : memref<72x384xbf16, #tpu.memory_space<vmem>>, vector<8x384xbf16>
    tpu.vector_store %arg5[%c0_2, %c0_3], %1 {strides = array<i32>} : memref<72x384xbf16, #tpu.memory_space<vmem>>, vector<8x384xbf16>,
    %c0_4 = arith.constant 0 : index
    %c0_5 = arith.constant 0 : index
    %c1 = arith.constant 1 : index
    %3 = vector.load %arg1[%c0_4, %c0_5, %c1] : memref<1x8x456xbf16, #tpu.memory_space<vmem>>, vector<1x8x384xbf16>
    %4 = vector.shape_cast %3 : vector<1x8x384xbf16> to vector<8x384xbf16>
    %c8 = arith.constant 8 : index
    %c0_6 = arith.constant 0 : index
    %5 = vector.load %arg5[%c8, %c0_6] : memref<72x384xbf16, #tpu.memory_space<vmem>>, vector<8x384xbf16>
    tpu.vector_store %arg5[%c8, %c0_6], %4 {strides = array<i32>} : memref<72x384xbf16, #tpu.memory_space<vmem>>, vector<8x384xbf16>,
    %c0_7 = arith.constant 0 : index
    %c0_8 = arith.constant 0 : index
    %c2 = arith.constant 2 : index
    %6 = vector.load %arg1[%c0_7, %c0_8, %c2] : memref<1x8x456xbf16, #tpu.memory_space<vmem>>, vector<1x8x384xbf16>
    %7 = vector.shape_cast %6 : vector<1x8x384xbf16> to vector<8x384xbf16>
    %c16 = arith.constant 16 : index
    %c0_9 = arith.constant 0 : index
    %8 = vector.load %arg5[%c16, %c0_9] : memref<72x384xbf16, #tpu.memory_space<vmem>>, vector<8x384xbf16>
    tpu.vector_store %arg5[%c16, %c0_9], %7 {strides = array<i32>} : memref<72x384xbf16, #tpu.memory_space<vmem>>, vector<8x384xbf16>,
    %c0_10 = arith.constant 0 : index
    %c0_11 = arith.constant 0 : index
    %c24 = arith.constant 24 : index
    %9 = vector.load %arg1[%c0_10, %c0_11, %c24] : memref<1x8x456xbf16, #tpu.memory_space<vmem>>, vector<1x8x384xbf16>
    %10 = vector.shape_cast %9 : vector<1x8x384xbf16> to vector<8x384xbf16>
    %c24_12 = arith.constant 24 : index
    %c0_13 = arith.constant 0 : index
    %11 = vector.load %arg5[%c24_12, %c0_13] : memref<72x384xbf16, #tpu.memory_space<vmem>>, vector<8x384xbf16>
    tpu.vector_store %arg5[%c24_12, %c0_13], %10 {strides = array<i32>} : memref<72x384xbf16, #tpu.memory_space<vmem>>, vector<8x384xbf16>,
    %c0_14 = arith.constant 0 : index
    %c0_15 = arith.constant 0 : index
    %c25 = arith.constant 25 : index
    %12 = vector.load %arg1[%c0_14, %c0_15, %c25] : memref<1x8x456xbf16, #tpu.memory_space<vmem>>, vector<1x8x384xbf16>
    %13 = vector.shape_cast %12 : vector<1x8x384xbf16> to vector<8x384xbf16>
    %c32 = arith.constant 32 : index
    %c0_16 = arith.constant 0 : index
    %14 = vector.load %arg5[%c32, %c0_16] : memref<72x384xbf16, #tpu.memory_space<vmem>>, vector<8x384xbf16>
    tpu.vector_store %arg5[%c32, %c0_16], %13 {strides = array<i32>} : memref<72x384xbf16, #tpu.memory_space<vmem>>, vector<8x384xbf16>,
    %c0_17 = arith.constant 0 : index
    %c0_18 = arith.constant 0 : index
    %c26 = arith.constant 26 : index
    %15 = vector.load %arg1[%c0_17, %c0_18, %c26] : memref<1x8x456xbf16, #tpu.memory_space<vmem>>, vector<1x8x384xbf16>
    %16 = vector.shape_cast %15 : vector<1x8x384xbf16> to vector<8x384xbf16>
    %c40 = arith.constant 40 : index
    %c0_19 = arith.constant 0 : index
    %17 = vector.load %arg5[%c40, %c0_19] : memref<72x384xbf16, #tpu.memory_space<vmem>>, vector<8x384xbf16>
    tpu.vector_store %arg5[%c40, %c0_19], %16 {strides = array<i32>} : memref<72x384xbf16, #tpu.memory_space<vmem>>, vector<8x384xbf16>,
    %c0_20 = arith.constant 0 : index
    %c0_21 = arith.constant 0 : index
    %c48 = arith.constant 48 : index
    %18 = vector.load %arg1[%c0_20, %c0_21, %c48] : memref<1x8x456xbf16, #tpu.memory_space<vmem>>, vector<1x8x384xbf16>
    %19 = vector.shape_cast %18 : vector<1x8x384xbf16> to vector<8x384xbf16>
    %c48_22 = arith.constant 48 : index
    %c0_23 = arith.constant 0 : index
    %20 = vector.load %arg5[%c48_22, %c0_23] : memref<72x384xbf16, #tpu.memory_space<vmem>>, vector<8x384xbf16>
    tpu.vector_store %arg5[%c48_22, %c0_23], %19 {strides = array<i32>} : memref<72x384xbf16, #tpu.memory_space<vmem>>, vector<8x384xbf16>,
    %c0_24 = arith.constant 0 : index
    %c0_25 = arith.constant 0 : index
    %c49 = arith.constant 49 : index
    %21 = vector.load %arg1[%c0_24, %c0_25, %c49] : memref<1x8x456xbf16, #tpu.memory_space<vmem>>, vector<1x8x384xbf16>
    %22 = vector.shape_cast %21 : vector<1x8x384xbf16> to vector<8x384xbf16>
    %c56 = arith.constant 56 : index
    %c0_26 = arith.constant 0 : index
    %23 = vector.load %arg5[%c56, %c0_26] : memref<72x384xbf16, #tpu.memory_space<vmem>>, vector<8x384xbf16>
    tpu.vector_store %arg5[%c56, %c0_26], %22 {strides = array<i32>} : memref<72x384xbf16, #tpu.memory_space<vmem>>, vector<8x384xbf16>,
    %c0_27 = arith.constant 0 : index
    %c0_28 = arith.constant 0 : index
    %c50 = arith.constant 50 : index
    %24 = vector.load %arg1[%c0_27, %c0_28, %c50] : memref<1x8x456xbf16, #tpu.memory_space<vmem>>, vector<1x8x384xbf16>
    %25 = vector.shape_cast %24 : vector<1x8x384xbf16> to vector<8x384xbf16>
    %c64 = arith.constant 64 : index
    %c0_29 = arith.constant 0 : index
    %26 = vector.load %arg5[%c64, %c0_29] : memref<72x384xbf16, #tpu.memory_space<vmem>>, vector<8x384xbf16>
    tpu.vector_store %arg5[%c64, %c0_29], %25 {strides = array<i32>} : memref<72x384xbf16, #tpu.memory_space<vmem>>, vector<8x384xbf16>,
    %c0_30 = arith.constant 0 : index
    %c0_31 = arith.constant 0 : index
    %27 = vector.load %arg2[%c0_30, %c0_31] : memref<48x72xbf16, #tpu.memory_space<vmem>>, vector<48x72xbf16>
    %c0_32 = arith.constant 0 : index
    %c0_33 = arith.constant 0 : index
    %28 = vector.load %arg5[%c0_32, %c0_33] : memref<72x384xbf16, #tpu.memory_space<vmem>>, vector<72x384xbf16>
    %cst = arith.constant dense<0.000000e+00> : vector<48x384xf32>
    %29 = tpu.matmul %27, %28, %cst {dimension_numbers = #tpu.dot_dimension_numbers<[1], [0], [0], [1], [0, 0, 1, 1], [], []>} : vector<48x72xbf16>, vector<72x384xbf16>, vector<48x384xf32> -> vector<48x384xf32>
    %c0_34 = arith.constant 0 : index
    %c0_35 = arith.constant 0 : index
    %30 = vector.load %arg3[%c0_34, %c0_35] : memref<48x1xf32, #tpu.memory_space<vmem>>, vector<48x1xf32>
    %31 = vector.broadcast %30 : vector<48x1xf32> to vector<48x384xf32>
    %32 = arith.addf %29, %31 : vector<48x384xf32>
    %cst_36 = arith.constant 0.000000e+00 : f32
    %33 = vector.broadcast %cst_36 : f32 to vector<48x384xf32>
    %34 = arith.maximumf %32, %33 : vector<48x384xf32>
    %35 = arith.truncf %34 : vector<48x384xf32> to vector<48x384xbf16>
    %c0_37 = arith.constant 0 : index
    %c0_38 = arith.constant 0 : index
    %c0_39 = arith.constant 0 : index
    %36 = vector.load %arg4[%c0_37, %c0_38, %c0_39] : memref<1x48x384xbf16, #tpu.memory_space<vmem>>, vector<1x48x384xbf16>
    %37 = vector.shape_cast %36 : vector<1x48x384xbf16> to vector<48x384xbf16>
    %38 = vector.shape_cast %35 : vector<48x384xbf16> to vector<1x48x384xbf16>
    tpu.vector_store %arg4[%c0_37, %c0_38, %c0_39], %38 {strides = array<i32>} : memref<1x48x384xbf16, #tpu.memory_space<vmem>>, vector<1x48x384xbf16>,
    return
  }
  func.func @transform_0(%arg0: i32) -> (i32, i32, i32) {
    %c0_i32 = arith.constant 0 : i32
    %c0_i32_0 = arith.constant 0 : i32
    %c0_i32_1 = arith.constant 0 : i32
    return %arg0, %c0_i32, %c0_i32_0 : i32, i32, i32
  }
  func.func @transform_1(%arg0: i32) -> (i32, i32) {
    %c0_i32 = arith.constant 0 : i32
    %c0_i32_0 = arith.constant 0 : i32
    %c0_i32_1 = arith.constant 0 : i32
    return %c0_i32, %c0_i32_0 : i32, i32
  }
  func.func @transform_2(%arg0: i32) -> (i32, i32) {
    %c0_i32 = arith.constant 0 : i32
    %c0_i32_0 = arith.constant 0 : i32
    %c0_i32_1 = arith.constant 0 : i32
    return %c0_i32, %c0_i32_0 : i32, i32
  }
  func.func @transform_3(%arg0: i32) -> (i32, i32, i32) {
    %c0_i32 = arith.constant 0 : i32
    %c0_i32_0 = arith.constant 0 : i32
    %c0_i32_1 = arith.constant 0 : i32
    return %arg0, %c0_i32, %c0_i32_0 : i32, i32, i32
  }
}

module attributes {stable_mosaic.version = 11 : i64} {
  func.func @_tail_kernel(%arg0: i32, %arg1: memref<1x48x456xbf16, #tpu.memory_space<vmem>>, %arg2: memref<1x8x456xbf16, #tpu.memory_space<vmem>>, %arg3: memref<48x432xbf16, #tpu.memory_space<vmem>>, %arg4: memref<48x1xf32, #tpu.memory_space<vmem>>, %arg5: memref<8x432xbf16, #tpu.memory_space<vmem>>, %arg6: memref<8x1xf32, #tpu.memory_space<vmem>>, %arg7: memref<32x72xbf16, #tpu.memory_space<vmem>>, %arg8: memref<32x1xf32, #tpu.memory_space<vmem>>, %arg9: memref<3x288xbf16, #tpu.memory_space<vmem>>, %arg10: memref<3x1xf32, #tpu.memory_space<vmem>>, %arg11: memref<1x3x384xf32, #tpu.memory_space<vmem>>, %arg12: memref<432x384xbf16, #tpu.memory_space<vmem>>, %arg13: memref<432x640xbf16, #tpu.memory_space<vmem>>, %arg14: memref<72x640xbf16, #tpu.memory_space<vmem>>, %arg15: memref<288x640xbf16, #tpu.memory_space<vmem>>) attributes {dimension_semantics = [#tpu.dimension_semantics<arbitrary>], iteration_bounds = array<i64: 2>, scalar_prefetch = 0 : i64, scratch_operands = 4 : i64, tpu.core_type = #tpu.core_type<tc>, window_params = [{pipeline_mode = #tpu.pipeline_mode<synchronous>, transform_indices = @transform_0, window_bounds = array<i64: 1, 48, 456>}, {transform_indices = @transform_1, window_bounds = array<i64: 1, 8, 456>}, {pipeline_mode = #tpu.pipeline_mode<synchronous>, transform_indices = @transform_2, window_bounds = array<i64: 48, 432>}, {pipeline_mode = #tpu.pipeline_mode<synchronous>, transform_indices = @transform_3, window_bounds = array<i64: 48, 1>}, {pipeline_mode = #tpu.pipeline_mode<synchronous>, transform_indices = @transform_4, window_bounds = array<i64: 8, 432>}, {pipeline_mode = #tpu.pipeline_mode<synchronous>, transform_indices = @transform_5, window_bounds = array<i64: 8, 1>}, {pipeline_mode = #tpu.pipeline_mode<synchronous>, transform_indices = @transform_6, window_bounds = array<i64: 32, 72>}, {pipeline_mode = #tpu.pipeline_mode<synchronous>, transform_indices = @transform_7, window_bounds = array<i64: 32, 1>}, {pipeline_mode = #tpu.pipeline_mode<synchronous>, transform_indices = @transform_8, window_bounds = array<i64: 3, 288>}, {pipeline_mode = #tpu.pipeline_mode<synchronous>, transform_indices = @transform_9, window_bounds = array<i64: 3, 1>}, {pipeline_mode = #tpu.pipeline_mode<synchronous>, transform_indices = @transform_10, window_bounds = array<i64: 1, 3, 384>}]} {
    %c0_i32 = arith.constant 0 : i32
    %0 = arith.cmpi eq, %arg0, %c0_i32 : i32
    %1 = arith.extui %0 : i1 to i32
    %c0_i32_0 = arith.constant 0 : i32
    %2 = arith.cmpi ne, %1, %c0_i32_0 : i32
    scf.if %2 {
      %cst_105 = arith.constant 0.000000e+00 : bf16
      %115 = vector.broadcast %cst_105 : bf16 to vector<432x640xbf16>
      %c0_106 = arith.constant 0 : index
      %c0_107 = arith.constant 0 : index
      %116 = vector.load %arg13[%c0_106, %c0_107] : memref<432x640xbf16, #tpu.memory_space<vmem>>, vector<432x640xbf16>
      tpu.vector_store %arg13[%c0_106, %c0_107], %115 {strides = array<i32>} : memref<432x640xbf16, #tpu.memory_space<vmem>>, vector<432x640xbf16>,
      %cst_108 = arith.constant 0.000000e+00 : bf16
      %117 = vector.broadcast %cst_108 : bf16 to vector<72x640xbf16>
      %c0_109 = arith.constant 0 : index
      %c0_110 = arith.constant 0 : index
      %118 = vector.load %arg14[%c0_109, %c0_110] : memref<72x640xbf16, #tpu.memory_space<vmem>>, vector<72x640xbf16>
      tpu.vector_store %arg14[%c0_109, %c0_110], %117 {strides = array<i32>} : memref<72x640xbf16, #tpu.memory_space<vmem>>, vector<72x640xbf16>,
      %cst_111 = arith.constant 0.000000e+00 : bf16
      %119 = vector.broadcast %cst_111 : bf16 to vector<288x640xbf16>
      %c0_112 = arith.constant 0 : index
      %c0_113 = arith.constant 0 : index
      %120 = vector.load %arg15[%c0_112, %c0_113] : memref<288x640xbf16, #tpu.memory_space<vmem>>, vector<288x640xbf16>
      tpu.vector_store %arg15[%c0_112, %c0_113], %119 {strides = array<i32>} : memref<288x640xbf16, #tpu.memory_space<vmem>>, vector<288x640xbf16>,
    } else {
    }
    %3 = tpu.iota {dimensions = array<i32: 1>} : vector<1x384xi32>
    %4 = arith.sitofp %3 : vector<1x384xi32> to vector<1x384xf32>
    %cst = arith.constant 5.000000e-01 : f32
    %5 = vector.broadcast %cst : f32 to vector<1x384xf32>
    %6 = arith.addf %4, %5 : vector<1x384xf32>
    %cst_1 = arith.constant 0.0416666679 : f32
    %7 = vector.broadcast %cst_1 : f32 to vector<1x384xf32>
    %8 = arith.mulf %6, %7 : vector<1x384xf32>
    %9 = math.floor %8 : vector<1x384xf32>
    %cst_2 = arith.constant 2.400000e+01 : f32
    %10 = vector.broadcast %cst_2 : f32 to vector<1x384xf32>
    %11 = arith.mulf %9, %10 : vector<1x384xf32>
    %12 = arith.subf %4, %11 : vector<1x384xf32>
    %cst_3 = arith.constant 1.600000e+01 : f32
    %13 = vector.broadcast %cst_3 : f32 to vector<1x384xf32>
    %14 = arith.cmpf olt, %12, %13 : vector<1x384xf32>
    %15 = arith.extui %14 : vector<1x384xi1> to vector<1x384xi32>
    %16 = arith.sitofp %15 : vector<1x384xi32> to vector<1x384xf32>
    %c0 = arith.constant 0 : index
    %c0_4 = arith.constant 0 : index
    %c0_5 = arith.constant 0 : index
    %17 = vector.load %arg1[%c0, %c0_4, %c0_5] : memref<1x48x456xbf16, #tpu.memory_space<vmem>>, vector<1x48x384xbf16>
    %18 = vector.shape_cast %17 : vector<1x48x384xbf16> to vector<48x384xbf16>
    %c0_6 = arith.constant 0 : index
    %c0_7 = arith.constant 0 : index
    %19 = vector.load %arg12[%c0_6, %c0_7] : memref<432x384xbf16, #tpu.memory_space<vmem>>, vector<48x384xbf16>
    tpu.vector_store %arg12[%c0_6, %c0_7], %18 {strides = array<i32>} : memref<432x384xbf16, #tpu.memory_space<vmem>>, vector<48x384xbf16>,
    %c0_8 = arith.constant 0 : index
    %c0_9 = arith.constant 0 : index
    %c1 = arith.constant 1 : index
    %20 = vector.load %arg1[%c0_8, %c0_9, %c1] : memref<1x48x456xbf16, #tpu.memory_space<vmem>>, vector<1x48x384xbf16>
    %21 = vector.shape_cast %20 : vector<1x48x384xbf16> to vector<48x384xbf16>
    %c48 = arith.constant 48 : index
    %c0_10 = arith.constant 0 : index
    %22 = vector.load %arg12[%c48, %c0_10] : memref<432x384xbf16, #tpu.memory_space<vmem>>, vector<48x384xbf16>
    tpu.vector_store %arg12[%c48, %c0_10], %21 {strides = array<i32>} : memref<432x384xbf16, #tpu.memory_space<vmem>>, vector<48x384xbf16>,
    %c0_11 = arith.constant 0 : index
    %c0_12 = arith.constant 0 : index
    %c2 = arith.constant 2 : index
    %23 = vector.load %arg1[%c0_11, %c0_12, %c2] : memref<1x48x456xbf16, #tpu.memory_space<vmem>>, vector<1x48x384xbf16>
    %24 = vector.shape_cast %23 : vector<1x48x384xbf16> to vector<48x384xbf16>
    %c96 = arith.constant 96 : index
    %c0_13 = arith.constant 0 : index
    %25 = vector.load %arg12[%c96, %c0_13] : memref<432x384xbf16, #tpu.memory_space<vmem>>, vector<48x384xbf16>
    tpu.vector_store %arg12[%c96, %c0_13], %24 {strides = array<i32>} : memref<432x384xbf16, #tpu.memory_space<vmem>>, vector<48x384xbf16>,
    %c0_14 = arith.constant 0 : index
    %c0_15 = arith.constant 0 : index
    %c24 = arith.constant 24 : index
    %26 = vector.load %arg1[%c0_14, %c0_15, %c24] : memref<1x48x456xbf16, #tpu.memory_space<vmem>>, vector<1x48x384xbf16>
    %27 = vector.shape_cast %26 : vector<1x48x384xbf16> to vector<48x384xbf16>
    %c144 = arith.constant 144 : index
    %c0_16 = arith.constant 0 : index
    %28 = vector.load %arg12[%c144, %c0_16] : memref<432x384xbf16, #tpu.memory_space<vmem>>, vector<48x384xbf16>
    tpu.vector_store %arg12[%c144, %c0_16], %27 {strides = array<i32>} : memref<432x384xbf16, #tpu.memory_space<vmem>>, vector<48x384xbf16>,
    %c0_17 = arith.constant 0 : index
    %c0_18 = arith.constant 0 : index
    %c25 = arith.constant 25 : index
    %29 = vector.load %arg1[%c0_17, %c0_18, %c25] : memref<1x48x456xbf16, #tpu.memory_space<vmem>>, vector<1x48x384xbf16>
    %30 = vector.shape_cast %29 : vector<1x48x384xbf16> to vector<48x384xbf16>
    %c192 = arith.constant 192 : index
    %c0_19 = arith.constant 0 : index
    %31 = vector.load %arg12[%c192, %c0_19] : memref<432x384xbf16, #tpu.memory_space<vmem>>, vector<48x384xbf16>
    tpu.vector_store %arg12[%c192, %c0_19], %30 {strides = array<i32>} : memref<432x384xbf16, #tpu.memory_space<vmem>>, vector<48x384xbf16>,
    %c0_20 = arith.constant 0 : index
    %c0_21 = arith.constant 0 : index
    %c26 = arith.constant 26 : index
    %32 = vector.load %arg1[%c0_20, %c0_21, %c26] : memref<1x48x456xbf16, #tpu.memory_space<vmem>>, vector<1x48x384xbf16>
    %33 = vector.shape_cast %32 : vector<1x48x384xbf16> to vector<48x384xbf16>
    %c240 = arith.constant 240 : index
    %c0_22 = arith.constant 0 : index
    %34 = vector.load %arg12[%c240, %c0_22] : memref<432x384xbf16, #tpu.memory_space<vmem>>, vector<48x384xbf16>
    tpu.vector_store %arg12[%c240, %c0_22], %33 {strides = array<i32>} : memref<432x384xbf16, #tpu.memory_space<vmem>>, vector<48x384xbf16>,
    %c0_23 = arith.constant 0 : index
    %c0_24 = arith.constant 0 : index
    %c48_25 = arith.constant 48 : index
    %35 = vector.load %arg1[%c0_23, %c0_24, %c48_25] : memref<1x48x456xbf16, #tpu.memory_space<vmem>>, vector<1x48x384xbf16>
    %36 = vector.shape_cast %35 : vector<1x48x384xbf16> to vector<48x384xbf16>
    %c288 = arith.constant 288 : index
    %c0_26 = arith.constant 0 : index
    %37 = vector.load %arg12[%c288, %c0_26] : memref<432x384xbf16, #tpu.memory_space<vmem>>, vector<48x384xbf16>
    tpu.vector_store %arg12[%c288, %c0_26], %36 {strides = array<i32>} : memref<432x384xbf16, #tpu.memory_space<vmem>>, vector<48x384xbf16>,
    %c0_27 = arith.constant 0 : index
    %c0_28 = arith.constant 0 : index
    %c49 = arith.constant 49 : index
    %38 = vector.load %arg1[%c0_27, %c0_28, %c49] : memref<1x48x456xbf16, #tpu.memory_space<vmem>>, vector<1x48x384xbf16>
    %39 = vector.shape_cast %38 : vector<1x48x384xbf16> to vector<48x384xbf16>
    %c336 = arith.constant 336 : index
    %c0_29 = arith.constant 0 : index
    %40 = vector.load %arg12[%c336, %c0_29] : memref<432x384xbf16, #tpu.memory_space<vmem>>, vector<48x384xbf16>
    tpu.vector_store %arg12[%c336, %c0_29], %39 {strides = array<i32>} : memref<432x384xbf16, #tpu.memory_space<vmem>>, vector<48x384xbf16>,
    %c0_30 = arith.constant 0 : index
    %c0_31 = arith.constant 0 : index
    %c50 = arith.constant 50 : index
    %41 = vector.load %arg1[%c0_30, %c0_31, %c50] : memref<1x48x456xbf16, #tpu.memory_space<vmem>>, vector<1x48x384xbf16>
    %42 = vector.shape_cast %41 : vector<1x48x384xbf16> to vector<48x384xbf16>
    %c384 = arith.constant 384 : index
    %c0_32 = arith.constant 0 : index
    %43 = vector.load %arg12[%c384, %c0_32] : memref<432x384xbf16, #tpu.memory_space<vmem>>, vector<48x384xbf16>
    tpu.vector_store %arg12[%c384, %c0_32], %42 {strides = array<i32>} : memref<432x384xbf16, #tpu.memory_space<vmem>>, vector<48x384xbf16>,
    %c0_33 = arith.constant 0 : index
    %c0_34 = arith.constant 0 : index
    %44 = vector.load %arg3[%c0_33, %c0_34] : memref<48x432xbf16, #tpu.memory_space<vmem>>, vector<48x432xbf16>
    %c0_35 = arith.constant 0 : index
    %c0_36 = arith.constant 0 : index
    %45 = vector.load %arg12[%c0_35, %c0_36] : memref<432x384xbf16, #tpu.memory_space<vmem>>, vector<432x384xbf16>
    %cst_37 = arith.constant dense<0.000000e+00> : vector<48x384xf32>
    %46 = tpu.matmul %44, %45, %cst_37 {dimension_numbers = #tpu.dot_dimension_numbers<[1], [0], [0], [1], [0, 0, 1, 1], [], []>} : vector<48x432xbf16>, vector<432x384xbf16>, vector<48x384xf32> -> vector<48x384xf32>
    %c0_38 = arith.constant 0 : index
    %c0_39 = arith.constant 0 : index
    %47 = vector.load %arg4[%c0_38, %c0_39] : memref<48x1xf32, #tpu.memory_space<vmem>>, vector<48x1xf32>
    %48 = vector.broadcast %47 : vector<48x1xf32> to vector<48x384xf32>
    %49 = arith.addf %46, %48 : vector<48x384xf32>
    %cst_40 = arith.constant 0.000000e+00 : f32
    %50 = vector.broadcast %cst_40 : f32 to vector<48x384xf32>
    %51 = arith.maximumf %49, %50 : vector<48x384xf32>
    %52 = vector.broadcast %16 : vector<1x384xf32> to vector<48x384xf32>
    %53 = arith.mulf %51, %52 : vector<48x384xf32>
    %54 = arith.truncf %53 : vector<48x384xf32> to vector<48x384xbf16>
    %c0_41 = arith.constant 0 : index
    %c153 = arith.constant 153 : index
    %55 = vector.load %arg13[%c0_41, %c153] : memref<432x640xbf16, #tpu.memory_space<vmem>>, vector<48x384xbf16>
    tpu.vector_store %arg13[%c0_41, %c153], %54 {strides = array<i32>} : memref<432x640xbf16, #tpu.memory_space<vmem>>, vector<48x384xbf16>,
    %c48_42 = arith.constant 48 : index
    %c152 = arith.constant 152 : index
    %56 = vector.load %arg13[%c48_42, %c152] : memref<432x640xbf16, #tpu.memory_space<vmem>>, vector<48x384xbf16>
    tpu.vector_store %arg13[%c48_42, %c152], %54 {strides = array<i32>} : memref<432x640xbf16, #tpu.memory_space<vmem>>, vector<48x384xbf16>,
    %c96_43 = arith.constant 96 : index
    %c151 = arith.constant 151 : index
    %57 = vector.load %arg13[%c96_43, %c151] : memref<432x640xbf16, #tpu.memory_space<vmem>>, vector<48x384xbf16>
    tpu.vector_store %arg13[%c96_43, %c151], %54 {strides = array<i32>} : memref<432x640xbf16, #tpu.memory_space<vmem>>, vector<48x384xbf16>,
    %c144_44 = arith.constant 144 : index
    %c129 = arith.constant 129 : index
    %58 = vector.load %arg13[%c144_44, %c129] : memref<432x640xbf16, #tpu.memory_space<vmem>>, vector<48x384xbf16>
    tpu.vector_store %arg13[%c144_44, %c129], %54 {strides = array<i32>} : memref<432x640xbf16, #tpu.memory_space<vmem>>, vector<48x384xbf16>,
    %c192_45 = arith.constant 192 : index
    %c128 = arith.constant 128 : index
    %59 = vector.load %arg13[%c192_45, %c128] : memref<432x640xbf16, #tpu.memory_space<vmem>>, vector<48x384xbf16>
    tpu.vector_store %arg13[%c192_45, %c128], %54 {strides = array<i32>} : memref<432x640xbf16, #tpu.memory_space<vmem>>, vector<48x384xbf16>,
    %c240_46 = arith.constant 240 : index
    %c127 = arith.constant 127 : index
    %60 = vector.load %arg13[%c240_46, %c127] : memref<432x640xbf16, #tpu.memory_space<vmem>>, vector<48x384xbf16>
    tpu.vector_store %arg13[%c240_46, %c127], %54 {strides = array<i32>} : memref<432x640xbf16, #tpu.memory_space<vmem>>, vector<48x384xbf16>,
    %c288_47 = arith.constant 288 : index
    %c105 = arith.constant 105 : index
    %61 = vector.load %arg13[%c288_47, %c105] : memref<432x640xbf16, #tpu.memory_space<vmem>>, vector<48x384xbf16>
    tpu.vector_store %arg13[%c288_47, %c105], %54 {strides = array<i32>} : memref<432x640xbf16, #tpu.memory_space<vmem>>, vector<48x384xbf16>,
    %c336_48 = arith.constant 336 : index
    %c104 = arith.constant 104 : index
    %62 = vector.load %arg13[%c336_48, %c104] : memref<432x640xbf16, #tpu.memory_space<vmem>>, vector<48x384xbf16>
    tpu.vector_store %arg13[%c336_48, %c104], %54 {strides = array<i32>} : memref<432x640xbf16, #tpu.memory_space<vmem>>, vector<48x384xbf16>,
    %c384_49 = arith.constant 384 : index
    %c103 = arith.constant 103 : index
    %63 = vector.load %arg13[%c384_49, %c103] : memref<432x640xbf16, #tpu.memory_space<vmem>>, vector<48x384xbf16>
    tpu.vector_store %arg13[%c384_49, %c103], %54 {strides = array<i32>} : memref<432x640xbf16, #tpu.memory_space<vmem>>, vector<48x384xbf16>,
    %c0_50 = arith.constant 0 : index
    %c0_51 = arith.constant 0 : index
    %64 = vector.load %arg5[%c0_50, %c0_51] : memref<8x432xbf16, #tpu.memory_space<vmem>>, vector<8x432xbf16>
    %c0_52 = arith.constant 0 : index
    %c128_53 = arith.constant 128 : index
    %65 = vector.load %arg13[%c0_52, %c128_53] : memref<432x640xbf16, #tpu.memory_space<vmem>>, vector<432x384xbf16>
    %cst_54 = arith.constant dense<0.000000e+00> : vector<8x384xf32>
    %66 = tpu.matmul %64, %65, %cst_54 {dimension_numbers = #tpu.dot_dimension_numbers<[1], [0], [0], [1], [0, 0, 1, 1], [], []>} : vector<8x432xbf16>, vector<432x384xbf16>, vector<8x384xf32> -> vector<8x384xf32>
    %c0_55 = arith.constant 0 : index
    %c0_56 = arith.constant 0 : index
    %67 = vector.load %arg6[%c0_55, %c0_56] : memref<8x1xf32, #tpu.memory_space<vmem>>, vector<8x1xf32>
    %68 = vector.broadcast %67 : vector<8x1xf32> to vector<8x384xf32>
    %69 = arith.addf %66, %68 : vector<8x384xf32>
    %c0_57 = arith.constant 0 : index
    %c0_58 = arith.constant 0 : index
    %c25_59 = arith.constant 25 : index
    %70 = vector.load %arg2[%c0_57, %c0_58, %c25_59] : memref<1x8x456xbf16, #tpu.memory_space<vmem>>, vector<1x8x384xbf16>
    %71 = vector.shape_cast %70 : vector<1x8x384xbf16> to vector<8x384xbf16>
    %72 = arith.extf %71 : vector<8x384xbf16> to vector<8x384xf32>
    %73 = arith.addf %69, %72 : vector<8x384xf32>
    %74 = vector.broadcast %16 : vector<1x384xf32> to vector<8x384xf32>
    %75 = arith.mulf %73, %74 : vector<8x384xf32>
    %76 = arith.truncf %75 : vector<8x384xf32> to vector<8x384xbf16>
    %c0_60 = arith.constant 0 : index
    %c153_61 = arith.constant 153 : index
    %77 = vector.load %arg14[%c0_60, %c153_61] : memref<72x640xbf16, #tpu.memory_space<vmem>>, vector<8x384xbf16>
    tpu.vector_store %arg14[%c0_60, %c153_61], %76 {strides = array<i32>} : memref<72x640xbf16, #tpu.memory_space<vmem>>, vector<8x384xbf16>,
    %c8 = arith.constant 8 : index
    %c152_62 = arith.constant 152 : index
    %78 = vector.load %arg14[%c8, %c152_62] : memref<72x640xbf16, #tpu.memory_space<vmem>>, vector<8x384xbf16>
    tpu.vector_store %arg14[%c8, %c152_62], %76 {strides = array<i32>} : memref<72x640xbf16, #tpu.memory_space<vmem>>, vector<8x384xbf16>,
    %c16 = arith.constant 16 : index
    %c151_63 = arith.constant 151 : index
    %79 = vector.load %arg14[%c16, %c151_63] : memref<72x640xbf16, #tpu.memory_space<vmem>>, vector<8x384xbf16>
    tpu.vector_store %arg14[%c16, %c151_63], %76 {strides = array<i32>} : memref<72x640xbf16, #tpu.memory_space<vmem>>, vector<8x384xbf16>,
    %c24_64 = arith.constant 24 : index
    %c129_65 = arith.constant 129 : index
    %80 = vector.load %arg14[%c24_64, %c129_65] : memref<72x640xbf16, #tpu.memory_space<vmem>>, vector<8x384xbf16>
    tpu.vector_store %arg14[%c24_64, %c129_65], %76 {strides = array<i32>} : memref<72x640xbf16, #tpu.memory_space<vmem>>, vector<8x384xbf16>,
    %c32 = arith.constant 32 : index
    %c128_66 = arith.constant 128 : index
    %81 = vector.load %arg14[%c32, %c128_66] : memref<72x640xbf16, #tpu.memory_space<vmem>>, vector<8x384xbf16>
    tpu.vector_store %arg14[%c32, %c128_66], %76 {strides = array<i32>} : memref<72x640xbf16, #tpu.memory_space<vmem>>, vector<8x384xbf16>,
    %c40 = arith.constant 40 : index
    %c127_67 = arith.constant 127 : index
    %82 = vector.load %arg14[%c40, %c127_67] : memref<72x640xbf16, #tpu.memory_space<vmem>>, vector<8x384xbf16>
    tpu.vector_store %arg14[%c40, %c127_67], %76 {strides = array<i32>} : memref<72x640xbf16, #tpu.memory_space<vmem>>, vector<8x384xbf16>,
    %c48_68 = arith.constant 48 : index
    %c105_69 = arith.constant 105 : index
    %83 = vector.load %arg14[%c48_68, %c105_69] : memref<72x640xbf16, #tpu.memory_space<vmem>>, vector<8x384xbf16>
    tpu.vector_store %arg14[%c48_68, %c105_69], %76 {strides = array<i32>} : memref<72x640xbf16, #tpu.memory_space<vmem>>, vector<8x384xbf16>,
    %c56 = arith.constant 56 : index
    %c104_70 = arith.constant 104 : index
    %84 = vector.load %arg14[%c56, %c104_70] : memref<72x640xbf16, #tpu.memory_space<vmem>>, vector<8x384xbf16>
    tpu.vector_store %arg14[%c56, %c104_70], %76 {strides = array<i32>} : memref<72x640xbf16, #tpu.memory_space<vmem>>, vector<8x384xbf16>,
    %c64 = arith.constant 64 : index
    %c103_71 = arith.constant 103 : index
    %85 = vector.load %arg14[%c64, %c103_71] : memref<72x640xbf16, #tpu.memory_space<vmem>>, vector<8x384xbf16>
    tpu.vector_store %arg14[%c64, %c103_71], %76 {strides = array<i32>} : memref<72x640xbf16, #tpu.memory_space<vmem>>, vector<8x384xbf16>,
    %c0_72 = arith.constant 0 : index
    %c0_73 = arith.constant 0 : index
    %86 = vector.load %arg7[%c0_72, %c0_73] : memref<32x72xbf16, #tpu.memory_space<vmem>>, vector<32x72xbf16>
    %c0_74 = arith.constant 0 : index
    %c128_75 = arith.constant 128 : index
    %87 = vector.load %arg14[%c0_74, %c128_75] : memref<72x640xbf16, #tpu.memory_space<vmem>>, vector<72x384xbf16>
    %cst_76 = arith.constant dense<0.000000e+00> : vector<32x384xf32>
    %88 = tpu.matmul %86, %87, %cst_76 {dimension_numbers = #tpu.dot_dimension_numbers<[1], [0], [0], [1], [0, 0, 1, 1], [], []>} : vector<32x72xbf16>, vector<72x384xbf16>, vector<32x384xf32> -> vector<32x384xf32>
    %c0_77 = arith.constant 0 : index
    %c0_78 = arith.constant 0 : index
    %89 = vector.load %arg8[%c0_77, %c0_78] : memref<32x1xf32, #tpu.memory_space<vmem>>, vector<32x1xf32>
    %90 = vector.broadcast %89 : vector<32x1xf32> to vector<32x384xf32>
    %91 = arith.addf %88, %90 : vector<32x384xf32>
    %cst_79 = arith.constant 0.000000e+00 : f32
    %92 = vector.broadcast %cst_79 : f32 to vector<32x384xf32>
    %93 = arith.maximumf %91, %92 : vector<32x384xf32>
    %94 = vector.broadcast %16 : vector<1x384xf32> to vector<32x384xf32>
    %95 = arith.mulf %93, %94 : vector<32x384xf32>
    %96 = arith.truncf %95 : vector<32x384xf32> to vector<32x384xbf16>
    %c0_80 = arith.constant 0 : index
    %c153_81 = arith.constant 153 : index
    %97 = vector.load %arg15[%c0_80, %c153_81] : memref<288x640xbf16, #tpu.memory_space<vmem>>, vector<32x384xbf16>
    tpu.vector_store %arg15[%c0_80, %c153_81], %96 {strides = array<i32>} : memref<288x640xbf16, #tpu.memory_space<vmem>>, vector<32x384xbf16>,
    %c32_82 = arith.constant 32 : index
    %c152_83 = arith.constant 152 : index
    %98 = vector.load %arg15[%c32_82, %c152_83] : memref<288x640xbf16, #tpu.memory_space<vmem>>, vector<32x384xbf16>
    tpu.vector_store %arg15[%c32_82, %c152_83], %96 {strides = array<i32>} : memref<288x640xbf16, #tpu.memory_space<vmem>>, vector<32x384xbf16>,
    %c64_84 = arith.constant 64 : index
    %c151_85 = arith.constant 151 : index
    %99 = vector.load %arg15[%c64_84, %c151_85] : memref<288x640xbf16, #tpu.memory_space<vmem>>, vector<32x384xbf16>
    tpu.vector_store %arg15[%c64_84, %c151_85], %96 {strides = array<i32>} : memref<288x640xbf16, #tpu.memory_space<vmem>>, vector<32x384xbf16>,
    %c96_86 = arith.constant 96 : index
    %c129_87 = arith.constant 129 : index
    %100 = vector.load %arg15[%c96_86, %c129_87] : memref<288x640xbf16, #tpu.memory_space<vmem>>, vector<32x384xbf16>
    tpu.vector_store %arg15[%c96_86, %c129_87], %96 {strides = array<i32>} : memref<288x640xbf16, #tpu.memory_space<vmem>>, vector<32x384xbf16>,
    %c128_88 = arith.constant 128 : index
    %c128_89 = arith.constant 128 : index
    %101 = vector.load %arg15[%c128_88, %c128_89] : memref<288x640xbf16, #tpu.memory_space<vmem>>, vector<32x384xbf16>
    tpu.vector_store %arg15[%c128_88, %c128_89], %96 {strides = array<i32>} : memref<288x640xbf16, #tpu.memory_space<vmem>>, vector<32x384xbf16>,
    %c160 = arith.constant 160 : index
    %c127_90 = arith.constant 127 : index
    %102 = vector.load %arg15[%c160, %c127_90] : memref<288x640xbf16, #tpu.memory_space<vmem>>, vector<32x384xbf16>
    tpu.vector_store %arg15[%c160, %c127_90], %96 {strides = array<i32>} : memref<288x640xbf16, #tpu.memory_space<vmem>>, vector<32x384xbf16>,
    %c192_91 = arith.constant 192 : index
    %c105_92 = arith.constant 105 : index
    %103 = vector.load %arg15[%c192_91, %c105_92] : memref<288x640xbf16, #tpu.memory_space<vmem>>, vector<32x384xbf16>
    tpu.vector_store %arg15[%c192_91, %c105_92], %96 {strides = array<i32>} : memref<288x640xbf16, #tpu.memory_space<vmem>>, vector<32x384xbf16>,
    %c224 = arith.constant 224 : index
    %c104_93 = arith.constant 104 : index
    %104 = vector.load %arg15[%c224, %c104_93] : memref<288x640xbf16, #tpu.memory_space<vmem>>, vector<32x384xbf16>
    tpu.vector_store %arg15[%c224, %c104_93], %96 {strides = array<i32>} : memref<288x640xbf16, #tpu.memory_space<vmem>>, vector<32x384xbf16>,
    %c256 = arith.constant 256 : index
    %c103_94 = arith.constant 103 : index
    %105 = vector.load %arg15[%c256, %c103_94] : memref<288x640xbf16, #tpu.memory_space<vmem>>, vector<32x384xbf16>
    tpu.vector_store %arg15[%c256, %c103_94], %96 {strides = array<i32>} : memref<288x640xbf16, #tpu.memory_space<vmem>>, vector<32x384xbf16>,
    %c0_95 = arith.constant 0 : index
    %c0_96 = arith.constant 0 : index
    %106 = vector.load %arg9[%c0_95, %c0_96] : memref<3x288xbf16, #tpu.memory_space<vmem>>, vector<3x288xbf16>
    %c0_97 = arith.constant 0 : index
    %c128_98 = arith.constant 128 : index
    %107 = vector.load %arg15[%c0_97, %c128_98] : memref<288x640xbf16, #tpu.memory_space<vmem>>, vector<288x384xbf16>
    %cst_99 = arith.constant dense<0.000000e+00> : vector<3x384xf32>
    %108 = tpu.matmul %106, %107, %cst_99 {dimension_numbers = #tpu.dot_dimension_numbers<[1], [0], [0], [1], [0, 0, 1, 1], [], []>} : vector<3x288xbf16>, vector<288x384xbf16>, vector<3x384xf32> -> vector<3x384xf32>
    %c0_100 = arith.constant 0 : index
    %c0_101 = arith.constant 0 : index
    %109 = vector.load %arg10[%c0_100, %c0_101] : memref<3x1xf32, #tpu.memory_space<vmem>>, vector<3x1xf32>
    %110 = vector.broadcast %109 : vector<3x1xf32> to vector<3x384xf32>
    %111 = arith.addf %108, %110 : vector<3x384xf32>
    %c0_102 = arith.constant 0 : index
    %c0_103 = arith.constant 0 : index
    %c0_104 = arith.constant 0 : index
    %112 = vector.load %arg11[%c0_102, %c0_103, %c0_104] : memref<1x3x384xf32, #tpu.memory_space<vmem>>, vector<1x3x384xf32>
    %113 = vector.shape_cast %112 : vector<1x3x384xf32> to vector<3x384xf32>
    %114 = vector.shape_cast %111 : vector<3x384xf32> to vector<1x3x384xf32>
    tpu.vector_store %arg11[%c0_102, %c0_103, %c0_104], %114 {strides = array<i32>} : memref<1x3x384xf32, #tpu.memory_space<vmem>>, vector<1x3x384xf32>,
    return
  }
  func.func @transform_0(%arg0: i32) -> (i32, i32, i32) {
    %c0_i32 = arith.constant 0 : i32
    %c0_i32_0 = arith.constant 0 : i32
    %c0_i32_1 = arith.constant 0 : i32
    return %arg0, %c0_i32, %c0_i32_0 : i32, i32, i32
  }
  func.func @transform_1(%arg0: i32) -> (i32, i32, i32) {
    %c0_i32 = arith.constant 0 : i32
    %c0_i32_0 = arith.constant 0 : i32
    %c0_i32_1 = arith.constant 0 : i32
    return %arg0, %c0_i32, %c0_i32_0 : i32, i32, i32
  }
  func.func @transform_2(%arg0: i32) -> (i32, i32) {
    %c0_i32 = arith.constant 0 : i32
    %c0_i32_0 = arith.constant 0 : i32
    %c0_i32_1 = arith.constant 0 : i32
    return %c0_i32, %c0_i32_0 : i32, i32
  }
  func.func @transform_3(%arg0: i32) -> (i32, i32) {
    %c0_i32 = arith.constant 0 : i32
    %c0_i32_0 = arith.constant 0 : i32
    %c0_i32_1 = arith.constant 0 : i32
    return %c0_i32, %c0_i32_0 : i32, i32
  }
  func.func @transform_4(%arg0: i32) -> (i32, i32) {
    %c0_i32 = arith.constant 0 : i32
    %c0_i32_0 = arith.constant 0 : i32
    %c0_i32_1 = arith.constant 0 : i32
    return %c0_i32, %c0_i32_0 : i32, i32
  }
  func.func @transform_5(%arg0: i32) -> (i32, i32) {
    %c0_i32 = arith.constant 0 : i32
    %c0_i32_0 = arith.constant 0 : i32
    %c0_i32_1 = arith.constant 0 : i32
    return %c0_i32, %c0_i32_0 : i32, i32
  }
  func.func @transform_6(%arg0: i32) -> (i32, i32) {
    %c0_i32 = arith.constant 0 : i32
    %c0_i32_0 = arith.constant 0 : i32
    %c0_i32_1 = arith.constant 0 : i32
    return %c0_i32, %c0_i32_0 : i32, i32
  }
  func.func @transform_7(%arg0: i32) -> (i32, i32) {
    %c0_i32 = arith.constant 0 : i32
    %c0_i32_0 = arith.constant 0 : i32
    %c0_i32_1 = arith.constant 0 : i32
    return %c0_i32, %c0_i32_0 : i32, i32
  }
  func.func @transform_8(%arg0: i32) -> (i32, i32) {
    %c0_i32 = arith.constant 0 : i32
    %c0_i32_0 = arith.constant 0 : i32
    %c0_i32_1 = arith.constant 0 : i32
    return %c0_i32, %c0_i32_0 : i32, i32
  }
  func.func @transform_9(%arg0: i32) -> (i32, i32) {
    %c0_i32 = arith.constant 0 : i32
    %c0_i32_0 = arith.constant 0 : i32
    %c0_i32_1 = arith.constant 0 : i32
    return %c0_i32, %c0_i32_0 : i32, i32
  }
  func.func @transform_10(%arg0: i32) -> (i32, i32, i32) {
    %c0_i32 = arith.constant 0 : i32
    %c0_i32_0 = arith.constant 0 : i32
    %c0_i32_1 = arith.constant 0 : i32
    return %arg0, %c0_i32, %c0_i32_0 : i32, i32, i32
  }
}

</mosaic_0001>

<bundles_post_ra>
// kernel: fdvmnet_forward.2
= control target key start
LH: loop header
LB: loop body
LE: loop exit
PB: predicated region body
PF: predicated region fallthrough
CT: control target
= control target key end

     0   :  { %s908_s12 = smov 0   ;;  %s1015_s0 = inlined_call_operand.vmem [shape: bf16[2,8,456], index: 0, kind: input, shape index: {}]   ;;  %s1016_s1 = inlined_call_operand.vmem [shape: bf16[48,72], index: 1, kind: input, shape index: {}]   ;;  %s1017_s2 = inlined_call_operand.vmem [shape: f32[48,1], index: 2, kind: input, shape index: {}]   ;;  %s1018_s3 = inlined_call_operand.vmem [shape: bf16[2,48,384], index: 3, kind: output, shape index: {}]  }
   0x1 LB: > { %s750_s13 = sadd.s32 4294967295, %s875_s12   ;;  %p753_p0 = scmp.ge.s32.totalorder %s875_s12, 1  ;;  %s875_s12 = sphi %s908_s12, %s13_s12  }
   0x2   : > { %p137_p1 = scmp.lt.s32.totalorder %s875_s12, 3 }
   0x4   : > { %p138_p2 = pnand %p753_p0, %p137_p1 }
   0x5   : > { %p161_p3 = scmp.lt.s32.totalorder (!%p138_p2), %s750_s13, 1  ;;  %s877_s18 = smov (!%p138_p2), 126   ;;  %v879_v3 = vmov (!%p138_p2), 0.0   ;;  %v885_v4 = vmov (!%p138_p2), 0   ;;  %vm887_vm0 = vmmov (!%p138_p2), 0   ;;  %v345_v5 = vld [vmem:[%s1017_s2] sm:$0xff] (!%p138_p2) }
   0x6   : > { %141 = sbr.rel (%p138_p2) target bundleno = 412 (0x19c), region = 32  ;;  %s878_s19 = smov (!%p138_p2), 127   ;;  %817 = vmatprep.subr.bf16.mxu1 (!%p138_p2), %v879_v3  ;;  %520 = vmatprep.mubr.bf16.mxu0 (!%p138_p2), %v885_v4  ;;  %v346_v6 = vld [vmem:[%s1017_s2 + $0x8] sm:$0xff] (!%p138_p2)  ;;  %v347_v7 = vld [vmem:[%s1017_s2 + $0x10] sm:$0xff] (!%p138_p2)  ;;  %v348_v8 = vld [vmem:[%s1017_s2 + $0x18] sm:$0xff] (!%p138_p2)  ;;  %vm186_vm1 = vcmask (!%p138_p2), 1043456  }
   0x7   : > { %s880_s20 = smov (!%p138_p2), 104   ;;  %s881_s21 = smov (!%p138_p2), 103   ;;  %859 = vset.pattern.permute.xlu0 (!%p138_p2), %v885_v4  ;;  %860 = vset.pattern.permute.xlu1 (!%p138_p2), %v885_v4  ;;  %v349_v9 = vld [vmem:[%s1017_s2 + $0x20] sm:$0xff] (!%p138_p2)  ;;  %v350_v10 = vld [vmem:[%s1017_s2 + $0x28] sm:$0xff] (!%p138_p2)  ;;  %vm206_vm2 = vcmask (!%p138_p2), 1031168   ;;  %vm188_vm3 = vcmask (!%p138_p2), 1039360  }
   0x8   : > { %s882_s22 = smov (!%p138_p2), 102   ;;  %s883_s23 = smov (!%p138_p2), 80   ;;  %827 = vmatprep.mubr.msk.bf16.mxu1 (!%p138_p2), %vm887_vm0, %v879_v3  ;;  %vm224_vm4 = vcmask (!%p138_p2), 850944   ;;  %vm242_vm5 = vcmask (!%p138_p2), 842752   ;;  %vm260_vm6 = vcmask (!%p138_p2), 834560   ;;  %vm278_vm7 = vcmask (!%p138_p2), 654336  }
   0x9   : > { %s884_s24 = smov (!%p138_p2), 79   ;;  %s886_s25 = smov (!%p138_p2), 78   ;;  %vm296_vm8 = vcmask (!%p138_p2), 646144   ;;  %vm314_vm9 = vcmask (!%p138_p2), 637952   ;;  %vm468_vm10 = vcmask (!%p138_p2), 588800  }
   0xd   : > { %s1020_s13 = smov (!%p161_p3, %s750_s13), 1 }
   0xe   : > { %s796_s14 = sshll.u32 %s1020_s13, 4 }
   0xf   : > { %s165_s17 = scalar_lea.vmem %s1015_s0, %s796_s14 }
  0x10   : > { %v922_v0 = vld [vmem:[%s165_s17] sm:$0xff]  ;;  %v173_v1 = vld [vmem:[%s165_s17 + $0x8] sm:$0xf] }
  0x11   : > { %199 = vrot.lane.b32.xlu1 %v922_v0, %s877_s18  ;;  %180 = vrot.lane.b32.xlu0 %v922_v0, %s878_s19  ;;  %175 = vst [vmem:[#allocation2 + $0x8] sm:$0xf] %v173_v1  ;;  %v196_v2 = vld [vmem:[%s165_s17 + $0x8] sm:$0xff] }
  0x15   : > { %201 = vrot.lane.b32.xlu1 %v196_v2, %s877_s18  ;;  %182 = vrot.lane.b32.xlu0 %v196_v2, %s878_s19  ;;  %s839_s19 = smul.u32 72, %s1020_s13 }
  0x19   : > { %219 = vrot.lane.b32.xlu1 %v196_v2, %s880_s20  ;;  %217 = vrot.lane.b32.xlu0 %v922_v0, %s880_s20 }
  0x1d   : > { %237 = vrot.lane.b32.xlu1 %v196_v2, %s881_s21  ;;  %235 = vrot.lane.b32.xlu0 %v922_v0, %s881_s21 }
  0x21   : > { %255 = vrot.lane.b32.xlu1 %v196_v2, %s882_s22  ;;  %253 = vrot.lane.b32.xlu0 %v922_v0, %s882_s22  ;;  %s998_s22 = scalar_lea.vmem %s1018_s3, %s839_s19 }
  0x25   : > { %273 = vrot.lane.b32.xlu1 %v196_v2, %s883_s23  ;;  %271 = vrot.lane.b32.xlu0 %v922_v0, %s883_s23 }
  0x29   : > { %291 = vrot.lane.b32.xlu1 %v196_v2, %s884_s24  ;;  %289 = vrot.lane.b32.xlu0 %v922_v0, %s884_s24 }
  0x2d   : > { %309 = vrot.lane.b32.xlu1 %v196_v2, %s886_s25  ;;  %307 = vrot.lane.b32.xlu0 %v922_v0, %s886_s25 }
  0x31   : > { %353 = vperm.xlu0 %859, %v345_v5   ;;  %358 = vperm.xlu1 %860, %v346_v6  }
  0x35   : > { %363 = vperm.xlu1 %860, %v347_v7   ;;  %368 = vperm.xlu0 %859, %v348_v8  }
  0x39   : > { %373 = vperm.xlu1 %860, %v349_v9   ;;  %378 = vperm.xlu0 %859, %v350_v10  }
  0x83   : > { %v200_v11 = vpop.permute.xlu1 %199  ;;  %v181_v12 = vpop.permute.xlu0 %180 }
  0x84   : > { %v184_v13 = vrot.slane %v181_v12, 4  ;;  %v203_v16 = vrot.slane %v200_v11, 4 }
  0x87   : > { %v202_v14 = vpop.permute.xlu1 %201  ;;  %v183_v15 = vpop.permute.xlu0 %182 }
  0x88   : > { %v204_v17 = vrot.slane %v202_v14, 4  ;;  %v185_v18 = vrot.slane %v183_v15, 4 }
  0x8a   : > { %v205_v19 = vsel %vm186_vm1, %v203_v16, %v204_v17  ;;  %v208_v20 = vsel %vm206_vm2, %v202_v14, %v204_v17  ;;  %v187_v21 = vsel %vm186_vm1, %v184_v13, %v185_v18  ;;  %v190_v22 = vsel %vm188_vm3, %v183_v15, %v185_v18 }
  0x8b   : > { %v207_v23 = vsel %vm206_vm2, %v200_v11, %v205_v19  ;;  %212 = vst [vmem:[#allocation2 + $0x20] sm:$0xf] %v208_v20  ;;  %v189_v24 = vsel %vm188_vm3, %v181_v12, %v187_v21  ;;  %194 = vst [vmem:[#allocation2 + $0x14] sm:$0xf] %v190_v22  ;;  %v220_v25 = vpop.permute.xlu1 %219  ;;  %v218_v26 = vpop.permute.xlu0 %217  ;;  %v866_v20 = vld [vmem:[%s1016_s1] sm:$0xff]  }
  0x8c   : > { %v222_v27 = vrot.slane %v220_v25, 4  ;;  %v221_v28 = vrot.slane %v218_v26, 4  ;;  %v761_v29 = vcombine.high %v922_v0, %v189_v24  ;;  %v760_v30 = vcombine.low %v922_v0, %v189_v24  ;;  %v868_v24 = vld [vmem:[%s1016_s1 + $0x10] sm:$0xff]  }
  0x8e   : > { %v226_v31 = vsel %vm224_vm4, %v220_v25, %v222_v27  ;;  %v223_v32 = vsel %vm186_vm1, %v221_v28, %v222_v27  ;;  %488 = vmatprep.subr.bf16.mxu0 %v761_v29 }
  0x8f   : > { %230 = vst [vmem:[#allocation2 + $0x2c] sm:$0xf] %v226_v31  ;;  %v225_v33 = vsel %vm224_vm4, %v218_v26, %v223_v32  ;;  %v238_v34 = vpop.permute.xlu1 %237  ;;  %v236_v35 = vpop.permute.xlu0 %235  ;;  %489 = vmatpush1.bf16.msra.mxu0 %v760_v30 }
  0x90   : > { %v240_v36 = vrot.slane %v238_v34, 4  ;;  %v239_v37 = vrot.slane %v236_v35, 4  ;;  %v764_v38 = vcombine.high %v207_v23, %v225_v33  ;;  %v763_v39 = vcombine.low %v207_v23, %v225_v33  ;;  %v867_v23 = vld [vmem:[%s1016_s1 + $0x8] sm:$0xff]  }
  0x92   : > { %v244_v40 = vsel %vm242_vm5, %v238_v34, %v240_v36  ;;  %v241_v41 = vsel %vm186_vm1, %v239_v37, %v240_v36  ;;  %v861_v42 = vld [vmem:[#allocation2 + $0x8] ss:$12 sps:$4 sm:$0xff]   ;;  %490 = vmatprep.subr.bf16.mxu0 %v764_v38 }
  0x93   : > { %248 = vst [vmem:[#allocation2 + $0x38] sm:$0xf] %v244_v40  ;;  %v243_v43 = vsel %vm242_vm5, %v236_v35, %v241_v41  ;;  %v256_v44 = vpop.permute.xlu1 %255  ;;  %v254_v45 = vpop.permute.xlu0 %253  ;;  %491 = vmatpush1.bf16.msra.mxu0 %v763_v39  ;;  %818 = vmatpush3.bf16.msra.mxu1 %v861_v42 }
  0x94   : > { %v258_v46 = vrot.slane %v256_v44, 4  ;;  %v257_v47 = vrot.slane %v254_v45, 4  ;;  %819 = vmatprep.subr.bf16.mxu1 %v879_v3 }
  0x96   : > { %v262_v48 = vsel %vm260_vm6, %v256_v44, %v258_v46  ;;  %v259_v49 = vsel %vm186_vm1, %v257_v47, %v258_v46  ;;  %v862_v50 = vld [vmem:[#allocation2 + $0x20] ss:$12 sps:$4 sm:$0xff]  }
  0x97   : > { %266 = vst [vmem:[#allocation2 + $0x44] sm:$0xf] %v262_v48  ;;  %v261_v51 = vsel %vm260_vm6, %v254_v45, %v259_v49  ;;  %v274_v52 = vpop.permute.xlu1 %273  ;;  %v272_v53 = vpop.permute.xlu0 %271  ;;  %820 = vmatpush3.bf16.msra.mxu1 %v862_v50 }
  0x98   : > { %v276_v54 = vrot.slane %v274_v52, 4  ;;  %v275_v55 = vrot.slane %v272_v53, 4  ;;  %v767_v56 = vcombine.high %v243_v43, %v261_v51  ;;  %v766_v57 = vcombine.low %v243_v43, %v261_v51  ;;  %821 = vmatprep.subr.bf16.mxu1 %v879_v3 }
  0x9a   : > { %v280_v58 = vsel %vm278_vm7, %v274_v52, %v276_v54  ;;  %v277_v59 = vsel %vm186_vm1, %v275_v55, %v276_v54  ;;  %492 = vmatprep.subr.bf16.mxu0 %v767_v56 }
  0x9b   : > { %284 = vst [vmem:[#allocation2 + $0x50] sm:$0xf] %v280_v58  ;;  %v279_v60 = vsel %vm278_vm7, %v272_v53, %v277_v59  ;;  %v292_v61 = vpop.permute.xlu1 %291  ;;  %v290_v62 = vpop.permute.xlu0 %289  ;;  %493 = vmatpush1.bf16.msra.mxu0 %v766_v57 }
  0x9c   : > { %v294_v63 = vrot.slane %v292_v61, 4  ;;  %v293_v0 = vrot.slane %v290_v62, 4 }
  0x9e   : > { %v298_v1 = vsel %vm296_vm8, %v292_v61, %v294_v63  ;;  %v295_v2 = vsel %vm186_vm1, %v293_v0, %v294_v63  ;;  %v863_v5 = vld [vmem:[#allocation2 + $0x38] ss:$12 sps:$4 sm:$0xff]  }
  0x9f   : > { %302 = vst [vmem:[#allocation2 + $0x5c] sm:$0xf] %v298_v1  ;;  %v297_v6 = vsel %vm296_vm8, %v290_v62, %v295_v2  ;;  %v310_v7 = vpop.permute.xlu1 %309  ;;  %v308_v8 = vpop.permute.xlu0 %307  ;;  %822 = vmatpush3.bf16.msra.mxu1 %v863_v5 }
  0xa0   : > { %v312_v9 = vrot.slane %v310_v7, 4  ;;  %v311_v10 = vrot.slane %v308_v8, 4  ;;  %v770_v11 = vcombine.high %v279_v60, %v297_v6  ;;  %v769_v12 = vcombine.low %v279_v60, %v297_v6  ;;  %823 = vmatprep.subr.bf16.mxu1 %v879_v3 }
  0xa2   : > { %v316_v13 = vsel %vm314_vm9, %v310_v7, %v312_v9  ;;  %v313_v14 = vsel %vm186_vm1, %v311_v10, %v312_v9  ;;  %494 = vmatprep.subr.bf16.mxu0 %v770_v11 }
  0xa3   : > { %320 = vst [vmem:[#allocation2 + $0x68] sm:$0xf] %v316_v13  ;;  %v315_v15 = vsel %vm314_vm9, %v308_v8, %v313_v14  ;;  %495 = vmatpush1.bf16.msra.mxu0 %v769_v12 }
  0xa4   : > { %v773_v16 = vcombine.high %v315_v15, %v315_v15  ;;  %v772_v17 = vcombine.low %v315_v15, %v315_v15 }
  0xa6   : > { %v864_v18 = vld [vmem:[#allocation2 + $0x50] ss:$12 sps:$4 sm:$0xff]   ;;  %775 = vmatprep.subr.msk.bf16.mxu0 %vm186_vm1, %v773_v16  ;;  %v480_v19 = vsel %vm186_vm1, %v772_v17, 0 }
  0xa7   : > { %497 = vmatpush1.bf16.msra.mxu0 %v480_v19  ;;  %824 = vmatpush3.bf16.msra.mxu1 %v864_v18 }
  0xa8   : > { %825 = vmatprep.subr.bf16.mxu1 %v879_v3 }
  0xaa   : > { %v865_v21 = vld [vmem:[#allocation2 + $0x68] ss:$0 sps:$4 sm:$0xff]   ;;  %776 = vmatmul.mubr.msk.bf16.vlgmr.msra.gmra.mrb[0].mxu0 %vm468_vm10, %v866_v20 }
  0xab   : > { %530 = vmatprep.mubr.bf16.mxu0 %v885_v4  ;;  %v486_v22 = vsel %vm186_vm1, %v865_v21, 0 }
  0xac   : > { %826 = vmatpush3.bf16.msra.mxu1 %v486_v22 }
  0xaf   : > { %828 = vmatmul.mubr.msk.bf16.vlgmr.msra.gmra.mrb[0].mxu1 %vm468_vm10, %v866_v20 }
  0xb0   : > { %831 = vmatprep.mubr.msk.bf16.mxu1 %vm887_vm0, %v879_v3  ;;  %v354_v25 = vpop.permute.xlu0 %353  ;;  %v359_v27 = vpop.permute.xlu1 %358 }
  0xb2   : > { %777 = vmatmul.mubr.msk.bf16.gmra.mrb[4].mxu0 %vm468_vm10, %v867_v23 }
  0xb3   : > { %540 = vmatprep.mubr.bf16.mxu0 %v885_v4 }
  0xb4   : > { %v364_v39 = vpop.permute.xlu1 %363  ;;  %v369_v42 = vpop.permute.xlu0 %368 }
  0xb7   : > { %832 = vmatmul.mubr.msk.bf16.gmra.mrb[4].mxu1 %vm468_vm10, %v867_v23 }
  0xb8   : > { %835 = vmatprep.mubr.msk.bf16.mxu1 %vm887_vm0, %v879_v3  ;;  %v374_v0 = vpop.permute.xlu1 %373  ;;  %v379_v14 = vpop.permute.xlu0 %378 }
  0xba   : > { %778 = vmatmul.mubr.msk.bf16.gmra.mrb[8].mxu0 %vm468_vm10, %v868_v24 }
  0xbf   : > { %836 = vmatmul.mubr.msk.bf16.gmra.mrb[8].mxu1 %vm468_vm10, %v868_v24 }
 0x17d   : > { %v522_v26 = vpop.f32.mrb[0].mxu0 }
 0x17e   : > { %v523_v28 = vadd.f32 %v522_v26, %v354_v25  ;;  %v524_v29 = vpop.f32.mrb[1].mxu0 }
 0x17f   : > { %v525_v4 = vadd.f32 %v524_v29, %v354_v25  ;;  %v526_v30 = vpop.f32.mrb[2].mxu0 }
 0x180   : > { %v608_v31 = vmax.f32 %v523_v28, 0.0  ;;  %v527_v32 = vadd.f32 %v526_v30, %v359_v27  ;;  %v528_v33 = vpop.f32.mrb[3].mxu0 }
 0x181   : > { %v609_v34 = vmax.f32 %v525_v4, 0.0  ;;  %v529_v35 = vadd.f32 %v528_v33, %v359_v27 }
 0x182   : > { %v611_v3 = vmax.f32 %v527_v32, 0.0  ;;  %v585_v36 = vpop.f32.mrb[0].mxu1 }
 0x183   : > { %v797_v37 = vpack.c.bf16 %v609_v34, %v608_v31  ;;  %v612_v38 = vmax.f32 %v529_v35, 0.0  ;;  %v586_v40 = vadd.f32 %v585_v36, %v354_v25  ;;  %v829_v41 = vpop.f32.mrb[1].mxu1 }
 0x184   : > { %v588_v43 = vpop.f32.mrb[2].mxu1 }
 0x185   : > { %686 = vst [vmem:[%s998_s22] sm:$0xff] %v797_v37  ;;  %v799_v44 = vpack.c.bf16 %v612_v38, %v611_v3  ;;  %v532_v45 = vpop.f32.mrb[4].mxu0  ;;  %v610_v46 = vmax.f32 %v586_v40, 0.0  ;;  %v589_v47 = vadd.f32 %v588_v43, %v359_v27  ;;  %v830_v48 = vpop.f32.mrb[3].mxu1 }
 0x186   : > { %v533_v49 = vadd.f32 %v532_v45, %v364_v39  ;;  %v534_v50 = vpop.f32.mrb[5].mxu0 }
 0x187   : > { %688 = vst [vmem:[%s998_s22 + $0xc] sm:$0xff] %v799_v44  ;;  %v535_v51 = vadd.f32 %v534_v50, %v364_v39  ;;  %v536_v52 = vpop.f32.mrb[6].mxu0  ;;  %v798_v53 = vpack.c.bf16 %v610_v46, %v610_v46  ;;  %v613_v54 = vmax.f32 %v589_v47, 0.0 }
 0x188   : > { %v614_v55 = vmax.f32 %v533_v49, 0.0  ;;  %v537_v56 = vadd.f32 %v536_v52, %v369_v42  ;;  %v538_v57 = vpop.f32.mrb[7].mxu0 }
 0x189   : > { %v615_v58 = vmax.f32 %v535_v51, 0.0  ;;  %v539_v59 = vadd.f32 %v538_v57, %v369_v42  ;;  %687 = vst [vmem:[%s998_s22 + $0x8] sm:$0xf] %v798_v53  ;;  %v800_v60 = vpack.c.bf16 %v613_v54, %v613_v54 }
 0x18a   : > { %v617_v61 = vmax.f32 %v537_v56, 0.0  ;;  %v593_v62 = vpop.f32.mrb[4].mxu1 }
 0x18b   : > { %v801_v63 = vpack.c.bf16 %v615_v58, %v614_v55  ;;  %v618_v1 = vmax.f32 %v539_v59, 0.0  ;;  %689 = vst [vmem:[%s998_s22 + $0x14] sm:$0xf] %v800_v60  ;;  %v594_v2 = vadd.f32 %v593_v62, %v364_v39  ;;  %v833_v5 = vpop.f32.mrb[5].mxu1 }
 0x18c   : > { %v596_v6 = vpop.f32.mrb[6].mxu1 }
 0x18d   : > { %690 = vst [vmem:[%s998_s22 + $0x18] sm:$0xff] %v801_v63  ;;  %v803_v7 = vpack.c.bf16 %v618_v1, %v617_v61  ;;  %v542_v8 = vpop.f32.mrb[8].mxu0  ;;  %v616_v9 = vmax.f32 %v594_v2, 0.0  ;;  %v597_v10 = vadd.f32 %v596_v6, %v369_v42  ;;  %v834_v11 = vpop.f32.mrb[7].mxu1 }
 0x18e   : > { %v543_v12 = vadd.f32 %v542_v8, %v374_v0  ;;  %v544_v13 = vpop.f32.mrb[9].mxu0 }
 0x18f   : > { %692 = vst [vmem:[%s998_s22 + $0x24] sm:$0xff] %v803_v7  ;;  %v545_v15 = vadd.f32 %v544_v13, %v374_v0  ;;  %v546_v16 = vpop.f32.mrb[10].mxu0  ;;  %v802_v17 = vpack.c.bf16 %v616_v9, %v616_v9  ;;  %v619_v18 = vmax.f32 %v597_v10, 0.0 }
 0x190   : > { %v620_v19 = vmax.f32 %v543_v12, 0.0  ;;  %v547_v20 = vadd.f32 %v546_v16, %v379_v14  ;;  %v548_v21 = vpop.f32.mrb[11].mxu0 }
 0x191   : > { %v621_v22 = vmax.f32 %v545_v15, 0.0  ;;  %v549_v23 = vadd.f32 %v548_v21, %v379_v14  ;;  %691 = vst [vmem:[%s998_s22 + $0x20] sm:$0xf] %v802_v17  ;;  %v804_v24 = vpack.c.bf16 %v619_v18, %v619_v18 }
 0x192   : > { %v623_v25 = vmax.f32 %v547_v20, 0.0  ;;  %v601_v26 = vpop.f32.mrb[8].mxu1 }
 0x193   : > { %v805_v27 = vpack.c.bf16 %v621_v22, %v620_v19  ;;  %v624_v28 = vmax.f32 %v549_v23, 0.0  ;;  %693 = vst [vmem:[%s998_s22 + $0x2c] sm:$0xf] %v804_v24  ;;  %v602_v29 = vadd.f32 %v601_v26, %v374_v0  ;;  %v837_v4 = vpop.f32.mrb[9].mxu1 }
 0x194   : > { %v604_v30 = vpop.f32.mrb[10].mxu1 }
 0x195   : > { %694 = vst [vmem:[%s998_s22 + $0x30] sm:$0xff] %v805_v27  ;;  %v807_v31 = vpack.c.bf16 %v624_v28, %v623_v25  ;;  %v622_v32 = vmax.f32 %v602_v29, 0.0  ;;  %v605_v33 = vadd.f32 %v604_v30, %v379_v14  ;;  %v838_v34 = vpop.f32.mrb[11].mxu1 }
 0x197   : > { %696 = vst [vmem:[%s998_s22 + $0x3c] sm:$0xff] %v807_v31  ;;  %v806_v35 = vpack.c.bf16 %v622_v32, %v622_v32  ;;  %v625_v3 = vmax.f32 %v605_v33, 0.0 }
 0x199   : > { %695 = vst [vmem:[%s998_s22 + $0x38] sm:$0xf] %v806_v35  ;;  %v808_v36 = vpack.c.bf16 %v625_v3, %v625_v3 }
 0x19b   : > { %697 = vst [vmem:[%s998_s22 + $0x44] sm:$0xf] %v808_v36 }
 0x19c PF: > { %s13_s12 = sadd.s32 1, %s875_s12  }
 0x19d   : > { %p10_p4 = scmp.ge.s32.totalorder %s13_s12, 4  }
 0x19f   :  { %12 = sbr.rel (!%p10_p4) target bundleno = 1 (0x1), region = 62 }

// kernel: fdvmnet_forward.3
= control target key start
LH: loop header
LB: loop body
LE: loop exit
PB: predicated region body
PF: predicated region fallthrough
CT: control target
= control target key end

     0   :  { %s4340_s13 = smov 0   ;;  %s5559_s0 = inlined_call_operand.vmem [shape: bf16[2,48,456], index: 0, kind: input, shape index: {}]   ;;  %s5560_s1 = inlined_call_operand.vmem [shape: bf16[2,8,456], index: 1, kind: input, shape index: {}]   ;;  %s5561_s2 = inlined_call_operand.vmem [shape: bf16[48,432], index: 2, kind: input, shape index: {}]   ;;  %s5562_s3 = inlined_call_operand.vmem [shape: f32[48,1], index: 3, kind: input, shape index: {}]   ;;  %s5563_s4 = inlined_call_operand.vmem [shape: bf16[8,432], index: 4, kind: input, shape index: {}]   ;;  %s5564_s5 = inlined_call_operand.vmem [shape: f32[8,1], index: 5, kind: input, shape index: {}]   ;;  %s5565_s6 = inlined_call_operand.vmem [shape: bf16[32,72], index: 6, kind: input, shape index: {}]   ;;  %s5566_s7 = inlined_call_operand.vmem [shape: f32[32,1], index: 7, kind: input, shape index: {}]   ;;  %s5567_s8 = inlined_call_operand.vmem [shape: bf16[3,288], index: 8, kind: input, shape index: {}]   ;;  %s5568_s9 = inlined_call_operand.vmem [shape: f32[3,1], index: 9, kind: input, shape index: {}]   ;;  %s5569_s10 = inlined_call_operand.vmem [shape: f32[2,3,384], index: 10, kind: output, shape index: {}]  }
   0x1 LB: > { %s3851_s14 = sadd.s32 4294967295, %s4265_s13   ;;  %p3854_p0 = scmp.ge.s32.totalorder %s4265_s13, 1  ;;  %s4265_s13 = sphi %s4340_s13, %s20_s13  }
   0x2   : > { %p322_p1 = scmp.lt.s32.totalorder %s4265_s13, 3 }
   0x4   : > { %p323_p2 = pnand %p3854_p0, %p322_p1 }
   0x5   : > { %p365_p3 = scmp.lt.s32.totalorder (!%p323_p2), %s3851_s14, 1  ;;  %p3859_p4 = scmp.ne.s32.totalorder (!%p323_p2), %s3851_s14, 0 }
   0x6   : > { %326 = sbr.rel (%p323_p2) target bundleno = 1888 (0x760), region = 60 }
   0xd   : > { %s366_s15 = scalar_select %p365_p3, %s3851_s14, 1 }
   0xe   : > { %384 = sbr.rel (%p3859_p4) target bundleno = 44 (0x2c), region = 64  ;;  %v4267_v0 = vmov (!%p3859_p4), 0  }
   0xf   : > { %s4162_s16 = smul.u32 96, %s366_s15  ;;  %s4020_s17 = sshll.u32 %s366_s15, 4  ;;  %386 = vst [vmem:[#allocation3 + $0x8] sm:$0xff] (!%p3859_p4), %v4267_v0  ;;  %391 = vst [vmem:[#allocation3 + $0x30] sm:$0xff] (!%p3859_p4), %v4267_v0 }
  0x10   : > { %s4351_s20 = scalar_lea.vmem %s5560_s1, %s4020_s17  ;;  %s4163_s21 = smul.u32 12, %s366_s15  ;;  %396 = vst [vmem:[#allocation3 + $0x58] sm:$0xff] (!%p3859_p4), %v4267_v0  ;;  %401 = vst [vmem:[#allocation3 + $0x80] sm:$0xff] (!%p3859_p4), %v4267_v0 }
  0x11   : > { %s4356_s24 = scalar_lea.vmem %s5559_s0, %s4162_s16  ;;  %406 = vst [vmem:[#allocation3 + $0xa8] sm:$0xff] (!%p3859_p4), %v4267_v0  ;;  %411 = vst [vmem:[#allocation3 + $0xd0] sm:$0xff] (!%p3859_p4), %v4267_v0 }
  0x12   : > { %s4361_s27 = scalar_lea.vmem %s5569_s10, %s4163_s21  ;;  %416 = vst [vmem:[#allocation3 + $0xf8] sm:$0xff] (!%p3859_p4), %v4267_v0  ;;  %421 = vst [vmem:[#allocation3 + $0x120] sm:$0xff] (!%p3859_p4), %v4267_v0 }
  0x13   : > { %426 = vst [vmem:[#allocation3 + $0x148] sm:$0xff] (!%p3859_p4), %v4267_v0  ;;  %431 = vst [vmem:[#allocation3 + $0x170] sm:$0xff] (!%p3859_p4), %v4267_v0 }
  0x14   : > { %436 = vst [vmem:[#allocation3 + $0x198] sm:$0xff] (!%p3859_p4), %v4267_v0  ;;  %441 = vst [vmem:[#allocation3 + $0x1c0] sm:$0xff] (!%p3859_p4), %v4267_v0 }
  0x15   : > { %448 = vst [vmem:[#allocation3 + $0x1f8] sm:$0xff] %v4267_v0  ;;  %463 = vst [vmem:[#allocation3 + $0x270] sm:$0xff] %v4267_v0 }
  0x16   : > { %468 = vst [vmem:[#allocation3 + $0x298] sm:$0xff] %v4267_v0  ;;  %473 = vst [vmem:[#allocation3 + $0x2c0] sm:$0xff] %v4267_v0 }
  0x17   : > { %478 = vst [vmem:[#allocation3 + $0x2e8] sm:$0xff] %v4267_v0  ;;  %483 = vst [vmem:[#allocation3 + $0x310] sm:$0xff] %v4267_v0 }
  0x18   : > { %488 = vst [vmem:[#allocation3 + $0x338] sm:$0xff] %v4267_v0  ;;  %493 = vst [vmem:[#allocation3 + $0x360] sm:$0xff] %v4267_v0 }
  0x19   : > { %498 = vst [vmem:[#allocation3 + $0x388] sm:$0xff] %v4267_v0  ;;  %503 = vst [vmem:[#allocation3 + $0x3b0] sm:$0xff] %v4267_v0 }
  0x1a   : > { %508 = vst [vmem:[#allocation3 + $0x3d8] sm:$0xff] %v4267_v0  ;;  %513 = vst [vmem:[#allocation3 + $0x400] sm:$0xff] %v4267_v0 }
  0x1b   : > { %518 = vst [vmem:[#allocation3 + $0x428] sm:$0xff] %v4267_v0  ;;  %520 = vst [vmem:[#allocation4] sm:$0xff] %v4267_v0 }
  0x1c   : > { %521 = vst [vmem:[#allocation4 + $0x8] sm:$0xff] %v4267_v0  ;;  %523 = vst [vmem:[#allocation4 + $0x14] sm:$0xff] %v4267_v0 }
  0x1d   : > { %524 = vst [vmem:[#allocation4 + $0x1c] sm:$0xff] %v4267_v0  ;;  %526 = vst [vmem:[#allocation4 + $0x28] sm:$0xff] %v4267_v0 }
  0x1e   : > { %527 = vst [vmem:[#allocation4 + $0x30] sm:$0xff] %v4267_v0  ;;  %529 = vst [vmem:[#allocation4 + $0x3c] sm:$0xff] %v4267_v0 }
  0x1f   : > { %530 = vst [vmem:[#allocation4 + $0x44] sm:$0xff] %v4267_v0  ;;  %533 = vst [vmem:[#allocation4 + $0x58] sm:$0xff] %v4267_v0 }
  0x20   : > { %535 = vst [vmem:[#allocation4 + $0x64] sm:$0xff] %v4267_v0  ;;  %536 = vst [vmem:[#allocation4 + $0x6c] sm:$0xff] %v4267_v0 }
  0x21   : > { %538 = vst [vmem:[#allocation4 + $0x78] sm:$0xff] %v4267_v0  ;;  %539 = vst [vmem:[#allocation4 + $0x80] sm:$0xff] %v4267_v0 }
  0x22   : > { %541 = vst [vmem:[#allocation4 + $0x8c] sm:$0xff] %v4267_v0  ;;  %542 = vst [vmem:[#allocation4 + $0x94] sm:$0xff] %v4267_v0 }
  0x23   : > { %544 = vst [vmem:[#allocation4 + $0xa0] sm:$0xff] %v4267_v0  ;;  %545 = vst [vmem:[#allocation4 + $0xa8] sm:$0xff] %v4267_v0 }
  0x24   : > { %548 = vst [vmem:[#allocation5 + $0x8] sm:$0xff] %v4267_v0  ;;  %553 = vst [vmem:[#allocation5 + $0x30] sm:$0xff] %v4267_v0 }
  0x25   : > { %558 = vst [vmem:[#allocation5 + $0x58] sm:$0xff] %v4267_v0  ;;  %563 = vst [vmem:[#allocation5 + $0x80] sm:$0xff] %v4267_v0 }
  0x26   : > { %568 = vst [vmem:[#allocation5 + $0xa8] sm:$0xff] %v4267_v0  ;;  %573 = vst [vmem:[#allocation5 + $0xd0] sm:$0xff] %v4267_v0 }
  0x27   : > { %578 = vst [vmem:[#allocation5 + $0xf8] sm:$0xff] %v4267_v0  ;;  %583 = vst [vmem:[#allocation5 + $0x120] sm:$0xff] %v4267_v0 }
  0x28   : > { %600 = vst [vmem:[#allocation5 + $0x1a8] sm:$0xff] %v4267_v0  ;;  %605 = vst [vmem:[#allocation5 + $0x1d0] sm:$0xff] %v4267_v0 }
  0x29   : > { %610 = vst [vmem:[#allocation5 + $0x1f8] sm:$0xff] %v4267_v0  ;;  %615 = vst [vmem:[#allocation5 + $0x220] sm:$0xff] %v4267_v0 }
  0x2a   : > { %620 = vst [vmem:[#allocation5 + $0x248] sm:$0xff] %v4267_v0  ;;  %625 = vst [vmem:[#allocation5 + $0x270] sm:$0xff] %v4267_v0 }
  0x2b   : > { %630 = vst [vmem:[#allocation5 + $0x298] sm:$0xff] %v4267_v0  ;;  %635 = vst [vmem:[#allocation5 + $0x2c0] sm:$0xff] %v4267_v0 }
  0x2c PF: > { %v4364_v1 = vld [vmem:[%s4356_s24 + $0x4] ss:$16 sps:$4 sm:$0xff]   ;;  %v4367_v2 = vld [vmem:[%s4356_s24] ss:$16 sps:$4 sm:$0xff]   ;;  %s4268_s28 = smov 127   ;;  %s4269_s29 = smov 126  }
  0x2d   : > { %799 = vrot.lane.b32.xlu0 %v4364_v1, %s4268_s28  ;;  %v4372_v3 = vld [vmem:[%s4356_s24 + $0x8] ss:$16 sps:$4 sm:$0xff]   ;;  %1829 = vmatprep.subr.bf16.mxu0 %v4364_v1  ;;  %v4378_v4 = vld [vmem:[%s4356_s24 + $0x24] ss:$16 sps:$4 sm:$0xff]   ;;  %v4382_v5 = vld [vmem:[%s4356_s24 + $0x20] ss:$16 sps:$4 sm:$0xff]  }
  0x2e   : > { %797 = vrot.lane.b32.xlu1 %v4367_v2, %s4268_s28  ;;  %1830 = vmatpush1.bf16.msra.mxu0 %v4367_v2  ;;  %v4388_v6 = vld [vmem:[%s4356_s24 + $0x28] ss:$16 sps:$4 sm:$0xff]   ;;  %v4391_v7 = vld [vmem:[%s4356_s24 + $0x44] ss:$16 sps:$4 sm:$0xff]   ;;  %v4396_v8 = vld [vmem:[%s4356_s24 + $0x40] ss:$16 sps:$4 sm:$0xff]  }
  0x2f   : > { %1831 = vmatprep.subr.bf16.mxu0 %v4378_v4  ;;  %v4401_v9 = vld [vmem:[%s4356_s24 + $0x48] ss:$16 sps:$4 sm:$0xff]   ;;  %s4270_s30 = smov 104   ;;  %v4443_v10 = vld [vmem:[%s4356_s24 + $0x4c] ss:$16 sps:$4 sm:$0xff]   ;;  %s4271_s11 = smov 103  }
  0x30   : > { %v4454_v11 = vld [vmem:[%s4356_s24 + $0xc] ss:$16 sps:$4 sm:$0xff]   ;;  %s4272_s12 = smov 102   ;;  %v4220_v13 = vld [vmem:[%s5561_s2 + $0x4] ss:$16 sps:$4 sm:$0xff]   ;;  %v4273_v14 = vmov 0  }
  0x31   : > { %801 = vrot.lane.b32.xlu0 %v4372_v3, %s4268_s28  ;;  %v4465_v12 = vld [vmem:[%s4356_s24 + $0x2c] ss:$16 sps:$4 sm:$0xff]   ;;  %1861 = vmatprep.mubr.bf16.mxu0 %v4220_v13  ;;  %s4274_s16 = smov 80   ;;  %vm821_vm0 = vcmask 1039360   ;;  %vm933_vm1 = vcmask 1031168   ;;  %s4275_s17 = smov 79  }
  0x32   : > { %807 = vrot.lane.b32.xlu1 %v4378_v4, %s4268_s28  ;;  %1832 = vmatpush1.bf16.msra.mxu0 %v4382_v5  ;;  %vm1045_vm2 = vcmask 850944   ;;  %v4215_v55 = vld [vmem:[%s4356_s24 + $0x8] ss:$16 sps:$4 sm:$0xff]   ;;  %s4276_s18 = smov 78   ;;  %vm1157_vm3 = vcmask 842752   ;;  %vm1269_vm4 = vcmask 834560  }
  0x33   : > { %1833 = vmatprep.subr.bf16.mxu0 %v4391_v7  ;;  %1987 = vmatprep.mubr.bf16.mxu1 %v4220_v13  ;;  %v4216_v63 = vld [vmem:[%s4356_s24 + $0x28] ss:$16 sps:$4 sm:$0xff]   ;;  %vm1819_vm5 = vcmask 392192   ;;  %vm1381_vm6 = vcmask 654336   ;;  %vm1493_vm7 = vcmask 646144   ;;  %vm1605_vm8 = vcmask 637952  }
  0x34   : > { %4191 = vset.pattern.permute.xlu1 %v4273_v14  ;;  %4190 = vset.pattern.permute.xlu0 %v4273_v14  ;;  %s4278_s26 = smov 105   ;;  %s4281_s14 = smov 24   ;;  %vm2404_vm12 = vcmask 859136   ;;  %vm5572_vm13 = vcmask 1047752   ;;  %vm5570_vm14 = vcmask 1047736   ;;  %vm5571_vm15 = vcmask 1047744  }
  0x35   : > { %809 = vrot.lane.b32.xlu0 %v4388_v6, %s4268_s28  ;;  %s4282_s15 = smov 1  }
  0x36   : > { %805 = vrot.lane.b32.xlu1 %v4382_v5, %s4268_s28  ;;  %1834 = vmatpush1.bf16.msra.mxu0 %v4396_v8 }
  0x39   : > { %815 = vrot.lane.b32.xlu0 %v4391_v7, %s4268_s28 }
  0x3a   : > { %817 = vrot.lane.b32.xlu1 %v4401_v9, %s4268_s28 }
  0x3d   : > { %813 = vrot.lane.b32.xlu0 %v4396_v8, %s4268_s28 }
  0x3e   : > { %911 = vrot.lane.b32.xlu1 %v4364_v1, %s4269_s29 }
  0x41   : > { %913 = vrot.lane.b32.xlu0 %v4372_v3, %s4269_s29 }
  0x42   : > { %909 = vrot.lane.b32.xlu1 %v4367_v2, %s4269_s29 }
  0x45   : > { %919 = vrot.lane.b32.xlu0 %v4378_v4, %s4269_s29 }
  0x46   : > { %921 = vrot.lane.b32.xlu1 %v4388_v6, %s4269_s29 }
  0x49   : > { %917 = vrot.lane.b32.xlu0 %v4382_v5, %s4269_s29 }
  0x4a   : > { %927 = vrot.lane.b32.xlu1 %v4391_v7, %s4269_s29 }
  0x4d   : > { %929 = vrot.lane.b32.xlu0 %v4401_v9, %s4269_s29 }
  0x4e   : > { %925 = vrot.lane.b32.xlu1 %v4396_v8, %s4269_s29 }
  0x51   : > { %1023 = vrot.lane.b32.xlu0 %v4364_v1, %s4270_s30 }
  0x52   : > { %1025 = vrot.lane.b32.xlu1 %v4372_v3, %s4270_s30 }
  0x55   : > { %1021 = vrot.lane.b32.xlu0 %v4367_v2, %s4270_s30 }
  0x56   : > { %1031 = vrot.lane.b32.xlu1 %v4378_v4, %s4270_s30 }
  0x59   : > { %1033 = vrot.lane.b32.xlu0 %v4388_v6, %s4270_s30 }
  0x5a   : > { %1029 = vrot.lane.b32.xlu1 %v4382_v5, %s4270_s30 }
  0x5d   : > { %931 = vrot.lane.b32.xlu0 %v4443_v10, %s4269_s29 }
  0x5e   : > { %1039 = vrot.lane.b32.xlu1 %v4391_v7, %s4270_s30 }
  0x61   : > { %1041 = vrot.lane.b32.xlu0 %v4401_v9, %s4270_s30 }
  0x62   : > { %1037 = vrot.lane.b32.xlu1 %v4396_v8, %s4270_s30 }
  0x65   : > { %1027 = vrot.lane.b32.xlu0 %v4454_v11, %s4270_s30 }
  0x66   : > { %1135 = vrot.lane.b32.xlu1 %v4364_v1, %s4271_s11 }
  0x69   : > { %1137 = vrot.lane.b32.xlu0 %v4372_v3, %s4271_s11 }
  0x6a   : > { %1133 = vrot.lane.b32.xlu1 %v4367_v2, %s4271_s11 }
  0x6d   : > { %1035 = vrot.lane.b32.xlu0 %v4465_v12, %s4270_s30 }
  0x6e   : > { %1143 = vrot.lane.b32.xlu1 %v4378_v4, %s4271_s11 }
  0x71   : > { %1145 = vrot.lane.b32.xlu0 %v4388_v6, %s4271_s11 }
  0x72   : > { %1141 = vrot.lane.b32.xlu1 %v4382_v5, %s4271_s11 }
  0x75   : > { %1043 = vrot.lane.b32.xlu0 %v4443_v10, %s4270_s30 }
  0x76   : > { %803 = vrot.lane.b32.xlu1 %v4454_v11, %s4268_s28 }
  0x79   : > { %1151 = vrot.lane.b32.xlu0 %v4391_v7, %s4271_s11 }
  0x7a   : > { %1153 = vrot.lane.b32.xlu1 %v4401_v9, %s4271_s11 }
  0x7d   : > { %1149 = vrot.lane.b32.xlu0 %v4396_v8, %s4271_s11 }
  0x7e   : > { %1139 = vrot.lane.b32.xlu1 %v4454_v11, %s4271_s11 }
  0x81   : > { %811 = vrot.lane.b32.xlu0 %v4465_v12, %s4268_s28 }
  0x82   : > { %1247 = vrot.lane.b32.xlu1 %v4364_v1, %s4272_s12 }
  0x85   : > { %1249 = vrot.lane.b32.xlu0 %v4372_v3, %s4272_s12 }
  0x86   : > { %1245 = vrot.lane.b32.xlu1 %v4367_v2, %s4272_s12 }
  0x89   : > { %1147 = vrot.lane.b32.xlu0 %v4465_v12, %s4271_s11 }
  0x8a   : > { %819 = vrot.lane.b32.xlu1 %v4443_v10, %s4268_s28 }
  0x8d   : > { %1255 = vrot.lane.b32.xlu0 %v4378_v4, %s4272_s12 }
  0x8e   : > { %1257 = vrot.lane.b32.xlu1 %v4388_v6, %s4272_s12 }
  0x91   : > { %1253 = vrot.lane.b32.xlu0 %v4382_v5, %s4272_s12 }
  0x92   : > { %1155 = vrot.lane.b32.xlu1 %v4443_v10, %s4271_s11 }
  0x95   : > { %915 = vrot.lane.b32.xlu0 %v4454_v11, %s4269_s29 }
  0x96   : > { %1263 = vrot.lane.b32.xlu1 %v4391_v7, %s4272_s12 }
  0x99   : > { %1265 = vrot.lane.b32.xlu0 %v4401_v9, %s4272_s12 }
  0x9a   : > { %1261 = vrot.lane.b32.xlu1 %v4396_v8, %s4272_s12 }
  0x9d   : > { %1251 = vrot.lane.b32.xlu0 %v4454_v11, %s4272_s12 }
  0x9e   : > { %923 = vrot.lane.b32.xlu1 %v4465_v12, %s4269_s29  ;;  %s4279_s29 = smov 25  }
  0x9f   : > { %v800_v15 = vpop.permute.xlu0 %799 }
  0xa0   : > { %v798_v16 = vpop.permute.xlu1 %797 }
  0xa1   : > { %1359 = vrot.lane.b32.xlu0 %v4364_v1, %s4274_s16  ;;  %v822_v20 = vsel %vm821_vm0, %v798_v16, %v800_v15 }
  0xa2   : > { %1361 = vrot.lane.b32.xlu1 %v4372_v3, %s4274_s16 }
  0xa3   : > { %v4530_v17 = vpop.permute.xlu0 %801 }
  0xa4   : > { %v808_v18 = vpop.permute.xlu1 %807  ;;  %v823_v19 = vsel %vm821_vm0, %v800_v15, %v4530_v17 }
  0xa5   : > { %1357 = vrot.lane.b32.xlu0 %v4367_v2, %s4274_s16  ;;  %1835 = vmatprep.subr.bf16.mxu0 %v823_v19 }
  0xa6   : > { %1259 = vrot.lane.b32.xlu1 %v4465_v12, %s4272_s12  ;;  %1836 = vmatpush1.bf16.msra.mxu0 %v822_v20 }
  0xa7   : > { %v4539_v21 = vpop.permute.xlu0 %809 }
  0xa8   : > { %v806_v22 = vpop.permute.xlu1 %805  ;;  %v826_v23 = vsel %vm821_vm0, %v808_v18, %v4539_v21 }
  0xa9   : > { %1367 = vrot.lane.b32.xlu0 %v4378_v4, %s4274_s16  ;;  %1837 = vmatprep.subr.bf16.mxu0 %v826_v23  ;;  %v825_v24 = vsel %vm821_vm0, %v806_v22, %v808_v18 }
  0xaa   : > { %1369 = vrot.lane.b32.xlu1 %v4388_v6, %s4274_s16  ;;  %1838 = vmatpush1.bf16.msra.mxu0 %v825_v24 }
  0xab   : > { %v816_v25 = vpop.permute.xlu0 %815 }
  0xac   : > { %v4548_v26 = vpop.permute.xlu1 %817 }
  0xad   : > { %1365 = vrot.lane.b32.xlu0 %v4382_v5, %s4274_s16  ;;  %v829_v27 = vsel %vm821_vm0, %v816_v25, %v4548_v26 }
  0xae   : > { %1267 = vrot.lane.b32.xlu1 %v4443_v10, %s4272_s12  ;;  %1839 = vmatprep.subr.bf16.mxu0 %v829_v27  ;;  %s4280_s12 = smov 23  }
  0xaf   : > { %v814_v28 = vpop.permute.xlu0 %813 }
  0xb0   : > { %v912_v29 = vpop.permute.xlu1 %911  ;;  %v828_v30 = vsel %vm821_vm0, %v814_v28, %v816_v25 }
  0xb1   : > { %1375 = vrot.lane.b32.xlu0 %v4391_v7, %s4274_s16  ;;  %1840 = vmatpush1.bf16.msra.mxu0 %v828_v30 }
  0xb2   : > { %1377 = vrot.lane.b32.xlu1 %v4401_v9, %s4274_s16 }
  0xb3   : > { %v4561_v31 = vpop.permute.xlu0 %913 }
  0xb4   : > { %v910_v32 = vpop.permute.xlu1 %909  ;;  %v935_v33 = vsel %vm933_vm1, %v912_v29, %v4561_v31 }
  0xb5   : > { %1373 = vrot.lane.b32.xlu0 %v4396_v8, %s4274_s16  ;;  %1841 = vmatprep.subr.bf16.mxu0 %v935_v33  ;;  %v934_v34 = vsel %vm933_vm1, %v910_v32, %v912_v29 }
  0xb6   : > { %1363 = vrot.lane.b32.xlu1 %v4454_v11, %s4274_s16  ;;  %1842 = vmatpush1.bf16.msra.mxu0 %v934_v34  ;;  %v1727_v34 = vld [vmem:[%s5562_s3 + $0x8] sm:$0xff] }
  0xb7   : > { %v920_v35 = vpop.permute.xlu0 %919 }
  0xb8   : > { %v4570_v36 = vpop.permute.xlu1 %921 }
  0xb9   : > { %1471 = vrot.lane.b32.xlu0 %v4364_v1, %s4275_s17  ;;  %v938_v37 = vsel %vm933_vm1, %v920_v35, %v4570_v36 }
  0xba   : > { %1473 = vrot.lane.b32.xlu1 %v4372_v3, %s4275_s17  ;;  %1843 = vmatprep.subr.bf16.mxu0 %v938_v37  ;;  %v1729_v37 = vld [vmem:[%s5562_s3 + $0x18] sm:$0xff] }
  0xbb   : > { %v918_v38 = vpop.permute.xlu0 %917 }
  0xbc   : > { %v928_v39 = vpop.permute.xlu1 %927  ;;  %v937_v40 = vsel %vm933_vm1, %v918_v38, %v920_v35 }
  0xbd   : > { %1469 = vrot.lane.b32.xlu0 %v4367_v2, %s4275_s17  ;;  %1844 = vmatpush1.bf16.msra.mxu0 %v937_v40 }
  0xbe   : > { %1371 = vrot.lane.b32.xlu1 %v4465_v12, %s4274_s16 }
  0xbf   : > { %v930_v41 = vpop.permute.xlu0 %929 }
  0xc0   : > { %v926_v42 = vpop.permute.xlu1 %925  ;;  %v941_v43 = vsel %vm933_vm1, %v928_v39, %v930_v41 }
  0xc1   : > { %1479 = vrot.lane.b32.xlu0 %v4378_v4, %s4275_s17  ;;  %1845 = vmatprep.subr.bf16.mxu0 %v941_v43  ;;  %v940_v44 = vsel %vm933_vm1, %v926_v42, %v928_v39  ;;  %v1728_v39 = vld [vmem:[%s5562_s3 + $0x10] sm:$0xff] }
  0xc2   : > { %1481 = vrot.lane.b32.xlu1 %v4388_v6, %s4275_s17  ;;  %1846 = vmatpush1.bf16.msra.mxu0 %v940_v44  ;;  %v4221_v42 = vld [vmem:[%s5561_s2 + $0x24] ss:$16 sps:$4 sm:$0xff]  }
  0xc3   : > { %v1024_v45 = vpop.permute.xlu0 %1023 }
  0xc4   : > { %v1026_v46 = vpop.permute.xlu1 %1025 }
  0xc5   : > { %1477 = vrot.lane.b32.xlu0 %v4382_v5, %s4275_s17  ;;  %v1047_v47 = vsel %vm1045_vm2, %v1024_v45, %v1026_v46 }
  0xc6   : > { %1379 = vrot.lane.b32.xlu1 %v4443_v10, %s4274_s16  ;;  %1847 = vmatprep.subr.bf16.mxu0 %v1047_v47  ;;  %v1730_v47 = vld [vmem:[%s5562_s3 + $0x20] sm:$0xff] }
  0xc7   : > { %v1022_v48 = vpop.permute.xlu0 %1021 }
  0xc8   : > { %v1032_v49 = vpop.permute.xlu1 %1031  ;;  %v1046_v50 = vsel %vm1045_vm2, %v1022_v48, %v1024_v45 }
  0xc9   : > { %1487 = vrot.lane.b32.xlu0 %v4391_v7, %s4275_s17  ;;  %1848 = vmatpush1.bf16.msra.mxu0 %v1046_v50 }
  0xca   : > { %1489 = vrot.lane.b32.xlu1 %v4401_v9, %s4275_s17 }
  0xcb   : > { %v1034_v51 = vpop.permute.xlu0 %1033 }
  0xcc   : > { %v1030_v52 = vpop.permute.xlu1 %1029  ;;  %v1050_v53 = vsel %vm1045_vm2, %v1032_v49, %v1034_v51 }
  0xcd   : > { %1485 = vrot.lane.b32.xlu0 %v4396_v8, %s4275_s17  ;;  %1849 = vmatprep.subr.bf16.mxu0 %v1050_v53  ;;  %v1049_v54 = vsel %vm1045_vm2, %v1030_v52, %v1032_v49  ;;  %v4223_v52 = vld [vmem:[%s5561_s2 + $0x20] ss:$16 sps:$4 sm:$0xff]  }
  0xce   : > { %1475 = vrot.lane.b32.xlu1 %v4454_v11, %s4275_s17  ;;  %1850 = vmatpush1.bf16.msra.mxu0 %v1049_v54  ;;  %v4224_v54 = vld [vmem:[%s5561_s2 + $0x44] ss:$16 sps:$4 sm:$0xff]  }
  0xcf   : > { %v932_v56 = vpop.permute.xlu0 %931 }
  0xd0   : > { %v1040_v57 = vpop.permute.xlu1 %1039  ;;  %v942_v58 = vsel %vm933_vm1, %v930_v41, %v932_v56  ;;  %v4218_v41 = vld [vmem:[%s5561_s2] ss:$16 sps:$4 sm:$0xff]  }
  0xd1   : > { %1583 = vrot.lane.b32.xlu0 %v4364_v1, %s4276_s18  ;;  %4023 = vmatprep.subr.bf16.mxu1 %v942_v58 }
  0xd2   : > { %1585 = vrot.lane.b32.xlu1 %v4372_v3, %s4276_s18  ;;  %4024 = vmatpush3.bf16.msra.mxu1 %v4215_v55 }
  0xd3   : > { %v1042_v59 = vpop.permute.xlu0 %1041 }
  0xd4   : > { %v1038_v60 = vpop.permute.xlu1 %1037  ;;  %v1053_v61 = vsel %vm1045_vm2, %v1040_v57, %v1042_v59 }
  0xd5   : > { %1581 = vrot.lane.b32.xlu0 %v4367_v2, %s4276_s18  ;;  %1851 = vmatprep.subr.bf16.mxu0 %v1053_v61  ;;  %v1052_v62 = vsel %vm1045_vm2, %v1038_v60, %v1040_v57  ;;  %v4226_v61 = vld [vmem:[%s5561_s2 + $0x40] ss:$16 sps:$4 sm:$0xff]  }
  0xd6   : > { %1483 = vrot.lane.b32.xlu1 %v4465_v12, %s4275_s17  ;;  %1852 = vmatpush1.bf16.msra.mxu0 %v1052_v62 }
  0xd7   : > { %v1028_v0 = vpop.permute.xlu0 %1027 }
  0xd8   : > { %v1136_v1 = vpop.permute.xlu1 %1135  ;;  %v1048_v3 = vsel %vm1045_vm2, %v1026_v46, %v1028_v0  ;;  %v1731_v46 = vld [vmem:[%s5562_s3 + $0x28] sm:$0xff] }
  0xd9   : > { %1591 = vrot.lane.b32.xlu0 %v4378_v4, %s4276_s18  ;;  %4025 = vmatprep.subr.bf16.mxu1 %v1048_v3  ;;  %v4217_v4 = vld [vmem:[%s4356_s24 + $0x48] ss:$16 sps:$4 sm:$0xff]   ;;  %v4229_v0 = vld [vmem:[%s5561_s2 + $0xc] ss:$16 sps:$4 sm:$0xff]  }
  0xda   : > { %1593 = vrot.lane.b32.xlu1 %v4388_v6, %s4276_s18  ;;  %4026 = vmatpush3.bf16.msra.mxu1 %v4216_v63 }
  0xdb   : > { %v1138_v2 = vpop.permute.xlu0 %1137 }
  0xdc   : > { %v1134_v13 = vpop.permute.xlu1 %1133  ;;  %v1159_v15 = vsel %vm1157_vm3, %v1136_v1, %v1138_v2 }
  0xdd   : > { %1589 = vrot.lane.b32.xlu0 %v4382_v5, %s4276_s18  ;;  %1853 = vmatprep.subr.bf16.mxu0 %v1159_v15  ;;  %v1158_v16 = vsel %vm1157_vm3, %v1134_v13, %v1136_v1 }
  0xde   : > { %1491 = vrot.lane.b32.xlu1 %v4443_v10, %s4275_s17  ;;  %1854 = vmatpush1.bf16.msra.mxu0 %v1158_v16 }
  0xdf   : > { %v1036_v18 = vpop.permute.xlu0 %1035 }
  0xe0   : > { %v1144_v19 = vpop.permute.xlu1 %1143  ;;  %v1051_v6 = vsel %vm1045_vm2, %v1034_v51, %v1036_v18 }
  0xe1   : > { %1599 = vrot.lane.b32.xlu0 %v4391_v7, %s4276_s18  ;;  %4027 = vmatprep.subr.bf16.mxu1 %v1051_v6 }
  0xe2   : > { %1601 = vrot.lane.b32.xlu1 %v4401_v9, %s4276_s18  ;;  %4028 = vmatpush3.bf16.msra.mxu1 %v4217_v4 }
  0xe3   : > { %v1146_v5 = vpop.permute.xlu0 %1145 }
  0xe4   : > { %v1142_v20 = vpop.permute.xlu1 %1141  ;;  %v1162_v22 = vsel %vm1157_vm3, %v1144_v19, %v1146_v5 }
  0xe5   : > { %1597 = vrot.lane.b32.xlu0 %v4396_v8, %s4276_s18  ;;  %1855 = vmatprep.subr.bf16.mxu0 %v1162_v22  ;;  %v1161_v23 = vsel %vm1157_vm3, %v1142_v20, %v1144_v19 }
  0xe6   : > { %1587 = vrot.lane.b32.xlu1 %v4454_v11, %s4276_s18  ;;  %1856 = vmatpush1.bf16.msra.mxu0 %v1161_v23 }
  0xe7   : > { %v1044_v7 = vpop.permute.xlu0 %1043 }
  0xe8   : > { %v804_v24 = vpop.permute.xlu1 %803  ;;  %v1054_v25 = vsel %vm1045_vm2, %v1042_v59, %v1044_v7 }
  0xe9   : > { %1595 = vrot.lane.b32.xlu0 %v4465_v12, %s4276_s18  ;;  %4029 = vmatprep.subr.bf16.mxu1 %v1054_v25  ;;  %v824_v9 = vsel %vm821_vm0, %v4530_v17, %v804_v24 }
  0xea   : > { %1603 = vrot.lane.b32.xlu1 %v4443_v10, %s4276_s18  ;;  %4030 = vmatpush3.bf16.msra.mxu1 %v824_v9  ;;  %v1726_v10 = vld [vmem:[%s5562_s3] sm:$0xff] }
  0xeb   : > { %v1152_v8 = vpop.permute.xlu0 %1151 }
  0xec   : > { %v1154_v27 = vpop.permute.xlu1 %1153 }
  0xed   : > { %v1165_v11 = vsel %vm1157_vm3, %v1152_v8, %v1154_v27  ;;  %1734 = vperm.xlu0 %4190, %v1726_v10  }
  0xee   : > { %1857 = vmatprep.subr.bf16.mxu0 %v1165_v11  ;;  %1739 = vperm.xlu1 %4191, %v1727_v34  }
  0xef   : > { %v1150_v28 = vpop.permute.xlu0 %1149 }
  0xf0   : > { %v1140_v29 = vpop.permute.xlu1 %1139  ;;  %v1164_v30 = vsel %vm1157_vm3, %v1150_v28, %v1152_v8 }
  0xf1   : > { %1858 = vmatpush1.bf16.msra.mxu0 %v1164_v30  ;;  %v1160_v12 = vsel %vm1157_vm3, %v1138_v2, %v1140_v29  ;;  %1749 = vperm.xlu0 %4190, %v1729_v37  }
  0xf2   : > { %4031 = vmatprep.subr.bf16.mxu1 %v1160_v12  ;;  %1744 = vperm.xlu1 %4191, %v1728_v39  }
  0xf3   : > { %v812_v32 = vpop.permute.xlu0 %811 }
  0xf4   : > { %v1248_v33 = vpop.permute.xlu1 %1247  ;;  %v827_v17 = vsel %vm821_vm0, %v4539_v21, %v812_v32 }
  0xf5   : > { %4032 = vmatpush3.bf16.msra.mxu1 %v827_v17  ;;  %1759 = vperm.xlu0 %4190, %v1731_v46  }
  0xf6   : > { %1754 = vperm.xlu1 %4191, %v1730_v47  }
  0xf7   : > { %v1250_v35 = vpop.permute.xlu0 %1249 }
  0xf8   : > { %v1246_v38 = vpop.permute.xlu1 %1245  ;;  %v1271_v21 = vsel %vm1269_vm4, %v1248_v33, %v1250_v35 }
  0xf9   : > { %1859 = vmatprep.subr.bf16.mxu0 %v1271_v21  ;;  %v1270_v40 = vsel %vm1269_vm4, %v1246_v38, %v1248_v33 }
  0xfa   : > { %1860 = vmatpush1.bf16.msra.mxu0 %v1270_v40 }
  0xfb   : > { %v1148_v43 = vpop.permute.xlu0 %1147 }
  0xfc   : > { %v820_v44 = vpop.permute.xlu1 %819  ;;  %v1163_v45 = vsel %vm1157_vm3, %v1146_v5, %v1148_v43 }
  0xfd   : > { %4033 = vmatprep.subr.bf16.mxu1 %v1163_v45  ;;  %v830_v48 = vsel %vm821_vm0, %v4548_v26, %v820_v44  ;;  %1862 = vmatmul.mubr.bf16.vlgmr.msra.gmra.mrb[0].mxu0 %v4218_v41 }
  0xfe   : > { %4034 = vmatpush3.bf16.msra.mxu1 %v830_v48  ;;  %1871 = vmatprep.mubr.bf16.mxu0 %v4221_v42 }
  0xff   : > { %v1256_v49 = vpop.permute.xlu0 %1255 }
 0x100   : > { %v1258_v50 = vpop.permute.xlu1 %1257 }
 0x101   : > { %v1274_v51 = vsel %vm1269_vm4, %v1256_v49, %v1258_v50 }
 0x102   : > { %1892 = vmatprep.subr.bf16.mxu0 %v1274_v51 }
 0x103   : > { %v1254_v53 = vpop.permute.xlu0 %1253 }
 0x104   : > { %v1273_v26 = vsel %vm1269_vm4, %v1254_v53, %v1256_v49  ;;  %v1156_v55 = vpop.permute.xlu1 %1155 }
 0x105   : > { %1893 = vmatpush1.bf16.msra.mxu0 %v1273_v26  ;;  %v1166_v56 = vsel %vm1157_vm3, %v1154_v27, %v1156_v55 }
 0x106   : > { %4035 = vmatprep.subr.bf16.mxu1 %v1166_v56  ;;  %1872 = vmatmul.mubr.bf16.gmra.mrb[4].mxu0 %v4223_v52 }
 0x107   : > { %v916_v57 = vpop.permute.xlu0 %915  ;;  %1881 = vmatprep.mubr.bf16.mxu0 %v4224_v54 }
 0x108   : > { %v1264_v58 = vpop.permute.xlu1 %1263  ;;  %v936_v59 = vsel %vm933_vm1, %v4561_v31, %v916_v57 }
 0x109   : > { %4036 = vmatpush3.bf16.msra.mxu1 %v936_v59 }
 0x10b   : > { %v1266_v60 = vpop.permute.xlu0 %1265 }
 0x10c   : > { %v1262_v62 = vpop.permute.xlu1 %1261  ;;  %v1277_v63 = vsel %vm1269_vm4, %v1264_v58, %v1266_v60 }
 0x10d   : > { %v1276_v1 = vsel %vm1269_vm4, %v1262_v62, %v1264_v58  ;;  %1894 = vmatprep.subr.bf16.mxu0 %v1277_v63 }
 0x10e   : > { %1895 = vmatpush1.bf16.msra.mxu0 %v1276_v1 }
 0x10f   : > { %v1252_v3 = vpop.permute.xlu0 %1251  ;;  %1882 = vmatmul.mubr.bf16.gmra.mrb[8].mxu0 %v4226_v61 }
 0x110   : > { %v924_v31 = vpop.permute.xlu1 %923  ;;  %v1272_v2 = vsel %vm1269_vm4, %v1250_v35, %v1252_v3  ;;  %3980 = vmatprep.mubr.msk.bf16.mxu0 %vm1819_vm5, %v4229_v0 }
 0x111   : > { %4037 = vmatprep.subr.bf16.mxu1 %v1272_v2  ;;  %v939_v13 = vsel %vm933_vm1, %v4570_v36, %v924_v31  ;;  %vm2141_vm1 = vcmask 203776  }
 0x112   : > { %4038 = vmatpush3.bf16.msra.mxu1 %v939_v13  ;;  %v4227_v13 = vld [vmem:[%s5561_s2 + $0x8] ss:$16 sps:$4 sm:$0xff]  }
 0x113   : > { %v1360_v15 = vpop.permute.xlu0 %1359  ;;  %2012 = vmatprep.subr.bf16.mxu1 %v4273_v14 }
 0x114   : > { %v1362_v16 = vpop.permute.xlu1 %1361 }
 0x115   : > { %v1383_v4 = vsel %vm1381_vm6, %v1360_v15, %v1362_v16  ;;  %1988 = vmatmul.mubr.bf16.vlgmr.msra.gmra.mrb[0].mxu1 %v4218_v41 }
 0x116   : > { %1896 = vmatprep.subr.bf16.mxu0 %v1383_v4  ;;  %1995 = vmatprep.mubr.bf16.mxu1 %v4221_v42 }
 0x117   : > { %v1358_v18 = vpop.permute.xlu0 %1357 }
 0x118   : > { %v1382_v19 = vsel %vm1381_vm6, %v1358_v18, %v1360_v15  ;;  %v1260_v6 = vpop.permute.xlu1 %1259 }
 0x119   : > { %v1275_v5 = vsel %vm1269_vm4, %v1258_v50, %v1260_v6  ;;  %1897 = vmatpush1.bf16.msra.mxu0 %v1382_v19  ;;  %v4232_v6 = vld [vmem:[%s5561_s2 + $0x28] ss:$16 sps:$4 sm:$0xff]  }
 0x11a   : > { %2013 = vmatpush1.bf16.msra.mxu1 %v1275_v5 }
 0x11b   : > { %v1368_v36 = vpop.permute.xlu0 %1367  ;;  %2014 = vmatprep.subr.bf16.mxu1 %v4273_v14 }
 0x11c   : > { %v1370_v20 = vpop.permute.xlu1 %1369 }
 0x11d   : > { %v1386_v22 = vsel %vm1381_vm6, %v1368_v36, %v1370_v20  ;;  %1996 = vmatmul.mubr.bf16.gmra.mrb[4].mxu1 %v4223_v52 }
 0x11e   : > { %1898 = vmatprep.subr.bf16.mxu0 %v1386_v22  ;;  %2003 = vmatprep.mubr.bf16.mxu1 %v4224_v54 }
 0x11f   : > { %v1366_v23 = vpop.permute.xlu0 %1365 }
 0x120   : > { %v1385_v7 = vsel %vm1381_vm6, %v1366_v23, %v1368_v36  ;;  %v1268_v24 = vpop.permute.xlu1 %1267  ;;  %v4233_v36 = vld [vmem:[%s5561_s2 + $0x4c] ss:$16 sps:$4 sm:$0xff]  }
 0x121   : > { %v1278_v25 = vsel %vm1269_vm4, %v1266_v60, %v1268_v24  ;;  %1899 = vmatpush1.bf16.msra.mxu0 %v1385_v7  ;;  %vm5573_vm4 = vcmask 1047560  }
 0x122   : > { %2015 = vmatpush1.bf16.msra.mxu1 %v1278_v25 }
 0x123   : > { %v1376_v9 = vpop.permute.xlu0 %1375  ;;  %2016 = vmatprep.subr.bf16.mxu1 %v4273_v14 }
 0x124   : > { %v1378_v8 = vpop.permute.xlu1 %1377 }
 0x125   : > { %v1389_v27 = vsel %vm1381_vm6, %v1376_v9, %v1378_v8  ;;  %2004 = vmatmul.mubr.bf16.gmra.mrb[8].mxu1 %v4226_v61 }
 0x126   : > { %1900 = vmatprep.subr.bf16.mxu0 %v1389_v27  ;;  %3983 = vmatprep.mubr.msk.bf16.mxu1 %vm1819_vm5, %v4229_v0 }
 0x127   : > { %v1374_v11 = vpop.permute.xlu0 %1373 }
 0x128   : > { %v1388_v28 = vsel %vm1381_vm6, %v1374_v11, %v1376_v9  ;;  %v1364_v29 = vpop.permute.xlu1 %1363 }
 0x129   : > { %v1384_v30 = vsel %vm1381_vm6, %v1362_v16, %v1364_v29  ;;  %1901 = vmatpush1.bf16.msra.mxu0 %v1388_v28  ;;  %v4230_v16 = vld [vmem:[%s5561_s2 + $0x2c] ss:$16 sps:$4 sm:$0xff]  }
 0x12a   : > { %2017 = vmatpush1.bf16.msra.mxu1 %v1384_v30 }
 0x12b   : > { %v1472_v12 = vpop.permute.xlu0 %1471  ;;  %2018 = vmatprep.subr.bf16.mxu1 %v4273_v14 }
 0x12c   : > { %v1474_v32 = vpop.permute.xlu1 %1473 }
 0x12d   : > { %v1495_v33 = vsel %vm1493_vm7, %v1472_v12, %v1474_v32 }
 0x12e   : > { %1902 = vmatprep.subr.bf16.mxu0 %v1495_v33 }
 0x12f   : > { %v1470_v17 = vpop.permute.xlu0 %1469 }
 0x130   : > { %v1494_v10 = vsel %vm1493_vm7, %v1470_v17, %v1472_v12  ;;  %v1372_v34 = vpop.permute.xlu1 %1371 }
 0x131   : > { %v1387_v35 = vsel %vm1381_vm6, %v1370_v20, %v1372_v34  ;;  %1903 = vmatpush1.bf16.msra.mxu0 %v1494_v10  ;;  %v4235_v20 = vld [vmem:[%s5561_s2 + $0x48] ss:$16 sps:$4 sm:$0xff]  }
 0x132   : > { %2019 = vmatpush1.bf16.msra.mxu1 %v1387_v35  ;;  %v637_v35 = vlaneseq }
 0x133   : > { %v1480_v37 = vpop.permute.xlu0 %1479  ;;  %2020 = vmatprep.subr.bf16.mxu1 %v4273_v14 }
 0x134   : > { %v1482_v38 = vpop.permute.xlu1 %1481 }
 0x135   : > { %v1498_v21 = vsel %vm1493_vm7, %v1480_v37, %v1482_v38 }
 0x136   : > { %1904 = vmatprep.subr.bf16.mxu0 %v1498_v21 }
 0x137   : > { %v1478_v39 = vpop.permute.xlu0 %1477 }
 0x138   : > { %v1497_v40 = vsel %vm1493_vm7, %v1478_v39, %v1480_v37  ;;  %v1380_v41 = vpop.permute.xlu1 %1379  ;;  %v638_v37 = vand.u32 127, %v637_v35 }
 0x139   : > { %v1390_v42 = vsel %vm1381_vm6, %v1378_v8, %v1380_v41  ;;  %1905 = vmatpush1.bf16.msra.mxu0 %v1497_v40  ;;  %vm5575_vm6 = vcmask 195584  }
 0x13a   : > { %2021 = vmatpush1.bf16.msra.mxu1 %v1390_v42  ;;  %v641_v21 = vcvt.s32.f32 %v638_v37  ;;  %v640_v41 = vadd.s32 256, %v638_v37 }
 0x13b   : > { %v1488_v43 = vpop.permute.xlu0 %1487  ;;  %2022 = vmatprep.subr.bf16.mxu1 %v4273_v14 }
 0x13c   : > { %v1490_v44 = vpop.permute.xlu1 %1489  ;;  %v644_v40 = vadd.f32 0.5, %v641_v21 }
 0x13d   : > { %v1501_v45 = vsel %vm1493_vm7, %v1488_v43, %v1490_v44 }
 0x13e   : > { %1906 = vmatprep.subr.bf16.mxu0 %v1501_v45 }
 0x13f   : > { %v1486_v46 = vpop.permute.xlu0 %1485 }
 0x140   : > { %v1500_v47 = vsel %vm1493_vm7, %v1486_v46, %v1488_v43  ;;  %v1476_v48 = vpop.permute.xlu1 %1475  ;;  %v647_v43 = vmul.f32 0.041666668, %v644_v40 }
 0x141   : > { %v1496_v49 = vsel %vm1493_vm7, %v1474_v32, %v1476_v48  ;;  %1907 = vmatpush1.bf16.msra.mxu0 %v1500_v47 }
 0x142   : > { %2023 = vmatpush1.bf16.msra.mxu1 %v1496_v49  ;;  %v650_v46 = vfloor.f32 %v647_v43 }
 0x143   : > { %v1584_v50 = vpop.permute.xlu0 %1583  ;;  %2024 = vmatprep.subr.bf16.mxu1 %v4273_v14 }
 0x144   : > { %v1586_v51 = vpop.permute.xlu1 %1585  ;;  %v653_v49 = vmul.f32 24.0, %v650_v46 }
 0x145   : > { %v1607_v52 = vsel %vm1605_vm8, %v1584_v50, %v1586_v51 }
 0x146   : > { %1908 = vmatprep.subr.bf16.mxu0 %v1607_v52  ;;  %v656_v52 = vsub.f32 %v641_v21, %v653_v49 }
 0x147   : > { %v1582_v53 = vpop.permute.xlu0 %1581 }
 0x148   : > { %v1606_v54 = vsel %vm1605_vm8, %v1582_v53, %v1584_v50  ;;  %v1484_v26 = vpop.permute.xlu1 %1483  ;;  %vm659_vm9 = vcmp.lt.f32.partialorder %v656_v52, 16.0 }
 0x149   : > { %v1499_v55 = vsel %vm1493_vm7, %v1482_v38, %v1484_v26  ;;  %1909 = vmatpush1.bf16.msra.mxu0 %v1606_v54  ;;  %v639_v38 = vadd.s32 128, %v638_v37 }
 0x14a   : > { %2025 = vmatpush1.bf16.msra.mxu1 %v1499_v55 }
 0x14b   : > { %v1592_v56 = vpop.permute.xlu0 %1591  ;;  %2026 = vmatprep.subr.bf16.mxu1 %v4273_v14  ;;  %v642_v39 = vcvt.s32.f32 %v639_v38 }
 0x14c   : > { %v1594_v57 = vpop.permute.xlu1 %1593 }
 0x14d   : > { %v1610_v58 = vsel %vm1605_vm8, %v1592_v56, %v1594_v57  ;;  %v645_v42 = vadd.f32 0.5, %v642_v39 }
 0x14e   : > { %1910 = vmatprep.subr.bf16.mxu0 %v1610_v58 }
 0x14f   : > { %v1590_v59 = vpop.permute.xlu0 %1589  ;;  %v648_v45 = vmul.f32 0.041666668, %v645_v42 }
 0x150   : > { %v1609_v60 = vsel %vm1605_vm8, %v1590_v59, %v1592_v56  ;;  %v1492_v61 = vpop.permute.xlu1 %1491 }
 0x151   : > { %v1502_v62 = vsel %vm1493_vm7, %v1490_v44, %v1492_v61  ;;  %1911 = vmatpush1.bf16.msra.mxu0 %v1609_v60  ;;  %v643_v44 = vcvt.s32.f32 %v640_v41  ;;  %v651_v48 = vfloor.f32 %v648_v45  ;;  %vm2243_vm7 = vcmask 187392  }
 0x152   : > { %2027 = vmatpush1.bf16.msra.mxu1 %v1502_v62 }
 0x153   : > { %v1600_v63 = vpop.permute.xlu0 %1599  ;;  %2028 = vmatprep.subr.bf16.mxu1 %v4273_v14  ;;  %v646_v47 = vadd.f32 0.5, %v643_v44 }
 0x154   : > { %v1602_v0 = vpop.permute.xlu1 %1601 }
 0x155   : > { %v1613_v1 = vsel %vm1605_vm8, %v1600_v63, %v1602_v0  ;;  %v649_v50 = vmul.f32 0.041666668, %v646_v47 }
 0x156   : > { %1912 = vmatprep.subr.bf16.mxu0 %v1613_v1  ;;  %v4277_v1 = vmov 0.0  }
 0x157   : > { %v1598_v3 = vpop.permute.xlu0 %1597  ;;  %v652_v53 = vfloor.f32 %v649_v50 }
 0x158   : > { %v1612_v31 = vsel %vm1605_vm8, %v1598_v3, %v1600_v63  ;;  %v1588_v2 = vpop.permute.xlu1 %1587  ;;  %v4779_v3 = vsel %vm659_vm9, 1.0, %v4277_v1  ;;  %vm2876_vm9 = vcmask 1043648  }
 0x159   : > { %v1608_v15 = vsel %vm1605_vm8, %v1586_v51, %v1588_v2  ;;  %1913 = vmatpush1.bf16.msra.mxu0 %v1612_v31  ;;  %v654_v51 = vmul.f32 24.0, %v651_v48  ;;  %v655_v58 = vmul.f32 24.0, %v652_v53 }
 0x15a   : > { %2029 = vmatpush1.bf16.msra.mxu1 %v1608_v15 }
 0x15b   : > { %v1596_v4 = vpop.permute.xlu0 %1595  ;;  %2030 = vmatprep.subr.bf16.mxu1 %v4273_v14  ;;  %v657_v54 = vsub.f32 %v642_v39, %v654_v51 }
 0x15c   : > { %v1611_v18 = vsel %vm1605_vm8, %v1594_v57, %v1596_v4  ;;  %1925 = vmatmul.mubr.bf16.vlgmr.msra.gmra.mrb[0].mxu0 %v4227_v13  ;;  %v1604_v19 = vpop.permute.xlu1 %1603 }
 0x15d   : > { %3981 = vmatprep.mubr.msk.bf16.mxu0 %vm1819_vm5, %v4230_v16  ;;  %v1614_v5 = vsel %vm1605_vm8, %v1602_v0, %v1604_v19  ;;  %vm660_vm10 = vcmp.lt.f32.partialorder %v657_v54, 16.0  ;;  %vm5574_vm8 = vcmask 7168  }
 0x15e   : > { %2031 = vmatpush1.bf16.msra.mxu1 %v1611_v18 }
 0x15f   : > { %2032 = vmatprep.subr.bf16.mxu1 %v4273_v14 }
 0x162   : > { %2033 = vmatpush1.bf16.msra.mxu1 %v1614_v5 }
 0x164   : > { %1935 = vmatmul.mubr.bf16.gmra.mrb[4].mxu0 %v4232_v6 }
 0x165   : > { %2045 = vmatmul.mubr.bf16.vlgmr.msra.gmra.mrb[12].mxu1 %v4227_v13  ;;  %3982 = vmatprep.mubr.msk.bf16.mxu0 %vm1819_vm5, %v4233_v36  ;;  %v4782_v13 = vsel %vm660_vm10, 1.0, %v4277_v1  ;;  %vm2857_vm10 = vcmask 1043656  }
 0x166   : > { %3984 = vmatprep.mubr.msk.bf16.mxu1 %vm1819_vm5, %v4230_v16  ;;  %v658_v16 = vsub.f32 %v643_v44, %v655_v58 }
 0x168   : > { %vm661_vm11 = vcmp.lt.f32.partialorder %v658_v16, 16.0 }
 0x169   : > { %v4796_v44 = vsel %vm661_vm11, 1.0, %v4277_v1 }
 0x16c   : > { %1945 = vmatmul.mubr.bf16.gmra.mrb[8].mxu0 %v4235_v20  ;;  %v1735_v26 = vpop.permute.xlu0 %1734 }
 0x16d   : > { %2053 = vmatmul.mubr.bf16.gmra.mrb[16].mxu1 %v4232_v6  ;;  %v1740_v59 = vpop.permute.xlu1 %1739 }
 0x16e   : > { %3985 = vmatprep.mubr.msk.bf16.mxu1 %vm1819_vm5, %v4233_v36 }
 0x170   : > { %v1750_v18 = vpop.permute.xlu0 %1749 }
 0x171   : > { %v1745_v5 = vpop.permute.xlu1 %1744 }
 0x174   : > { %v1760_v49 = vpop.permute.xlu0 %1759 }
 0x175   : > { %2061 = vmatmul.mubr.bf16.gmra.mrb[20].mxu1 %v4235_v20  ;;  %v1755_v51 = vpop.permute.xlu1 %1754 }
 0x1e8   : > { %v4039_v22 = vpop.f32.mrb[0].mxu1 }
 0x1e9   : > { %v4040_v23 = vpop.f32.mrb[1].mxu1 }
 0x1ea   : > { %v4765_v7 = vadd.f32 %v4040_v23, %v4039_v22  ;;  %v4042_v24 = vpop.f32.mrb[2].mxu1 }
 0x1eb   : > { %v4043_v25 = vpop.f32.mrb[3].mxu1 }
 0x1ec   : > { %v4767_v9 = vadd.f32 %v4043_v25, %v4042_v24  ;;  %v1990_v22 = vadd.f32 %v4765_v7, %v1735_v26 }
 0x1f0   : > { %v4045_v8 = vpop.f32.mrb[4].mxu1 }
 0x1f1   : > { %v4046_v27 = vpop.f32.mrb[5].mxu1 }
 0x1f2   : > { %v4769_v11 = vadd.f32 %v4046_v27, %v4045_v8  ;;  %v4048_v28 = vpop.f32.mrb[6].mxu1 }
 0x1f3   : > { %v4049_v29 = vpop.f32.mrb[7].mxu1 }
 0x1f4   : > { %v4771_v30 = vadd.f32 %v4049_v29, %v4048_v28 }
 0x1f8   : > { %v4051_v12 = vpop.f32.mrb[8].mxu1 }
 0x1f9   : > { %v4052_v32 = vpop.f32.mrb[9].mxu1 }
 0x1fa   : > { %v4773_v33 = vadd.f32 %v4052_v32, %v4051_v12  ;;  %v4054_v17 = vpop.f32.mrb[10].mxu1 }
 0x1fb   : > { %v4055_v10 = vpop.f32.mrb[11].mxu1 }
 0x1fc   : > { %v4775_v34 = vadd.f32 %v4055_v10, %v4054_v17  ;;  %v1993_v17 = vadd.f32 %v4767_v9, %v1740_v59 }
 0x22f   : > { %v1926_v55 = vpop.f32.mrb[0].mxu0 }
 0x230   : > { %v4133_v56 = vadd.f32 %v1926_v55, %v1735_v26  ;;  %v1928_v57 = vpop.f32.mrb[1].mxu0  ;;  %v1998_v55 = vadd.f32 %v4769_v11, %v1745_v5 }
 0x231   : > { %v4134_v60 = vadd.f32 %v1928_v57, %v1735_v26  ;;  %v1930_v61 = vpop.f32.mrb[2].mxu0 }
 0x232   : > { %v2069_v62 = vmax.f32 %v4133_v56, 0.0  ;;  %v4135_v63 = vadd.f32 %v1930_v61, %v1740_v59  ;;  %v1932_v0 = vpop.f32.mrb[3].mxu0 }
 0x233   : > { %v2070_v31 = vmax.f32 %v4134_v60, 0.0  ;;  %v4136_v2 = vadd.f32 %v1932_v0, %v1740_v59  ;;  %v2001_v60 = vadd.f32 %v4771_v30, %v1750_v18 }
 0x234   : > { %v2072_v15 = vmax.f32 %v4135_v63, 0.0  ;;  %v2087_v19 = vmul.f32 %v4779_v3, %v2069_v62 }
 0x235   : > { %v2073_v4 = vmax.f32 %v4136_v2, 0.0  ;;  %v2088_v36 = vmul.f32 %v4782_v13, %v2070_v31 }
 0x236   : > { %v2090_v6 = vmul.f32 %v4779_v3, %v2072_v15 }
 0x237   : > { %v2091_v20 = vmul.f32 %v4782_v13, %v2073_v4  ;;  %v1936_v23 = vpop.f32.mrb[4].mxu0 }
 0x238   : > { %v4789_v24 = vpack.c.bf16 %v2090_v6, %v2087_v19  ;;  %v2046_v25 = vpop.f32.mrb[12].mxu1  ;;  %v4137_v8 = vadd.f32 %v1936_v23, %v1745_v5  ;;  %v1938_v27 = vpop.f32.mrb[5].mxu0 }
 0x239   : > { %v4791_v28 = vpack.c.bf16 %v2091_v20, %v2088_v36  ;;  %v2047_v29 = vadd.f32 %v2046_v25, %v1990_v22  ;;  %v2048_v12 = vpop.f32.mrb[13].mxu1  ;;  %v4138_v32 = vadd.f32 %v1938_v27, %v1745_v5  ;;  %v1940_v10 = vpop.f32.mrb[6].mxu0 }
 0x23a   : > { %v2075_v37 = vmax.f32 %v4137_v8, 0.0  ;;  %v2049_v38 = vpop.f32.mrb[14].mxu1  ;;  %v4139_v21 = vadd.f32 %v1940_v10, %v1750_v18  ;;  %v1942_v39 = vpop.f32.mrb[7].mxu0  ;;  %v2006_v8 = vadd.f32 %v4773_v33, %v1755_v51 }
 0x23b   : > { %v2071_v7 = vmax.f32 %v2047_v29, 0.0  ;;  %v2076_v40 = vmax.f32 %v4138_v32, 0.0  ;;  %v2050_v41 = vadd.f32 %v2049_v38, %v1993_v17  ;;  %v2051_v42 = vpop.f32.mrb[15].mxu1  ;;  %v4140_v43 = vadd.f32 %v1942_v39, %v1750_v18 }
 0x23c   : > { %v2093_v45 = vmul.f32 %v4779_v3, %v2075_v37  ;;  %v2078_v46 = vmax.f32 %v4139_v21, 0.0 }
 0x23d   : > { %v2094_v47 = vmul.f32 %v4782_v13, %v2076_v40  ;;  %v2074_v9 = vmax.f32 %v2050_v41, 0.0  ;;  %v2079_v48 = vmax.f32 %v4140_v43, 0.0  ;;  %v2089_v52 = vmul.f32 %v4796_v44, %v2071_v7 }
 0x23e   : > { %v2096_v50 = vmul.f32 %v4779_v3, %v2078_v46  ;;  %v2009_v7 = vadd.f32 %v4775_v34, %v1760_v49  ;;  %v4938_v34 = vld [vmem:[%s5563_s4 + $0x8] sm:$0xff] }
 0x23f   : > { %v2092_v53 = vmul.f32 %v4796_v44, %v2074_v9  ;;  %v2097_v54 = vmul.f32 %v4782_v13, %v2079_v48  ;;  %v1946_v26 = vpop.f32.mrb[8].mxu0  ;;  %v4942_v9 = vcombine.high %v4938_v34, %v4938_v34  ;;  %v4953_v48 = vld [vmem:[%s5563_s4] sm:$0xff] }
 0x240   : > { %v4805_v56 = vpack.c.bf16 %v2096_v50, %v2093_v45  ;;  %v4141_v57 = vadd.f32 %v1946_v26, %v1755_v51  ;;  %v2054_v58 = vpop.f32.mrb[16].mxu1  ;;  %v1948_v59 = vpop.f32.mrb[9].mxu0 }
 0x241   : > { %v4808_v61 = vpack.c.bf16 %v2092_v53, %v2089_v52  ;;  %v4810_v62 = vpack.c.bf16 %v2097_v54, %v2094_v47  ;;  %v2055_v63 = vadd.f32 %v2054_v58, %v1998_v55  ;;  %v4142_v0 = vadd.f32 %v1948_v59, %v1755_v51  ;;  %v2056_v31 = vpop.f32.mrb[17].mxu1  ;;  %v1950_v2 = vpop.f32.mrb[10].mxu0  ;;  %3990 = vmatprep.mubr.msk.bf16.mxu0 %vm1819_vm5, %v4942_v9 }
 0x242   : > { %v2081_v15 = vmax.f32 %v4141_v57, 0.0  ;;  %v4143_v16 = vadd.f32 %v1950_v2, %v1760_v49  ;;  %v2057_v4 = vpop.f32.mrb[18].mxu1  ;;  %v1952_v19 = vpop.f32.mrb[11].mxu0  ;;  %v4957_v51 = vcombine.high %v4953_v48, %v4953_v48 }
 0x243   : > { %2329 = vst [vmem:[#allocation3 + $0x1f8] sm:$0xff] %v4808_v61  ;;  %v2077_v11 = vmax.f32 %v2055_v63, 0.0  ;;  %v2082_v6 = vmax.f32 %v4142_v0, 0.0  ;;  %v2058_v5 = vadd.f32 %v2057_v4, %v2001_v60  ;;  %v4144_v36 = vadd.f32 %v1952_v19, %v1760_v49  ;;  %v2059_v20 = vpop.f32.mrb[19].mxu1  ;;  %2441 = vrot.lane.b32.xlu1 %v4808_v61, %s4270_s30  ;;  %2390 = vrot.lane.b32.xlu0 %v4808_v61, %s4278_s26  ;;  %v2620_v4 = vld [vmem:[%s5564_s5] sm:$0xff] }
 0x244   : > { %v2084_v30 = vmax.f32 %v4143_v16, 0.0  ;;  %v2099_v23 = vmul.f32 %v4779_v3, %v2081_v15  ;;  %2674 = vmatprep.mubr.bf16.mxu1 %v4957_v51 }
 0x245   : > { %v2080_v18 = vmax.f32 %v2058_v5, 0.0  ;;  %v2085_v22 = vmax.f32 %v4144_v36, 0.0  ;;  %v2095_v27 = vmul.f32 %v4796_v44, %v2077_v11  ;;  %v2100_v29 = vmul.f32 %v4782_v13, %v2082_v6 }
 0x246   : > { %v2102_v25 = vmul.f32 %v4779_v3, %v2084_v30 }
 0x247   : > { %v2098_v12 = vmul.f32 %v4796_v44, %v2080_v18  ;;  %v2103_v32 = vmul.f32 %v4782_v13, %v2085_v22  ;;  %v2804_v22 = vld [vmem:[%s4351_s20] sm:$0xff] }
 0x248   : > { %v4824_v17 = vpack.c.bf16 %v2102_v25, %v2099_v23  ;;  %v2062_v10 = vpop.f32.mrb[20].mxu1  ;;  %v2805_v23 = vld [vmem:[%s4351_s20 + $0x8] sm:$0xff]  ;;  %v2806_v25 = vunpack.c.l.bf16 %v2804_v22 }
 0x249   : > { %v4826_v37 = vpack.c.bf16 %v2098_v12, %v2095_v27  ;;  %v4828_v38 = vpack.c.bf16 %v2103_v32, %v2100_v29  ;;  %v2063_v21 = vadd.f32 %v2062_v10, %v2006_v8  ;;  %v2064_v39 = vpop.f32.mrb[21].mxu1  ;;  %v2807_v8 = vunpack.c.h.bf16 %v2804_v22 }
 0x24a   : > { %v2065_v33 = vpop.f32.mrb[22].mxu1  ;;  %v2808_v27 = vunpack.c.l.bf16 %v2805_v23  ;;  %v2809_v10 = vunpack.c.h.bf16 %v2805_v23 }
 0x24b   : > { %v2083_v40 = vmax.f32 %v2063_v21, 0.0  ;;  %v2066_v41 = vadd.f32 %v2065_v33, %v2009_v7  ;;  %v2067_v42 = vpop.f32.mrb[23].mxu1  ;;  %2396 = vrot.lane.b32.xlu1 %v4826_v37, %s4278_s26  ;;  %2346 = vrot.lane.b32.xlu0 %v4826_v37, %s4268_s28  ;;  %v4192_v32 = vpack.i.bf16 %v2807_v8, %v2806_v25 }
 0x24d   : > { %v2086_v43 = vmax.f32 %v2066_v41, 0.0  ;;  %v2101_v45 = vmul.f32 %v4796_v44, %v2083_v40 }
 0x24f   : > { %v2104_v46 = vmul.f32 %v4796_v44, %v2086_v43 }
 0x251   : > { %v4837_v47 = vpack.c.bf16 %v2104_v46, %v2101_v45 }
 0x253   : > { %2352 = vrot.lane.b32.xlu1 %v4837_v47, %s4268_s28  ;;  %2402 = vrot.lane.b32.xlu0 %v4837_v47, %s4278_s26 }
 0x257   : > { %2123 = vrot.lane.b32.xlu1 %v4789_v24, %s4279_s29  ;;  %2225 = vrot.lane.b32.xlu0 %v4789_v24, %s4280_s12 }
 0x25b   : > { %2174 = vrot.lane.b32.xlu1 %v4789_v24, %s4281_s14  ;;  %2437 = vrot.lane.b32.xlu0 %v4789_v24, %s4270_s30 }
 0x25f   : > { %2386 = vrot.lane.b32.xlu1 %v4789_v24, %s4278_s26  ;;  %2125 = vrot.lane.b32.xlu0 %v4791_v28, %s4279_s29 }
 0x263   : > { %2276 = vrot.lane.b32.xlu1 %v4789_v24, %s4282_s15  ;;  %2176 = vrot.lane.b32.xlu0 %v4791_v28, %s4281_s14 }
 0x267   : > { %2388 = vrot.lane.b32.xlu1 %v4791_v28, %s4278_s26  ;;  %2439 = vrot.lane.b32.xlu0 %v4791_v28, %s4270_s30 }
 0x26b   : > { %2227 = vrot.lane.b32.xlu1 %v4791_v28, %s4280_s12  ;;  %2180 = vrot.lane.b32.xlu0 %v4805_v56, %s4281_s14 }
 0x26f   : > { %2129 = vrot.lane.b32.xlu1 %v4805_v56, %s4279_s29  ;;  %2392 = vrot.lane.b32.xlu0 %v4805_v56, %s4278_s26 }
 0x273   : > { %2342 = vrot.lane.b32.xlu1 %v4805_v56, %s4268_s28  ;;  %2131 = vrot.lane.b32.xlu0 %v4810_v62, %s4279_s29 }
 0x277   : > { %2231 = vrot.lane.b32.xlu1 %v4805_v56, %s4280_s12  ;;  %2394 = vrot.lane.b32.xlu0 %v4810_v62, %s4278_s26 }
 0x27b   : > { %2344 = vrot.lane.b32.xlu1 %v4810_v62, %s4268_s28  ;;  %2233 = vrot.lane.b32.xlu0 %v4810_v62, %s4280_s12 }
 0x27f   : > { %2182 = vrot.lane.b32.xlu1 %v4810_v62, %s4281_s14  ;;  %2348 = vrot.lane.b32.xlu0 %v4824_v17, %s4268_s28 }
 0x283   : > { %2135 = vrot.lane.b32.xlu1 %v4824_v17, %s4279_s29  ;;  %2237 = vrot.lane.b32.xlu0 %v4824_v17, %s4280_s12 }
 0x287   : > { %2186 = vrot.lane.b32.xlu1 %v4824_v17, %s4281_s14  ;;  %2137 = vrot.lane.b32.xlu0 %v4828_v38, %s4279_s29 }
 0x28b   : > { %2398 = vrot.lane.b32.xlu1 %v4824_v17, %s4278_s26  ;;  %2278 = vrot.lane.b32.xlu0 %v4791_v28, %s4282_s15 }
 0x28f   : > { %2445 = vrot.lane.b32.xlu1 %v4810_v62, %s4270_s30  ;;  %2350 = vrot.lane.b32.xlu0 %v4828_v38, %s4268_s28 }
 0x293   : > { %2443 = vrot.lane.b32.xlu1 %v4805_v56, %s4270_s30  ;;  %2188 = vrot.lane.b32.xlu0 %v4828_v38, %s4281_s14 }
 0x297   : > { %2284 = vrot.lane.b32.xlu1 %v4810_v62, %s4282_s15  ;;  %2447 = vrot.lane.b32.xlu0 %v4826_v37, %s4270_s30 }
 0x29b   : > { %2453 = vrot.lane.b32.xlu1 %v4837_v47, %s4270_s30  ;;  %2282 = vrot.lane.b32.xlu0 %v4805_v56, %s4282_s15 }
 0x29f   : > { %2400 = vrot.lane.b32.xlu1 %v4828_v38, %s4278_s26  ;;  %2449 = vrot.lane.b32.xlu0 %v4824_v17, %s4270_s30 }
 0x2a3   : > { %2239 = vrot.lane.b32.xlu1 %v4828_v38, %s4280_s12  ;;  %2491 = vrot.lane.b32.xlu0 %v4808_v61, %s4271_s11 }
 0x2a7   : > { %2288 = vrot.lane.b32.xlu1 %v4824_v17, %s4282_s15  ;;  %2451 = vrot.lane.b32.xlu0 %v4828_v38, %s4270_s30 }
 0x2ab   : > { %2489 = vrot.lane.b32.xlu1 %v4791_v28, %s4271_s11  ;;  %2290 = vrot.lane.b32.xlu0 %v4828_v38, %s4282_s15 }
 0x2af   : > { %2487 = vrot.lane.b32.xlu1 %v4789_v24, %s4271_s11  ;;  %2495 = vrot.lane.b32.xlu0 %v4810_v62, %s4271_s11 }
 0x2b3   : > { %2497 = vrot.lane.b32.xlu1 %v4826_v37, %s4271_s11  ;;  %2493 = vrot.lane.b32.xlu0 %v4805_v56, %s4271_s11 }
 0x2b5   : > { %v2442_v49 = vpop.permute.xlu1 %2441  ;;  %v2391_v50 = vpop.permute.xlu0 %2390 }
 0x2b6   : > { %2478 = vst.msk [vmem:[#allocation3 + $0x360] sm:$0xff] %vm1045_vm2, %v2442_v49 }
 0x2b7   : > { %2428 = vst.msk [vmem:[#allocation3 + $0x2e8] sm:$0xff] %vm2404_vm12, %v2391_v50  ;;  %2501 = vrot.lane.b32.xlu1 %v4828_v38, %s4271_s11  ;;  %2503 = vrot.lane.b32.xlu0 %v4837_v47, %s4271_s11 }
 0x2bb   : > { %2499 = vrot.lane.b32.xlu1 %v4824_v17, %s4271_s11  ;;  %2338 = vrot.lane.b32.xlu0 %v4791_v28, %s4268_s28 }
 0x2bd   : > { %v4970_v52 = vpop.permute.xlu1 %2396  ;;  %v4972_v53 = vpop.permute.xlu0 %2346 }
 0x2be   : > { %2432 = vst.msk [vmem:[#allocation3 + $0x310] sm:$0xff] %vm2404_vm12, %v4970_v52 }
 0x2bf   : > { %2381 = vst.msk [vmem:[#allocation3 + $0x298] sm:$0xff] %vm821_vm0, %v4972_v53  ;;  %2340 = vrot.lane.b32.xlu1 %v4808_v61, %s4268_s28  ;;  %2336 = vrot.lane.b32.xlu0 %v4789_v24, %s4268_s28 }
 0x2c3   : > { %2241 = vrot.lane.b32.xlu1 %v4837_v47, %s4280_s12  ;;  %2127 = vrot.lane.b32.xlu0 %v4808_v61, %s4279_s29 }
 0x2c5   : > { %v4986_v54 = vpop.permute.xlu1 %2352  ;;  %v4988_v26 = vpop.permute.xlu0 %2402 }
 0x2c6   : > { %2385 = vst.msk [vmem:[#allocation3 + $0x2c0] sm:$0xff] %vm821_vm0, %v4986_v54 }
 0x2c7   : > { %2436 = vst.msk [vmem:[#allocation3 + $0x338] sm:$0xff] %vm2404_vm12, %v4988_v26  ;;  %2280 = vrot.lane.b32.xlu1 %v4808_v61, %s4282_s15  ;;  %2133 = vrot.lane.b32.xlu0 %v4826_v37, %s4279_s29 }
 0x2c9   : > { %v2124_v55 = vpop.permute.xlu1 %2123  ;;  %v2226_v57 = vpop.permute.xlu0 %2225 }
 0x2ca   : > { %2161 = vst.msk [vmem:[#allocation3 + $0x8] sm:$0xff] %vm5572_vm13, %v2124_v55 }
 0x2cb   : > { %2263 = vst.msk [vmem:[#allocation3 + $0xf8] sm:$0xff] %vm5570_vm14, %v2226_v57  ;;  %2286 = vrot.lane.b32.xlu1 %v4826_v37, %s4282_s15  ;;  %2139 = vrot.lane.b32.xlu0 %v4837_v47, %s4279_s29 }
 0x2cd   : > { %v2175_v58 = vpop.permute.xlu1 %2174  ;;  %v2438_v59 = vpop.permute.xlu0 %2437 }
 0x2ce   : > { %2212 = vst.msk [vmem:[#allocation3 + $0x80] sm:$0xff] %vm5571_vm15, %v2175_v58 }
 0x2cf   : > { %2292 = vrot.lane.b32.xlu1 %v4837_v47, %s4282_s15  ;;  %2178 = vrot.lane.b32.xlu0 %v4808_v61, %s4281_s14 }
 0x2d1   : > { %v2387_v60 = vpop.permute.xlu1 %2386  ;;  %v5009_v63 = vpop.permute.xlu0 %2125  ;;  %v2539_v31 = vld [vmem:[#allocation3 + $0x8] sm:$0xff] }
 0x2d2   : > { %v2142_v0 = vsel %vm2141_vm1, %v2124_v55, %v5009_v63 }
 0x2d3   : > { %2184 = vrot.lane.b32.xlu1 %v4826_v37, %s4281_s14  ;;  %2190 = vrot.lane.b32.xlu0 %v4837_v47, %s4281_s14 }
 0x2d4   : > { %2642 = vmatprep.subr.bf16.mxu1 %v2142_v0 }
 0x2d5   : > { %v5017_v2 = vpop.permute.xlu1 %2276  ;;  %v5019_v15 = vpop.permute.xlu0 %2176  ;;  %2643 = vmatpush1.bf16.msra.mxu1 %v2539_v31  ;;  %v2548_v25 = vld [vmem:[#allocation3 + $0x80] sm:$0xff] }
 0x2d6   : > { %2314 = vst.msk [vmem:[#allocation3 + $0x170] sm:$0xff] %vm5573_vm4, %v5017_v2  ;;  %v5025_v16 = vsel %vm5575_vm6, %v2175_v58, %v5019_v15 }
 0x2d7   : > { %2229 = vrot.lane.b32.xlu1 %v4808_v61, %s4280_s12  ;;  %2235 = vrot.lane.b32.xlu0 %v4826_v37, %s4280_s12 }
 0x2d9   : > { %v2389_v19 = vpop.permute.xlu1 %2388  ;;  %v2440_v11 = vpop.permute.xlu0 %2439 }
 0x2da   : > { %v5035_v6 = vsel %vm2404_vm12, %v2387_v60, %v2389_v19  ;;  %v5038_v5 = vsel %vm2404_vm12, %v2389_v19, %v2391_v50  ;;  %v5041_v36 = vsel %vm1045_vm2, %v2438_v59, %v2440_v11  ;;  %v5044_v61 = vsel %vm1045_vm2, %v2440_v11, %v2442_v49 }
 0x2db   : > { %2623 = vperm.xlu1 %4191, %v2620_v4   ;;  %4193 = vrot.lane.b32.xlu0 %v4192_v32, %s4271_s11 }
 0x2dd   : > { %v5046_v20 = vpop.permute.xlu1 %2227  ;;  %v2181_v30 = vpop.permute.xlu0 %2180 }
 0x2de   : > { %v5050_v18 = vsel %vm2243_vm7, %v2226_v57, %v5046_v20  ;;  %2217 = vst.msk [vmem:[#allocation3 + $0xa8] sm:$0xff] %vm5571_vm15, %v2181_v30 }
 0x2df   : > { %2818 = vrot.lane.b32.xlu1 %v2808_v27, %s4271_s11  ;;  %2820 = vrot.lane.b32.xlu0 %v2809_v10, %s4271_s11 }
 0x2e1   : > { %v2130_v29 = vpop.permute.xlu1 %2129  ;;  %v2393_v12 = vpop.permute.xlu0 %2392 }
 0x2e2   : > { %2166 = vst.msk [vmem:[#allocation3 + $0x30] sm:$0xff] %vm5572_vm13, %v2130_v29 }
 0x2e5   : > { %v2343_v21 = vpop.permute.xlu1 %2342  ;;  %v5058_v39 = vpop.permute.xlu0 %2131  ;;  %v2551_v32 = vld [vmem:[#allocation3 + $0xa8] sm:$0xff] }
 0x2e6   : > { %v2144_v7 = vsel %vm2141_vm1, %v2130_v29, %v5058_v39 }
 0x2e7   : > { %2644 = vmatprep.subr.bf16.mxu1 %v2144_v7 }
 0x2e9   : > { %v2232_v33 = vpop.permute.xlu1 %2231  ;;  %v2395_v40 = vpop.permute.xlu0 %2394  ;;  %v2542_v41 = vld [vmem:[#allocation3 + $0x30] sm:$0xff] }
 0x2ea   : > { %2268 = vst.msk [vmem:[#allocation3 + $0x120] sm:$0xff] %vm5570_vm14, %v2232_v33  ;;  %v2407_v42 = vsel %vm2404_vm12, %v2393_v12, %v2395_v40  ;;  %v2408_v43 = vsel %vm2404_vm12, %v2395_v40, %v4970_v52  ;;  %2645 = vmatpush1.bf16.msra.mxu1 %v2542_v41  ;;  %v2557_v40 = vld [vmem:[#allocation3 + $0xf8] sm:$0xff] }
 0x2ed   : > { %v2345_v45 = vpop.permute.xlu1 %2344  ;;  %v5067_v46 = vpop.permute.xlu0 %2233 }
 0x2ee   : > { %v2356_v49 = vsel %vm821_vm0, %v2343_v21, %v2345_v45  ;;  %v2357_v50 = vsel %vm821_vm0, %v2345_v45, %v4972_v53  ;;  %v2246_v55 = vsel %vm2243_vm7, %v2232_v33, %v5067_v46 }
 0x2ef   : > { %2683 = vmatprep.subr.bf16.mxu0 %v2357_v50 }
 0x2f0   : > { %2684 = vmatpush1.bf16.msra.mxu0 %v2356_v49 }
 0x2f1   : > { %v5074_v57 = vpop.permute.xlu1 %2182  ;;  %v2349_v58 = vpop.permute.xlu0 %2348  ;;  %v2560_v45 = vld [vmem:[#allocation3 + $0x120] sm:$0xff] }
 0x2f2   : > { %v2195_v52 = vsel %vm5575_vm6, %v2181_v30, %v5074_v57 }
 0x2f5   : > { %v2136_v59 = vpop.permute.xlu1 %2135  ;;  %v2238_v60 = vpop.permute.xlu0 %2237 }
 0x2f6   : > { %2170 = vst.msk [vmem:[#allocation3 + $0x58] sm:$0xff] %vm5572_vm13, %v2136_v59  ;;  %vm2893_vm13 = vcmask 1043640  }
 0x2f7   : > { %2272 = vst.msk [vmem:[#allocation3 + $0x148] sm:$0xff] %vm5570_vm14, %v2238_v60 }
 0x2f9   : > { %v2187_v0 = vpop.permute.xlu1 %2186  ;;  %v5080_v31 = vpop.permute.xlu0 %2137 }
 0x2fa   : > { %2221 = vst.msk [vmem:[#allocation3 + $0xd0] sm:$0xff] %vm5571_vm15, %v2187_v0  ;;  %v2146_v53 = vsel %vm2141_vm1, %v2136_v59, %v5080_v31  ;;  %vm2910_vm15 = vcmask 1043464  }
 0x2fb   : > { %2646 = vmatprep.subr.bf16.mxu1 %v2146_v53 }
 0x2fd   : > { %v2399_v4 = vpop.permute.xlu1 %2398  ;;  %v5085_v19 = vpop.permute.xlu0 %2278  ;;  %v2545_v11 = vld [vmem:[#allocation3 + $0x58] sm:$0xff] }
 0x2fe   : > { %v2295_v30 = vsel %vm5574_vm8, %v5017_v2, %v5085_v19  ;;  %2647 = vmatpush1.bf16.msra.mxu1 %v2545_v11 }
 0x2ff   : > { %2648 = vmatprep.subr.bf16.mxu1 %v5025_v16 }
 0x301   : > { %v2446_v22 = vpop.permute.xlu1 %2445  ;;  %v2351_v23 = vpop.permute.xlu0 %2350  ;;  %v2554_v21 = vld [vmem:[#allocation3 + $0xd0] sm:$0xff] }
 0x302   : > { %v2358_v8 = vsel %vm821_vm0, %v2349_v58, %v2351_v23  ;;  %v2359_v27 = vsel %vm821_vm0, %v2351_v23, %v4986_v54  ;;  %2649 = vmatpush1.bf16.msra.mxu1 %v2548_v25 }
 0x303   : > { %2650 = vmatprep.subr.bf16.mxu1 %v2195_v52  ;;  %2685 = vmatprep.subr.bf16.mxu0 %v2359_v27 }
 0x304   : > { %2686 = vmatpush1.bf16.msra.mxu0 %v2358_v8 }
 0x305   : > { %v2444_v29 = vpop.permute.xlu1 %2443  ;;  %v5094_v12 = vpop.permute.xlu0 %2188  ;;  %2687 = vmatprep.subr.bf16.mxu0 %v5038_v5 }
 0x306   : > { %v2457_v2 = vsel %vm1045_vm2, %v2444_v29, %v2446_v22  ;;  %v2197_v16 = vsel %vm5575_vm6, %v2187_v0, %v5094_v12  ;;  %2651 = vmatpush1.bf16.msra.mxu1 %v2551_v32  ;;  %v2566_v0 = vld [vmem:[#allocation3 + $0x170] sm:$0xff] }
 0x307   : > { %2652 = vmatprep.subr.bf16.mxu1 %v2197_v16 }
 0x308   : > { %2688 = vmatpush1.bf16.msra.mxu0 %v5035_v6 }
 0x309   : > { %v5101_v54 = vpop.permute.xlu1 %2284  ;;  %v2448_v10 = vpop.permute.xlu0 %2447  ;;  %2689 = vmatprep.subr.bf16.mxu0 %v2408_v43 }
 0x30a   : > { %v2458_v7 = vsel %vm1045_vm2, %v2446_v22, %v2448_v10  ;;  %2482 = vst.msk [vmem:[#allocation3 + $0x388] sm:$0xff] %vm1045_vm2, %v2448_v10  ;;  %2653 = vmatpush1.bf16.msra.mxu1 %v2554_v21 }
 0x30b   : > { %2654 = vmatprep.subr.bf16.mxu1 %v5050_v18 }
 0x30c   : > { %2690 = vmatpush1.bf16.msra.mxu0 %v2407_v42 }
 0x30d   : > { %v2454_v5 = vpop.permute.xlu1 %2453  ;;  %v2283_v33 = vpop.permute.xlu0 %2282 }
 0x30e   : > { %2486 = vst.msk [vmem:[#allocation3 + $0x3b0] sm:$0xff] %vm1045_vm2, %v2454_v5  ;;  %v2297_v6 = vsel %vm5574_vm8, %v2283_v33, %v5101_v54  ;;  %2655 = vmatpush1.bf16.msra.mxu1 %v2557_v40 }
 0x30f   : > { %2319 = vst.msk [vmem:[#allocation3 + $0x198] sm:$0xff] %vm5573_vm4, %v2283_v33  ;;  %2656 = vmatprep.subr.bf16.mxu1 %v2246_v55  ;;  %v2563_v55 = vld [vmem:[#allocation3 + $0x148] sm:$0xff] }
 0x311   : > { %v2401_v41 = vpop.permute.xlu1 %2400  ;;  %v2450_v43 = vpop.permute.xlu0 %2449 }
 0x312   : > { %v2409_v49 = vsel %vm2404_vm12, %v2399_v4, %v2401_v41  ;;  %v2410_v18 = vsel %vm2404_vm12, %v2401_v41, %v4988_v26  ;;  %2657 = vmatpush1.bf16.msra.mxu1 %v2560_v45 }
 0x313   : > { %2691 = vmatprep.subr.bf16.mxu0 %v2410_v18 }
 0x314   : > { %2692 = vmatpush1.bf16.msra.mxu0 %v2409_v49 }
 0x315   : > { %v5113_v42 = vpop.permute.xlu1 %2239  ;;  %v2492_v50 = vpop.permute.xlu0 %2491  ;;  %2693 = vmatprep.subr.bf16.mxu0 %v5044_v61 }
 0x316   : > { %v2248_v58 = vsel %vm2243_vm7, %v2238_v60, %v5113_v42  ;;  %2528 = vst.msk [vmem:[#allocation3 + $0x3d8] sm:$0xff] %vm1157_vm3, %v2492_v50  ;;  %v2569_v11 = vld [vmem:[#allocation3 + $0x198] sm:$0xff] }
 0x317   : > { %2658 = vmatprep.subr.bf16.mxu1 %v2248_v58  ;;  %v2598_v58 = vld [vmem:[#allocation3 + $0x310] sm:$0xff] }
 0x318   : > { %2659 = vmatpush1.bf16.msra.mxu1 %v2563_v55  ;;  %2694 = vmatpush1.bf16.msra.mxu0 %v5041_v36 }
 0x319   : > { %v2289_v52 = vpop.permute.xlu1 %2288  ;;  %v2452_v26 = vpop.permute.xlu0 %2451  ;;  %2660 = vmatprep.subr.bf16.mxu1 %v2295_v30  ;;  %2695 = vmatprep.subr.bf16.mxu0 %v2458_v7 }
 0x31a   : > { %2323 = vst.msk [vmem:[#allocation3 + $0x1c0] sm:$0xff] %vm5573_vm4, %v2289_v52  ;;  %v2459_v59 = vsel %vm1045_vm2, %v2450_v43, %v2452_v26  ;;  %v2460_v61 = vsel %vm1045_vm2, %v2452_v26, %v2454_v5  ;;  %v2592_v43 = vld [vmem:[#allocation3 + $0x2c0] sm:$0xff]  ;;  %v2601_v26 = vld [vmem:[#allocation3 + $0x338] sm:$0xff]  ;;  %vm2931_vm4 = vcmask 1044472  }
 0x31c   : > { %2661 = vmatpush1.bf16.msra.mxu1 %v2566_v0  ;;  %2696 = vmatpush1.bf16.msra.mxu0 %v2457_v2 }
 0x31d   : > { %v2490_v60 = vpop.permute.xlu1 %2489  ;;  %v5123_v53 = vpop.permute.xlu0 %2290  ;;  %2662 = vmatprep.subr.bf16.mxu1 %v2297_v6  ;;  %2697 = vmatprep.subr.bf16.mxu0 %v2460_v61 }
 0x31e   : > { %v2506_v36 = vsel %vm1157_vm3, %v2490_v60, %v2492_v50  ;;  %v2299_v4 = vsel %vm5574_vm8, %v2289_v52, %v5123_v53 }
 0x320   : > { %2663 = vmatpush1.bf16.msra.mxu1 %v2569_v11  ;;  %2698 = vmatpush1.bf16.msra.mxu0 %v2459_v59  ;;  %v2607_v11 = vld [vmem:[#allocation3 + $0x388] sm:$0xff] }
 0x321   : > { %v2488_v30 = vpop.permute.xlu1 %2487  ;;  %v2496_v22 = vpop.permute.xlu0 %2495  ;;  %2664 = vmatprep.subr.bf16.mxu1 %v2299_v4  ;;  %2699 = vmatprep.subr.bf16.mxu0 %v2506_v36  ;;  %v2572_v25 = vld [vmem:[#allocation3 + $0x1c0] sm:$0xff] }
 0x322   : > { %v2505_v23 = vsel %vm1157_vm3, %v2488_v30, %v2490_v60  ;;  %v2604_v60 = vld [vmem:[#allocation3 + $0x360] sm:$0xff] }
 0x324   : > { %2665 = vmatpush1.bf16.msra.mxu1 %v2572_v25  ;;  %2700 = vmatpush1.bf16.msra.mxu0 %v2505_v23 }
 0x325   : > { %v2498_v8 = vpop.permute.xlu1 %2497  ;;  %v2494_v27 = vpop.permute.xlu0 %2493  ;;  %2666 = vmatprep.subr.bf16.mxu1 %v4791_v28 }
 0x326   : > { %v2508_v29 = vsel %vm1157_vm3, %v2496_v22, %v2498_v8  ;;  %2532 = vst.msk [vmem:[#allocation3 + $0x400] sm:$0xff] %vm1157_vm3, %v2498_v8  ;;  %v2507_v32 = vsel %vm1157_vm3, %v2494_v27, %v2496_v22 }
 0x327   : > { %2701 = vmatprep.subr.bf16.mxu0 %v2508_v29 }
 0x328   : > { %2667 = vmatpush1.bf16.msra.mxu1 %v4789_v24  ;;  %2702 = vmatpush1.bf16.msra.mxu0 %v2507_v32  ;;  %v5142_v24 = vcombine.low %v4938_v34, %v4938_v34  ;;  %v5152_v34 = vcombine.low %v4953_v48, %v4953_v48 }
 0x329   : > { %v2502_v2 = vpop.permute.xlu1 %2501  ;;  %v2504_v16 = vpop.permute.xlu0 %2503  ;;  %2668 = vmatprep.subr.bf16.mxu1 %v4810_v62 }
 0x32a   : > { %v2510_v10 = vsel %vm1157_vm3, %v2502_v2, %v2504_v16  ;;  %2536 = vst.msk [vmem:[#allocation3 + $0x428] sm:$0xff] %vm1157_vm3, %v2504_v16 }
 0x32b   : > { %2703 = vmatprep.subr.bf16.mxu0 %v2510_v10 }
 0x32c   : > { %2669 = vmatpush1.bf16.msra.mxu1 %v4805_v56 }
 0x32d   : > { %v2500_v28 = vpop.permute.xlu1 %2499  ;;  %v2339_v21 = vpop.permute.xlu0 %2338  ;;  %2670 = vmatprep.subr.bf16.mxu1 %v4828_v38  ;;  %v2589_v38 = vld [vmem:[#allocation3 + $0x298] sm:$0xff] }
 0x32e   : > { %v2509_v7 = vsel %vm1157_vm3, %v2500_v28, %v2502_v2 }
 0x32f   : > { %2704 = vmatpush1.bf16.msra.mxu0 %v2509_v7 }
 0x330   : > { %2671 = vmatpush1.bf16.msra.mxu1 %v4824_v17  ;;  %2764 = vmatprep.subr.bf16.mxu0 %v4273_v14 }
 0x331   : > { %v2341_v62 = vpop.permute.xlu1 %2340  ;;  %v2337_v5 = vpop.permute.xlu0 %2336 }
 0x332   : > { %v2355_v33 = vsel %vm821_vm0, %v2339_v21, %v2341_v62  ;;  %2377 = vst.msk [vmem:[#allocation3 + $0x270] sm:$0xff] %vm821_vm0, %v2341_v62  ;;  %v2354_v56 = vsel %vm821_vm0, %v2337_v5, %v2339_v21  ;;  %2716 = vmatmul.mubr.bf16.vlgmr.msra.gmra.mrb[12].mxu0 %v5142_v24 }
 0x333   : > { %2672 = vmatprep.subr.bf16.mxu1 %v2355_v33  ;;  %2765 = vmatpush1.bf16.msra.mxu0 %v2589_v38 }
 0x334   : > { %2673 = vmatpush1.bf16.msra.mxu1 %v2354_v56  ;;  %2766 = vmatprep.subr.bf16.mxu0 %v4273_v14 }
 0x335   : > { %v2242_v17 = vpop.permute.xlu1 %2241  ;;  %v2128_v40 = vpop.permute.xlu0 %2127  ;;  %3991 = vmatprep.mubr.msk.bf16.mxu0 %vm1819_vm5, %v4942_v9  ;;  %vm2858_vm5 = vcmask 1047556  }
 0x336   : > { %v2249_v6 = vsel %vm2243_vm7, %v5113_v42, %v2242_v17  ;;  %v2143_v41 = vsel %vm2141_vm1, %v5009_v63, %v2128_v40  ;;  %v2595_v63 = vld [vmem:[#allocation3 + $0x2e8] sm:$0xff]  ;;  %vm2877_vm11 = vmor %vm2858_vm5, %vm2876_vm9 }
 0x337   : > { %2675 = vmatmul.mubr.bf16.vlgmr.msra.gmra.mrb[24].mxu1 %v5152_v34  ;;  %4057 = vmatprep.subr.bf16.mxu1 %v2249_v6  ;;  %vm2859_vm14 = vmor %vm2858_vm5, %vm2857_vm10 }
 0x338   : > { %2767 = vmatpush1.bf16.msra.mxu0 %v2592_v43  ;;  %4058 = vmatpush3.bf16.msra.mxu1 %v2143_v41  ;;  %vm2911_vm9 = vmor %vm2858_vm5, %vm2910_vm15  ;;  %vm2948_vm15 = vcmask 1044296  }
 0x339   : > { %v2281_v48 = vpop.permute.xlu1 %2280  ;;  %v2134_v45 = vpop.permute.xlu0 %2133  ;;  %2768 = vmatprep.subr.bf16.mxu0 %v4273_v14  ;;  %2756 = vmatprep.mubr.bf16.mxu1 %v4957_v51  ;;  %vm2894_vm10 = vmor %vm2858_vm5, %vm2893_vm13 }
 0x33a   : > { %v2296_v9 = vsel %vm5574_vm8, %v5085_v19, %v2281_v48  ;;  %v2145_v49 = vsel %vm2141_vm1, %v5058_v39, %v2134_v45  ;;  %vm2949_vm13 = vmor %vm2858_vm5, %vm2948_vm15  ;;  %vm2934_vm15 = vcmask 1039364  }
 0x33b   : > { %4059 = vmatprep.subr.bf16.mxu1 %v2296_v9 }
 0x33c   : > { %2769 = vmatpush1.bf16.msra.mxu0 %v2595_v63  ;;  %4060 = vmatpush3.bf16.msra.mxu1 %v2145_v49 }
 0x33d   : > { %v2287_v18 = vpop.permute.xlu1 %2286  ;;  %v2140_v42 = vpop.permute.xlu0 %2139  ;;  %2770 = vmatprep.subr.bf16.mxu0 %v4273_v14 }
 0x33e   : > { %v2298_v50 = vsel %vm5574_vm8, %v5101_v54, %v2287_v18  ;;  %v2147_v51 = vsel %vm2141_vm1, %v5080_v31, %v2140_v42  ;;  %v2577_v54 = vld [vmem:[#allocation3 + $0x1f8] sm:$0xff] }
 0x33f   : > { %4061 = vmatprep.subr.bf16.mxu1 %v2298_v50 }
 0x340   : > { %2771 = vmatpush1.bf16.msra.mxu0 %v2598_v58  ;;  %4062 = vmatpush3.bf16.msra.mxu1 %v2147_v51 }
 0x341   : > { %v2293_v19 = vpop.permute.xlu1 %2292  ;;  %v2179_v39 = vpop.permute.xlu0 %2178  ;;  %2772 = vmatprep.subr.bf16.mxu0 %v4273_v14 }
 0x342   : > { %v2300_v55 = vsel %vm5574_vm8, %v5123_v53, %v2293_v19  ;;  %v2194_v52 = vsel %vm5575_vm6, %v5019_v15, %v2179_v39 }
 0x343   : > { %4063 = vmatprep.subr.bf16.mxu1 %v2300_v55 }
 0x344   : > { %2773 = vmatpush1.bf16.msra.mxu0 %v2601_v26  ;;  %4064 = vmatpush3.bf16.msra.mxu1 %v2194_v52  ;;  %v3010_v52 = vld [vmem:[%s5566_s7] sm:$0xff]  ;;  %v3012_v26 = vld [vmem:[%s5566_s7 + $0x10] sm:$0xff] }
 0x345   : > { %v2185_v31 = vpop.permute.xlu1 %2184  ;;  %v2191_v59 = vpop.permute.xlu0 %2190  ;;  %4065 = vmatprep.subr.bf16.mxu1 %v2577_v54  ;;  %2774 = vmatprep.subr.bf16.mxu0 %v4273_v14  ;;  %v3011_v54 = vld [vmem:[%s5566_s7 + $0x8] sm:$0xff] }
 0x346   : > { %v2196_v61 = vsel %vm5575_vm6, %v5074_v57, %v2185_v31  ;;  %v2198_v0 = vsel %vm5575_vm6, %v5094_v12, %v2191_v59  ;;  %v2610_v57 = vld [vmem:[#allocation3 + $0x3b0] sm:$0xff]  ;;  %v3013_v31 = vld [vmem:[%s5566_s7 + $0x18] sm:$0xff] }
 0x347   : > { %v2586_v12 = vld [vmem:[#allocation3 + $0x270] sm:$0xff] }
 0x348   : > { %2775 = vmatpush1.bf16.msra.mxu0 %v2604_v60  ;;  %4066 = vmatpush3.bf16.msra.mxu1 %v2196_v61 }
 0x349   : > { %v2230_v15 = vpop.permute.xlu1 %2229  ;;  %v2236_v53 = vpop.permute.xlu0 %2235  ;;  %4067 = vmatprep.subr.bf16.mxu1 %v4826_v37  ;;  %2776 = vmatprep.subr.bf16.mxu0 %v4273_v14  ;;  %v2613_v37 = vld [vmem:[#allocation3 + $0x3d8] sm:$0xff] }
 0x34a   : > { %v2245_v36 = vsel %vm2243_vm7, %v5046_v20, %v2230_v15  ;;  %v2247_v4 = vsel %vm2243_vm7, %v5067_v46, %v2236_v53  ;;  %v2616_v20 = vld [vmem:[#allocation3 + $0x400] sm:$0xff] }
 0x34c   : > { %2777 = vmatpush1.bf16.msra.mxu0 %v2607_v11  ;;  %4068 = vmatpush3.bf16.msra.mxu1 %v2198_v0 }
 0x34d   : > { %4069 = vmatprep.subr.bf16.mxu1 %v4837_v47  ;;  %2778 = vmatprep.subr.bf16.mxu0 %v4273_v14  ;;  %v2619_v47 = vld [vmem:[#allocation3 + $0x428] sm:$0xff]  ;;  %v4194_v30 = vpop.permute.xlu0 %4193 }
 0x34e   : > { %v4196_v27 = vunpack.i.h.bf16 %v4194_v30  ;;  %v4195_v29 = vunpack.i.l.bf16 %v4194_v30 }
 0x350   : > { %2779 = vmatpush1.bf16.msra.mxu0 %v2610_v57  ;;  %4070 = vmatpush3.bf16.msra.mxu1 %v2245_v36  ;;  %v2822_v28 = vsel %vm1157_vm3, %v4195_v29, %v4196_v27 }
 0x351   : > { %4071 = vmatprep.subr.bf16.mxu1 %v2586_v12  ;;  %2780 = vmatprep.subr.bf16.mxu0 %v4273_v14  ;;  %v2821_v9 = vpop.permute.xlu0 %2820 }
 0x354   : > { %2781 = vmatpush1.bf16.msra.mxu0 %v2613_v37  ;;  %4072 = vmatpush3.bf16.msra.mxu1 %v2247_v4 }
 0x355   : > { %2782 = vmatprep.subr.bf16.mxu0 %v4273_v14 }
 0x357   : > { %2757 = vmatmul.mubr.bf16.vlgmr.msra.gmra.mrb[28].mxu1 %v5152_v34 }
 0x358   : > { %2783 = vmatpush1.bf16.msra.mxu0 %v2616_v20  ;;  %3164 = vmatprep.mubr.bf16.mxu1 %v4273_v14 }
 0x359   : > { %2784 = vmatprep.subr.bf16.mxu0 %v4273_v14 }
 0x35a   : > { %v2624_v22 = vpop.permute.xlu1 %2623 }
 0x35c   : > { %2785 = vmatpush1.bf16.msra.mxu0 %v2619_v47 }
 0x35e   : > { %v2819_v2 = vpop.permute.xlu1 %2818 }
 0x35f   : > { %2797 = vmatmul.mubr.bf16.vlgmr.msra.gmra.mrb[16].mxu0 %v5142_v24  ;;  %v2823_v24 = vsel %vm1157_vm3, %v4196_v27, %v2819_v2  ;;  %v2824_v50 = vsel %vm1157_vm3, %v2819_v2, %v2821_v9 }
 0x405   : > { %v2717_v46 = vpop.f32.mrb[12].mxu0 }
 0x406   : > { %v2719_v23 = vpop.f32.mrb[13].mxu0 }
 0x407   : > { %v2721_v25 = vpop.f32.mrb[14].mxu0 }
 0x408   : > { %v2722_v8 = vpop.f32.mrb[15].mxu0 }
 0x40a   : > { %v2676_v32 = vpop.f32.mrb[24].mxu1 }
 0x40b   : > { %v2677_v16 = vadd.f32 %v2676_v32, %v2624_v22  ;;  %v2678_v10 = vpop.f32.mrb[25].mxu1 }
 0x40c   : > { %v2679_v21 = vadd.f32 %v2678_v10, %v2624_v22  ;;  %v2680_v7 = vpop.f32.mrb[26].mxu1 }
 0x40d   : > { %v2718_v62 = vadd.f32 %v2717_v46, %v2677_v16  ;;  %v2681_v5 = vpop.f32.mrb[27].mxu1 }
 0x40e   : > { %v2720_v33 = vadd.f32 %v2719_v23, %v2679_v21 }
 0x40f   : > { %v2828_v56 = vadd.f32 %v2822_v28, %v2718_v62 }
 0x410   : > { %v2829_v38 = vadd.f32 %v2823_v24, %v2720_v33 }
 0x411   : > { %v2831_v34 = vmul.f32 %v4779_v3, %v2828_v56 }
 0x412   : > { %v2832_v17 = vmul.f32 %v4782_v13, %v2829_v38 }
 0x414   : > { %v5201_v40 = vpack.c.bf16 %v2832_v17, %v2831_v34 }
 0x416   : > { %2865 = vrot.lane.b32.xlu0 %v5201_v40, %s4281_s14  ;;  %2845 = vrot.lane.b32.xlu1 %v5201_v40, %s4279_s29 }
 0x41a   : > { %2899 = vrot.lane.b32.xlu0 %v5201_v40, %s4282_s15  ;;  %2882 = vrot.lane.b32.xlu1 %v5201_v40, %s4280_s12 }
 0x41e   : > { %2920 = vrot.lane.b32.xlu1 %v5201_v40, %s4268_s28 }
 0x422   : > { %2937 = vrot.lane.b32.xlu1 %v5201_v40, %s4278_s26 }
 0x426   : > { %2954 = vrot.lane.b32.xlu1 %v5201_v40, %s4270_s30 }
 0x42a   : > { %v4073_v6 = vpop.f32.mrb[28].mxu1  ;;  %2971 = vrot.lane.b32.xlu1 %v5201_v40, %s4271_s11 }
 0x42b   : > { %v4074_v41 = vpop.f32.mrb[29].mxu1 }
 0x42c   : > { %v4075_v43 = vadd.f32 %v4074_v41, %v4073_v6  ;;  %v4076_v48 = vpop.f32.mrb[30].mxu1 }
 0x42d   : > { %v4077_v45 = vpop.f32.mrb[31].mxu1 }
 0x42e   : > { %v2759_v49 = vadd.f32 %v4075_v43, %v2624_v22 }
 0x432   : > { %v2798_v63 = vpop.f32.mrb[16].mxu0 }
 0x433   : > { %v2799_v18 = vadd.f32 %v2798_v63, %v2759_v49  ;;  %v2800_v42 = vpop.f32.mrb[17].mxu0 }
 0x434   : > { %v2801_v51 = vpop.f32.mrb[18].mxu0 }
 0x435   : > { %v2830_v58 = vadd.f32 %v2824_v50, %v2799_v18  ;;  %v2802_v19 = vpop.f32.mrb[19].mxu0 }
 0x437   : > { %v2833_v39 = vmul.f32 %v4796_v44, %v2830_v58 }
 0x439   : > { %v4022_v55 = vpack.c.bf16 %v2833_v39, %v2833_v39 }
 0x43b   : > { %2919 = vst [vmem:[#allocation4 + $0x5c] sm:$0xf] %v4022_v55  ;;  %2922 = vrot.lane.b32.xlu0 %v4022_v55, %s4268_s28  ;;  %2847 = vrot.lane.b32.xlu1 %v4022_v55, %s4279_s29 }
 0x43f   : > { %2939 = vrot.lane.b32.xlu0 %v4022_v55, %s4278_s26  ;;  %2884 = vrot.lane.b32.xlu1 %v4022_v55, %s4280_s12 }
 0x443   : > { %2956 = vrot.lane.b32.xlu0 %v4022_v55, %s4270_s30  ;;  %3016 = vperm.xlu1 %4191, %v3010_v52  }
 0x447   : > { %2973 = vrot.lane.b32.xlu0 %v4022_v55, %s4271_s11  ;;  %3026 = vperm.xlu1 %4191, %v3012_v26  }
 0x44b   : > { %2867 = vrot.lane.b32.xlu0 %v4022_v55, %s4281_s14 }
 0x44f   : > { %2901 = vrot.lane.b32.xlu0 %v4022_v55, %s4282_s15 }
 0x453   : > { %3021 = vperm.xlu0 %4190, %v3011_v54  }
 0x457   : > { %3031 = vperm.xlu0 %4190, %v3013_v31  }
 0x488   : > { %v5242_v59 = vpop.permute.xlu0 %2865  ;;  %v5244_v61 = vpop.permute.xlu1 %2845 }
 0x489   : > { %v2869_v0 = vrot.slane %v5242_v59, 4  ;;  %v2849_v60 = vrot.slane %v5244_v61, 4 }
 0x48b   : > { %v2871_v15 = vsel %vm5575_vm6, %v2869_v0, %v5242_v59  ;;  %v2851_v53 = vsel %vm2141_vm1, %v2849_v60, %v5244_v61  ;;  %vm2951_vm6 = vcmask 859140  }
 0x48c   : > { %2878 = vst.msk [vmem:[#allocation4 + $0x18] sm:$0xff] %vm2877_vm11, %v2871_v15  ;;  %v5256_v36 = vpop.permute.xlu0 %2899  ;;  %v5258_v4 = vpop.permute.xlu1 %2882  ;;  %vm2965_vm11 = vcmask 1044288  }
 0x48d   : > { %2860 = vst.msk [vmem:[#allocation4 + $0x4] sm:$0xff] %vm2859_vm14, %v2851_v53  ;;  %v2903_v11 = vrot.slane %v5256_v36, 4  ;;  %v2886_v57 = vrot.slane %v5258_v4, 4  ;;  %vm2932_vm14 = vmor %vm2858_vm5, %vm2931_vm4 }
 0x48e   : > { %vm2966_vm4 = vmor %vm2858_vm5, %vm2965_vm11 }
 0x48f   : > { %v2905_v12 = vsel %vm5574_vm8, %v2903_v11, %v5256_v36  ;;  %v2888_v37 = vsel %vm2243_vm7, %v2886_v57, %v5258_v4 }
 0x490   : > { %2912 = vst.msk [vmem:[#allocation4 + $0x40] sm:$0xff] %vm2911_vm9, %v2905_v12  ;;  %v2921_v20 = vpop.permute.xlu1 %2920  ;;  %vm2982_vm9 = vcmask 1044280  }
 0x491   : > { %2895 = vst.msk [vmem:[#allocation4 + $0x2c] sm:$0xff] %vm2894_vm10, %v2888_v37  ;;  %v2924_v47 = vrot.slane %v2921_v20, 4  ;;  %vm2983_vm10 = vmor %vm2858_vm5, %vm2982_vm9  ;;  %vm2896_vm5 = vcmask 187396  }
 0x493   : > { %v2926_v46 = vsel %vm821_vm0, %v2924_v47, %v2921_v20 }
 0x494   : > { %v4240_v30 = vld [vmem:[#allocation4 + $0x4] ss:$20 sps:$4 sm:$0xff]   ;;  %2933 = vst.msk [vmem:[#allocation4 + $0x64] sm:$0xff] %vm2932_vm14, %v2926_v46  ;;  %v2938_v22 = vpop.permute.xlu1 %2937  ;;  %v4242_v23 = vld [vmem:[#allocation4 + $0x8] ss:$20 sps:$4 sm:$0xff]   ;;  %vm2852_vm14 = vcmask 1043456  }
 0x495   : > { %v2941_v25 = vrot.slane %v2938_v22, 4  ;;  %3132 = vmatprep.subr.bf16.mxu1 %v4242_v23  ;;  %vm2935_vm11 = vmor %vm2934_vm15, %vm2852_vm14 }
 0x496   : > { %3133 = vmatpush1.bf16.msra.mxu1 %v4240_v30  ;;  %vm2897_vm9 = vmor %vm2896_vm5, %vm2852_vm14  ;;  %vm2913_vm5 = vcmask 7172   ;;  %v4255_v30 = vld [vmem:[%s5565_s6 + $0x8] sm:$0xff]  }
 0x497   : > { %v2943_v8 = vsel %vm2404_vm12, %v2941_v25, %v2938_v22 }
 0x498   : > { %v4243_v27 = vld [vmem:[#allocation4 + $0x2c] ss:$20 sps:$4 sm:$0xff]   ;;  %2950 = vst.msk [vmem:[#allocation4 + $0x78] sm:$0xff] %vm2949_vm13, %v2943_v8  ;;  %v2955_v29 = vpop.permute.xlu1 %2954  ;;  %v4245_v32 = vld [vmem:[#allocation4 + $0x30] ss:$20 sps:$4 sm:$0xff]   ;;  %vm2862_vm13 = vcmask 203780  }
 0x499   : > { %v2958_v2 = vrot.slane %v2955_v29, 4  ;;  %3134 = vmatprep.subr.bf16.mxu1 %v4245_v32  ;;  %vm2863_vm8 = vmor %vm2862_vm13, %vm2852_vm14  ;;  %vm2879_vm13 = vcmask 195588  }
 0x49a   : > { %3135 = vmatpush1.bf16.msra.mxu1 %v4243_v27 }
 0x49b   : > { %v2960_v16 = vsel %vm1045_vm2, %v2958_v2, %v2955_v29 }
 0x49c   : > { %2967 = vst.msk [vmem:[#allocation4 + $0x8c] sm:$0xff] %vm2966_vm4, %v2960_v16  ;;  %v2972_v10 = vpop.permute.xlu1 %2971  ;;  %vm2952_vm4 = vmor %vm2951_vm6, %vm2852_vm14  ;;  %vm2985_vm6 = vcmask 842756  }
 0x49d   : > { %v2975_v28 = vrot.slane %v2972_v10, 4  ;;  %vm2986_vm15 = vmor %vm2985_vm6, %vm2852_vm14  ;;  %vm5579_vm6 = vcmask 1047752  }
 0x49f   : > { %v2977_v21 = vsel %vm1157_vm3, %v2975_v28, %v2972_v10 }
 0x4a0   : > { %2984 = vst.msk [vmem:[#allocation4 + $0xa0] sm:$0xff] %vm2983_vm10, %v2977_v21  ;;  %vm2968_vm10 = vcmask 850948  }
 0x4a3   : > { %v4246_v15 = vld [vmem:[#allocation4 + $0x7c] ss:$20 sps:$4 sm:$0xff]  }
 0x4ad   : > { %v2923_v7 = vpop.permute.xlu0 %2922  ;;  %v2848_v62 = vpop.permute.xlu1 %2847 }
 0x4ae   : > { %v2925_v5 = vrot.slane %v2923_v7, 4  ;;  %v2850_v24 = vrot.slane %v2848_v62, 4 }
 0x4b0   : > { %v2927_v33 = vsel %vm2852_vm14, %v2924_v47, %v2925_v5  ;;  %v2853_v56 = vsel %vm2852_vm14, %v2849_v60, %v2850_v24  ;;  %v4251_v47 = vld [vmem:[%s5565_s6] sm:$0xff]  }
 0x4b1   : > { %v2928_v38 = vsel %vm821_vm0, %v2927_v33, %v2923_v7  ;;  %v2854_v34 = vsel %vm2141_vm1, %v2853_v56, %v2848_v62  ;;  %v2940_v17 = vpop.permute.xlu0 %2939  ;;  %v2885_v6 = vpop.permute.xlu1 %2884 }
 0x4b2   : > { %2936 = vst.msk [vmem:[#allocation4 + $0x6c] sm:$0xff] %vm2935_vm11, %v2928_v38  ;;  %v2942_v41 = vrot.slane %v2940_v17, 4  ;;  %v2887_v43 = vrot.slane %v2885_v6, 4  ;;  %vm2880_vm11 = vmor %vm2879_vm13, %vm2852_vm14  ;;  %vm5581_vm13 = vcmask 1047736  }
 0x4b3   : > { %2864 = vst.msk [vmem:[#allocation4 + $0xc] sm:$0xff] %vm2863_vm8, %v2854_v34  ;;  %vm2969_vm8 = vmor %vm2968_vm10, %vm2852_vm14  ;;  %vm5577_vm10 = vcmask 7168  }
 0x4b4   : > { %v2944_v48 = vsel %vm2852_vm14, %v2941_v25, %v2942_v41  ;;  %v2889_v45 = vsel %vm2852_vm14, %v2886_v57, %v2887_v43 }
 0x4b5   : > { %v2945_v9 = vsel %vm2404_vm12, %v2944_v48, %v2940_v17  ;;  %v2890_v49 = vsel %vm2243_vm7, %v2889_v45, %v2885_v6  ;;  %v2957_v63 = vpop.permute.xlu0 %2956 }
 0x4b6   : > { %2953 = vst.msk [vmem:[#allocation4 + $0x80] sm:$0xff] %vm2952_vm4, %v2945_v9  ;;  %v2959_v18 = vrot.slane %v2957_v63, 4  ;;  %vm5576_vm4 = vcmask 195584  }
 0x4b7   : > { %2898 = vst.msk [vmem:[#allocation4 + $0x34] sm:$0xff] %vm2897_vm9, %v2890_v49  ;;  %vm2914_vm9 = vmor %vm2913_vm5, %vm2852_vm14 }
 0x4b8   : > { %v2961_v42 = vsel %vm2852_vm14, %v2958_v2, %v2959_v18  ;;  %vm5583_vm5 = vmmov %vm5577_vm10 }
 0x4b9   : > { %v2962_v50 = vsel %vm1045_vm2, %v2961_v42, %v2957_v63  ;;  %v2974_v51 = vpop.permute.xlu0 %2973  ;;  %v3002_v58 = vld [vmem:[#allocation4 + $0x68] sm:$0xff]  ;;  %v4254_v46 = vld [vmem:[#allocation4 + $0x5c] ss:$20 sps:$4 sm:$0xff]  }
 0x4ba   : > { %2970 = vst.msk [vmem:[#allocation4 + $0x94] sm:$0xff] %vm2969_vm8, %v2962_v50  ;;  %v2976_v19 = vrot.slane %v2974_v51, 4  ;;  %v4002_v39 = vcombine.low %v5201_v40, %v3002_v58  ;;  %v4003_v55 = vcombine.high %v5201_v40, %v3002_v58  ;;  %vm3116_vm8 = vcmask 588800  }
 0x4bc   : > { %v2978_v52 = vsel %vm2852_vm14, %v2975_v28, %v2976_v19  ;;  %3136 = vmatprep.subr.bf16.mxu1 %v4003_v55 }
 0x4bd   : > { %v2979_v26 = vsel %vm1157_vm3, %v2978_v52, %v2974_v51  ;;  %v2868_v54 = vpop.permute.xlu0 %2867  ;;  %3137 = vmatpush1.bf16.msra.mxu1 %v4002_v39 }
 0x4be   : > { %2987 = vst.msk [vmem:[#allocation4 + $0xa8] sm:$0xff] %vm2986_vm15, %v2979_v26  ;;  %v2870_v31 = vrot.slane %v2868_v54, 4  ;;  %vm5580_vm15 = vcmask 1047744  }
 0x4c0   : > { %v2872_v61 = vsel %vm2852_vm14, %v2869_v0, %v2870_v31 }
 0x4c1   : > { %v2873_v40 = vsel %vm5576_vm4, %v2872_v61, %v2868_v54  ;;  %v2902_v60 = vpop.permute.xlu0 %2901  ;;  %v4248_v53 = vld [vmem:[#allocation4 + $0x80] ss:$20 sps:$4 sm:$0xff]   ;;  %v4256_v22 = vld [vmem:[#allocation4 + $0x84] ss:$20 sps:$4 sm:$0xff]  }
 0x4c2   : > { %2881 = vst.msk [vmem:[#allocation4 + $0x20] sm:$0xff] %vm2880_vm11, %v2873_v40  ;;  %v2904_v4 = vrot.slane %v2902_v60, 4  ;;  %3138 = vmatprep.subr.bf16.mxu1 %v4248_v53  ;;  %v3017_v8 = vpop.permute.xlu1 %3016  ;;  %vm5582_vm11 = vmmov %vm5576_vm4 }
 0x4c3   : > { %3139 = vmatpush1.bf16.msra.mxu1 %v4246_v15  ;;  %vm5584_vm4 = vmmov %vm5579_vm6 }
 0x4c4   : > { %v2906_v57 = vsel %vm2852_vm14, %v2903_v11, %v2904_v4 }
 0x4c5   : > { %v2907_v59 = vsel %vm5577_vm10, %v2906_v57, %v2902_v60  ;;  %v3008_v12 = vld [vmem:[#allocation4 + $0xa4] sm:$0xff]  ;;  %v4257_v23 = vld [vmem:[#allocation4 + $0xac] ss:$0 sps:$4 sm:$0xff]   ;;  %vm5586_vm10 = vmmov %vm5580_vm15 }
 0x4c6   : > { %2915 = vst.msk [vmem:[#allocation4 + $0x48] sm:$0xff] %vm2914_vm9, %v2907_v59  ;;  %v4009_v0 = vcombine.high %v3008_v12, %v3008_v12  ;;  %v4008_v37 = vcombine.low %v3008_v12, %v3008_v12  ;;  %v3130_v25 = vsel %vm2852_vm14, %v4257_v23, 0  ;;  %v3027_v34 = vpop.permute.xlu1 %3026  ;;  %vm5585_vm9 = vmmov %vm5582_vm11 }
 0x4c8   : > { %4011 = vmatprep.subr.msk.bf16.mxu1 %vm2852_vm14, %v4009_v0  ;;  %v3124_v20 = vsel %vm2852_vm14, %v4008_v37, 0 }
 0x4c9   : > { %3141 = vmatpush1.bf16.msra.mxu1 %v3124_v20  ;;  %v4252_v36 = vld [vmem:[#allocation4 + $0xc] ss:$20 sps:$4 sm:$0xff]  }
 0x4ca   : > { %4111 = vmatprep.subr.bf16.mxu1 %v4252_v36 }
 0x4cc   : > { %4012 = vmatmul.mubr.msk.bf16.vlgmr.msra.gmra.mrb[32].mxu1 %vm3116_vm8, %v4251_v47 }
 0x4cd   : > { %4112 = vmatpush3.bf16.msra.mxu1 %v4252_v36  ;;  %v4253_v11 = vld [vmem:[#allocation4 + $0x34] ss:$20 sps:$4 sm:$0xff]   ;;  %3174 = vmatprep.mubr.bf16.mxu1 %v4273_v14 }
 0x4ce   : > { %4113 = vmatprep.subr.bf16.mxu1 %v4253_v11 }
 0x4d1   : > { %4114 = vmatpush3.bf16.msra.mxu1 %v4253_v11 }
 0x4d2   : > { %4115 = vmatprep.subr.bf16.mxu1 %v4254_v46  ;;  %v3022_v2 = vpop.permute.xlu0 %3021 }
 0x4d4   : > { %4013 = vmatmul.mubr.msk.bf16.gmra.mrb[36].mxu1 %vm3116_vm8, %v4255_v30 }
 0x4d5   : > { %4116 = vmatpush3.bf16.msra.mxu1 %v4254_v46  ;;  %4121 = vmatprep.mubr.msk.bf16.mxu1 %vm3116_vm8, %v4251_v47 }
 0x4d6   : > { %4117 = vmatprep.subr.bf16.mxu1 %v4256_v22  ;;  %v3032_v45 = vpop.permute.xlu0 %3031 }
 0x4d9   : > { %4118 = vmatpush3.bf16.msra.mxu1 %v4256_v22 }
 0x4da   : > { %4161 = vmatprep.subr.msk.bf16.mxu1 %vm2852_vm14, %v4257_v23  ;;  %vm5578_vm14 = vcmask 1047560  }
 0x4dd   : > { %4120 = vmatpush3.bf16.msra.mxu1 %v3130_v25  ;;  %v3599_v25 = vshrl.u32 %v637_v35, 7 }
 0x4e0   : > { %4122 = vmatmul.mubr.msk.bf16.vlgmr.msra.gmra.mrb[40].mxu1 %vm3116_vm8, %v4255_v30  ;;  %vm5587_vm8 = vmmov %vm5581_vm13 }
 0x4e1   : > { %3689 = vmatprep.mubr.bf16.mxu1 %v4273_v14 }
 0x59f   : > { %v3166_v27 = vpop.f32.mrb[32].mxu1 }
 0x5a0   : > { %v3167_v29 = vadd.f32 %v3166_v27, %v3017_v8  ;;  %v3168_v32 = vpop.f32.mrb[33].mxu1 }
 0x5a1   : > { %v3169_v16 = vadd.f32 %v3168_v32, %v3017_v8  ;;  %v3170_v10 = vpop.f32.mrb[34].mxu1 }
 0x5a2   : > { %v3234_v28 = vmax.f32 %v3167_v29, 0.0  ;;  %v3171_v21 = vadd.f32 %v3170_v10, %v3022_v2  ;;  %v3172_v7 = vpop.f32.mrb[35].mxu1 }
 0x5a3   : > { %v3235_v62 = vmax.f32 %v3169_v16, 0.0  ;;  %v3173_v5 = vadd.f32 %v3172_v7, %v3022_v2  ;;  %v3587_v16 = vld [vmem:[%s5568_s9] sm:$0x7] }
 0x5a4   : > { %v3237_v24 = vmax.f32 %v3171_v21, 0.0  ;;  %v3246_v56 = vmul.f32 %v4779_v3, %v3234_v28 }
 0x5a5   : > { %v3238_v33 = vmax.f32 %v3173_v5, 0.0  ;;  %v3247_v14 = vmul.f32 %v4782_v13, %v3235_v62 }
 0x5a6   : > { %v3249_v38 = vmul.f32 %v4779_v3, %v3237_v24 }
 0x5a7   : > { %v3250_v17 = vmul.f32 %v4782_v13, %v3238_v33  ;;  %v3176_v6 = vpop.f32.mrb[36].mxu1 }
 0x5a8   : > { %v5327_v41 = vpack.c.bf16 %v3249_v38, %v3246_v56  ;;  %v3177_v43 = vadd.f32 %v3176_v6, %v3027_v34  ;;  %v3178_v48 = vpop.f32.mrb[37].mxu1 }
 0x5a9   : > { %v5329_v9 = vpack.c.bf16 %v3250_v17, %v3247_v14  ;;  %v3179_v49 = vadd.f32 %v3178_v48, %v3027_v34  ;;  %v3180_v63 = vpop.f32.mrb[38].mxu1 }
 0x5aa   : > { %v3240_v18 = vmax.f32 %v3177_v43, 0.0  ;;  %v3181_v42 = vadd.f32 %v3180_v63, %v3032_v45  ;;  %v3182_v50 = vpop.f32.mrb[39].mxu1  ;;  %3366 = vrot.lane.b32.xlu0 %v5327_v41, %s4282_s15  ;;  %3270 = vrot.lane.b32.xlu1 %v5327_v41, %s4279_s29 }
 0x5ab   : > { %v3241_v51 = vmax.f32 %v3179_v49, 0.0  ;;  %v3183_v58 = vadd.f32 %v3182_v50, %v3032_v45 }
 0x5ac   : > { %v3243_v19 = vmax.f32 %v3181_v42, 0.0  ;;  %v3252_v55 = vmul.f32 %v4779_v3, %v3240_v18 }
 0x5ad   : > { %v3244_v39 = vmax.f32 %v3183_v58, 0.0  ;;  %v3253_v26 = vmul.f32 %v4782_v13, %v3241_v51 }
 0x5ae   : > { %v3255_v52 = vmul.f32 %v4779_v3, %v3243_v19  ;;  %3404 = vrot.lane.b32.xlu0 %v5327_v41, %s4268_s28  ;;  %3302 = vrot.lane.b32.xlu1 %v5327_v41, %s4281_s14 }
 0x5af   : > { %v3256_v54 = vmul.f32 %v4782_v13, %v3244_v39 }
 0x5b0   : > { %v5343_v31 = vpack.c.bf16 %v3255_v52, %v3252_v55 }
 0x5b1   : > { %v5345_v61 = vpack.c.bf16 %v3256_v54, %v3253_v26 }
 0x5b2   : > { %3272 = vrot.lane.b32.xlu0 %v5329_v9, %s4279_s29  ;;  %3334 = vrot.lane.b32.xlu1 %v5327_v41, %s4280_s12 }
 0x5b3   : > { %v4123_v3 = vpop.f32.mrb[40].mxu1 }
 0x5b4   : > { %v3228_v40 = vadd.f32 %v4123_v3, %v3027_v34  ;;  %v3219_v60 = vpop.f32.mrb[41].mxu1 }
 0x5b5   : > { %v3220_v15 = vadd.f32 %v3219_v60, %v3017_v8  ;;  %v4124_v53 = vpop.f32.mrb[42].mxu1  ;;  %v3532_v8 = vld [vmem:[%s5567_s8] sm:$0x3f] }
 0x5b6   : > { %v3242_v4 = vmax.f32 %v3228_v40, 0.0  ;;  %v3231_v57 = vadd.f32 %v4124_v53, %v3032_v45  ;;  %v3222_v59 = vpop.f32.mrb[43].mxu1  ;;  %3304 = vrot.lane.b32.xlu0 %v5329_v9, %s4281_s14  ;;  %3500 = vrot.lane.b32.xlu1 %v5327_v41, %s4271_s11  ;;  %v3594_v27 = vcombine.high %v3532_v8, %v3532_v8 }
 0x5b7   : > { %v3236_v13 = vmax.f32 %v3220_v15, 0.0  ;;  %v3223_v12 = vadd.f32 %v3222_v59, %v3022_v2 }
 0x5b8   : > { %v3245_v0 = vmax.f32 %v3231_v57, 0.0  ;;  %v3254_v20 = vmul.f32 %v4796_v44, %v3242_v4 }
 0x5b9   : > { %v3239_v37 = vmax.f32 %v3223_v12, 0.0  ;;  %v3248_v36 = vmul.f32 %v4796_v44, %v3236_v13 }
 0x5ba   : > { %v3257_v47 = vmul.f32 %v4796_v44, %v3245_v0  ;;  %3336 = vrot.lane.b32.xlu0 %v5329_v9, %s4280_s12  ;;  %3502 = vrot.lane.b32.xlu1 %v5329_v9, %s4271_s11 }
 0x5bb   : > { %v3251_v11 = vmul.f32 %v4796_v44, %v3239_v37  ;;  %v4283_v44 = vmov 1983009808  }
 0x5bc   : > { %v5363_v46 = vpack.c.bf16 %v3257_v47, %v3254_v20  ;;  %v3596_v22 = vunpack.c.l.s4 %v4283_v44 }
 0x5bd   : > { %v5365_v30 = vpack.c.bf16 %v3251_v11, %v3248_v36 }
 0x5be   : > { %3506 = vrot.lane.b32.xlu0 %v5343_v31, %s4271_s11  ;;  %3368 = vrot.lane.b32.xlu1 %v5329_v9, %s4282_s15  ;;  %v3597_v23 = vunpack.c.0.s8 %v3596_v22 }
 0x5c0   : > { %v3600_v29 = vsub.s32 %v3597_v23, %v3599_v25 }
 0x5c2   : > { %3278 = vrot.lane.b32.xlu0 %v5345_v61, %s4279_s29  ;;  %3406 = vrot.lane.b32.xlu1 %v5329_v9, %s4268_s28  ;;  %v5403_v32 = vrot.slane %v3594_v27, %v3600_v29  ;;  %v5437_v35 = vrot.slane %v3532_v8, %v3600_v29 }
 0x5c4   : > { %v5441_v2 = vcombine.high %v5437_v35, %v5437_v35 }
 0x5c6   : > { %3310 = vrot.lane.b32.xlu0 %v5345_v61, %s4281_s14  ;;  %3276 = vrot.lane.b32.xlu1 %v5343_v31, %s4279_s29 }
 0x5c7   : > { %3648 = vmatprep.mubr.bf16.mxu0 %v5441_v2 }
 0x5ca   : > { %3342 = vrot.lane.b32.xlu0 %v5345_v61, %s4280_s12  ;;  %3308 = vrot.lane.b32.xlu1 %v5343_v31, %s4281_s14 }
 0x5ce   : > { %3508 = vrot.lane.b32.xlu0 %v5345_v61, %s4271_s11  ;;  %3340 = vrot.lane.b32.xlu1 %v5343_v31, %s4280_s12 }
 0x5d2   : > { %3374 = vrot.lane.b32.xlu0 %v5345_v61, %s4282_s15  ;;  %3372 = vrot.lane.b32.xlu1 %v5343_v31, %s4282_s15 }
 0x5d6   : > { %3280 = vrot.lane.b32.xlu0 %v5363_v46, %s4279_s29  ;;  %3412 = vrot.lane.b32.xlu1 %v5345_v61, %s4268_s28 }
 0x5da   : > { %3414 = vrot.lane.b32.xlu0 %v5363_v46, %s4268_s28  ;;  %3510 = vrot.lane.b32.xlu1 %v5363_v46, %s4271_s11 }
 0x5de   : > { %3504 = vrot.lane.b32.xlu0 %v5365_v30, %s4271_s11  ;;  %3312 = vrot.lane.b32.xlu1 %v5363_v46, %s4281_s14 }
 0x5e2   : > { %3410 = vrot.lane.b32.xlu0 %v5343_v31, %s4268_s28  ;;  %3438 = vrot.lane.b32.xlu1 %v5329_v9, %s4278_s26 }
 0x5e6   : > { %3436 = vrot.lane.b32.xlu0 %v5327_v41, %s4278_s26  ;;  %3274 = vrot.lane.b32.xlu1 %v5365_v30, %s4279_s29 }
 0x5ea   : > { %3446 = vrot.lane.b32.xlu0 %v5363_v46, %s4278_s26  ;;  %3344 = vrot.lane.b32.xlu1 %v5363_v46, %s4280_s12 }
 0x5ee   : > { %3408 = vrot.lane.b32.xlu0 %v5365_v30, %s4268_s28  ;;  %3306 = vrot.lane.b32.xlu1 %v5365_v30, %s4281_s14 }
 0x5f2   : > { %3442 = vrot.lane.b32.xlu0 %v5343_v31, %s4278_s26  ;;  %3444 = vrot.lane.b32.xlu1 %v5345_v61, %s4278_s26 }
 0x5f6   : > { %3440 = vrot.lane.b32.xlu0 %v5365_v30, %s4278_s26  ;;  %3338 = vrot.lane.b32.xlu1 %v5365_v30, %s4280_s12 }
 0x5fa   : > { %3468 = vrot.lane.b32.xlu0 %v5327_v41, %s4270_s30  ;;  %3470 = vrot.lane.b32.xlu1 %v5329_v9, %s4270_s30 }
 0x5fe   : > { %3472 = vrot.lane.b32.xlu0 %v5365_v30, %s4270_s30  ;;  %3370 = vrot.lane.b32.xlu1 %v5365_v30, %s4282_s15 }
 0x602   : > { %3478 = vrot.lane.b32.xlu0 %v5363_v46, %s4270_s30  ;;  %3376 = vrot.lane.b32.xlu1 %v5363_v46, %s4282_s15 }
 0x606   : > { %3474 = vrot.lane.b32.xlu0 %v5343_v31, %s4270_s30  ;;  %3476 = vrot.lane.b32.xlu1 %v5345_v61, %s4270_s30 }
 0x60a   : > { %3590 = vperm.xlu1 %4191, %v3587_v16  }
 0x61c   : > { %v3367_v10 = vpop.permute.xlu0 %3366  ;;  %v3271_v28 = vpop.permute.xlu1 %3270 }
 0x61d   : > { %3390 = vst.msk [vmem:[#allocation5 + $0xf8] sm:$0xff] %vm5578_vm14, %v3367_v10  ;;  %vm5588_vm14 = vmmov %vm5583_vm5 }
 0x61e   : > { %3294 = vst.msk [vmem:[#allocation5 + $0x8] sm:$0xff] %vm5579_vm6, %v3271_v28  ;;  %vm5589_vm6 = vcmask 1047560  }
 0x620   : > { %v3405_v21 = vpop.permute.xlu0 %3404  ;;  %v3303_v7 = vpop.permute.xlu1 %3302 }
 0x621   : > { %3326 = vst.msk [vmem:[#allocation5 + $0x58] sm:$0xff] %vm5580_vm15, %v3303_v7  ;;  %vm5590_vm15 = vmmov %vm5585_vm9 }
 0x624   : > { %v5462_v62 = vpop.permute.xlu0 %3272  ;;  %v3335_v5 = vpop.permute.xlu1 %3334  ;;  %v3551_v29 = vld [vmem:[#allocation5 + $0xf8] sm:$0xff] }
 0x625   : > { %v3282_v24 = vsel %vm2141_vm1, %v3271_v28, %v5462_v62  ;;  %3358 = vst.msk [vmem:[#allocation5 + $0xa8] sm:$0xff] %vm5581_vm13, %v3335_v5  ;;  %v3533_v33 = vld [vmem:[#allocation5 + $0x8] sm:$0xff]  ;;  %vm3612_vm13 = vcmask 261120  }
 0x626   : > { %3616 = vmatprep.subr.bf16.mxu0 %v3282_v24 }
 0x627   : > { %3617 = vmatpush1.bf16.msra.mxu0 %v3533_v33 }
 0x628   : > { %v5467_v56 = vpop.permute.xlu0 %3304  ;;  %v3501_v38 = vpop.permute.xlu1 %3500  ;;  %v3539_v53 = vld [vmem:[#allocation5 + $0x58] sm:$0xff] }
 0x629   : > { %v3314_v34 = vsel %vm5582_vm11, %v3303_v7, %v5467_v56 }
 0x62c   : > { %v5471_v14 = vpop.permute.xlu0 %3336  ;;  %v3503_v17 = vpop.permute.xlu1 %3502  ;;  %v3545_v20 = vld [vmem:[#allocation5 + $0xa8] sm:$0xff] }
 0x62d   : > { %v3346_v6 = vsel %vm2243_vm7, %v3335_v5, %v5471_v14  ;;  %v3512_v43 = vsel %vm1157_vm3, %v3501_v38, %v3503_v17 }
 0x630   : > { %v3507_v48 = vpop.permute.xlu0 %3506  ;;  %v5476_v45 = vpop.permute.xlu1 %3368 }
 0x631   : > { %v3378_v49 = vsel %vm5583_vm5, %v3367_v10, %v5476_v45 }
 0x634   : > { %v3279_v63 = vpop.permute.xlu0 %3278  ;;  %v5480_v18 = vpop.permute.xlu1 %3406 }
 0x635   : > { %v5484_v42 = vsel %vm821_vm0, %v3405_v21, %v5480_v18 }
 0x638   : > { %v3311_v50 = vpop.permute.xlu0 %3310  ;;  %v3277_v51 = vpop.permute.xlu1 %3276 }
 0x639   : > { %v3284_v58 = vsel %vm2141_vm1, %v3277_v51, %v3279_v63  ;;  %3298 = vst.msk [vmem:[#allocation5 + $0x30] sm:$0xff] %vm5584_vm4, %v3277_v51 }
 0x63a   : > { %3618 = vmatprep.subr.bf16.mxu0 %v3284_v58 }
 0x63c   : > { %v5488_v19 = vpop.permute.xlu0 %3342  ;;  %v3309_v39 = vpop.permute.xlu1 %3308 }
 0x63d   : > { %v3316_v55 = vsel %vm5585_vm9, %v3309_v39, %v3311_v50  ;;  %3330 = vst.msk [vmem:[#allocation5 + $0x80] sm:$0xff] %vm5586_vm10, %v3309_v39 }
 0x640   : > { %v3509_v52 = vpop.permute.xlu0 %3508  ;;  %v3341_v26 = vpop.permute.xlu1 %3340  ;;  %v3536_v54 = vld [vmem:[#allocation5 + $0x30] sm:$0xff] }
 0x641   : > { %v3514_v3 = vsel %vm1157_vm3, %v3507_v48, %v3509_v52  ;;  %v3348_v40 = vsel %vm2243_vm7, %v3341_v26, %v5488_v19  ;;  %3362 = vst.msk [vmem:[#allocation5 + $0xd0] sm:$0xff] %vm5587_vm8, %v3341_v26  ;;  %3619 = vmatpush1.bf16.msra.mxu0 %v3536_v54 }
 0x642   : > { %3620 = vmatprep.subr.bf16.mxu0 %v3314_v34 }
 0x644   : > { %v5496_v60 = vpop.permute.xlu0 %3374  ;;  %v3373_v15 = vpop.permute.xlu1 %3372  ;;  %v3542_v13 = vld [vmem:[#allocation5 + $0x80] sm:$0xff] }
 0x645   : > { %v3380_v4 = vsel %vm5588_vm14, %v3373_v15, %v5496_v60  ;;  %3394 = vst.msk [vmem:[#allocation5 + $0x120] sm:$0xff] %vm5589_vm6, %v3373_v15  ;;  %3621 = vmatpush1.bf16.msra.mxu0 %v3539_v53 }
 0x646   : > { %3622 = vmatprep.subr.bf16.mxu0 %v3316_v55 }
 0x648   : > { %v3281_v57 = vpop.permute.xlu0 %3280  ;;  %v3413_v59 = vpop.permute.xlu1 %3412  ;;  %v3548_v22 = vld [vmem:[#allocation5 + $0xd0] sm:$0xff] }
 0x649   : > { %v3285_v12 = vsel %vm2141_vm1, %v3279_v63, %v3281_v57  ;;  %3623 = vmatpush1.bf16.msra.mxu0 %v3542_v13 }
 0x64a   : > { %3624 = vmatprep.subr.bf16.mxu0 %v3346_v6 }
 0x64c   : > { %v3415_v0 = vpop.permute.xlu0 %3414  ;;  %v3511_v37 = vpop.permute.xlu1 %3510  ;;  %v3554_v21 = vld [vmem:[#allocation5 + $0x120] sm:$0xff] }
 0x64d   : > { %v3419_v47 = vsel %vm821_vm0, %v3413_v59, %v3415_v0  ;;  %3435 = vst.msk [vmem:[#allocation5 + $0x1d0] sm:$0xff] %vm821_vm0, %v3415_v0  ;;  %v3515_v36 = vsel %vm1157_vm3, %v3509_v52, %v3511_v37  ;;  %3625 = vmatpush1.bf16.msra.mxu0 %v3545_v20 }
 0x64e   : > { %3531 = vst.msk [vmem:[#allocation5 + $0x2c0] sm:$0xff] %vm1157_vm3, %v3511_v37  ;;  %3626 = vmatprep.subr.bf16.mxu0 %v3348_v40 }
 0x650   : > { %v3505_v11 = vpop.permute.xlu0 %3504  ;;  %v3313_v44 = vpop.permute.xlu1 %3312 }
 0x651   : > { %v3513_v23 = vsel %vm1157_vm3, %v3503_v17, %v3505_v11  ;;  %3527 = vst.msk [vmem:[#allocation5 + $0x298] sm:$0xff] %vm1157_vm3, %v3505_v11  ;;  %v3317_v25 = vsel %vm5590_vm15, %v3311_v50, %v3313_v44  ;;  %3627 = vmatpush1.bf16.msra.mxu0 %v3548_v22  ;;  %vm5591_vm3 = vmmov %vm5585_vm9 }
 0x652   : > { %3628 = vmatprep.subr.bf16.mxu0 %v3378_v49  ;;  %3657 = vmatprep.subr.bf16.mxu1 %v3513_v23 }
 0x653   : > { %3658 = vmatpush1.bf16.msra.mxu1 %v3512_v43 }
 0x654   : > { %v3411_v8 = vpop.permute.xlu0 %3410  ;;  %v3439_v27 = vpop.permute.xlu1 %3438  ;;  %3659 = vmatprep.subr.bf16.mxu1 %v3515_v36 }
 0x655   : > { %v3418_v16 = vsel %vm821_vm0, %v3411_v8, %v3413_v59  ;;  %3629 = vmatpush1.bf16.msra.mxu0 %v3551_v29  ;;  %v3586_v53 = vld [vmem:[#allocation5 + $0x2c0] sm:$0xff] }
 0x656   : > { %3630 = vmatprep.subr.bf16.mxu0 %v3380_v4 }
 0x657   : > { %3660 = vmatpush1.bf16.msra.mxu1 %v3514_v3 }
 0x658   : > { %v3437_v10 = vpop.permute.xlu0 %3436  ;;  %v3275_v28 = vpop.permute.xlu1 %3274  ;;  %4086 = vmatprep.subr.bf16.mxu1 %v5365_v30 }
 0x659   : > { %v3448_v7 = vsel %vm2404_vm12, %v3437_v10, %v3439_v27  ;;  %v3283_v5 = vsel %vm2141_vm1, %v5462_v62, %v3275_v28  ;;  %3631 = vmatpush1.bf16.msra.mxu0 %v3554_v21  ;;  %vm4284_vm1 = vmmov 0  }
 0x65a   : > { %3632 = vmatprep.subr.bf16.mxu0 %v5329_v9  ;;  %4016 = vmatmul.mubr.msk.bf16.vlgmr.msra.gmra.mrb[44].mxu1 %vm3612_vm13, %v5403_v32 }
 0x65b   : > { %4087 = vmatpush3.bf16.msra.mxu1 %v3283_v5  ;;  %3730 = vmatprep.mubr.bf16.mxu1 %v5441_v2 }
 0x65c   : > { %v3447_v24 = vpop.permute.xlu0 %3446  ;;  %v3345_v33 = vpop.permute.xlu1 %3344  ;;  %4088 = vmatprep.subr.bf16.mxu1 %v5363_v46 }
 0x65d   : > { %3467 = vst.msk [vmem:[#allocation5 + $0x220] sm:$0xff] %vm2404_vm12, %v3447_v24  ;;  %v3349_v30 = vsel %vm2243_vm7, %v5488_v19, %v3345_v33  ;;  %3633 = vmatpush1.bf16.msra.mxu0 %v5327_v41 }
 0x65e   : > { %3634 = vmatprep.subr.bf16.mxu0 %v5345_v61 }
 0x65f   : > { %4089 = vmatpush3.bf16.msra.mxu1 %v3285_v12 }
 0x660   : > { %v3409_v9 = vpop.permute.xlu0 %3408  ;;  %v3307_v62 = vpop.permute.xlu1 %3306 }
 0x661   : > { %v3417_v38 = vsel %vm821_vm0, %v5480_v18, %v3409_v9  ;;  %3431 = vst.msk [vmem:[#allocation5 + $0x1a8] sm:$0xff] %vm821_vm0, %v3409_v9  ;;  %v3315_v46 = vsel %vm5591_vm3, %v5467_v56, %v3307_v62  ;;  %3635 = vmatpush1.bf16.msra.mxu0 %v5343_v31  ;;  %v3568_v56 = vld [vmem:[#allocation5 + $0x1d0] sm:$0xff]  ;;  %vm5592_vm0 = vmmov %vm5583_vm5 }
 0x662   : > { %3636 = vmatprep.subr.bf16.mxu0 %v3417_v38 }
 0x664   : > { %v3443_v2 = vpop.permute.xlu0 %3442  ;;  %v3445_v34 = vpop.permute.xlu1 %3444  ;;  %v3574_v19 = vld [vmem:[#allocation5 + $0x220] sm:$0xff] }
 0x665   : > { %v3450_v41 = vsel %vm2404_vm12, %v3443_v2, %v3445_v34  ;;  %v3451_v61 = vsel %vm2404_vm12, %v3445_v34, %v3447_v24  ;;  %3637 = vmatpush1.bf16.msra.mxu0 %v5484_v42 }
 0x666   : > { %3638 = vmatprep.subr.bf16.mxu0 %v3419_v47 }
 0x668   : > { %v3441_v17 = vpop.permute.xlu0 %3440  ;;  %v3339_v6 = vpop.permute.xlu1 %3338  ;;  %v3565_v43 = vld [vmem:[#allocation5 + $0x1a8] sm:$0xff] }
 0x669   : > { %v3449_v48 = vsel %vm2404_vm12, %v3439_v27, %v3441_v17  ;;  %3463 = vst.msk [vmem:[#allocation5 + $0x1f8] sm:$0xff] %vm2404_vm12, %v3441_v17  ;;  %v3347_v31 = vsel %vm2243_vm7, %v5471_v14, %v3339_v6  ;;  %4090 = vmatprep.subr.bf16.mxu1 %v3565_v43  ;;  %3639 = vmatpush1.bf16.msra.mxu0 %v3418_v16  ;;  %vm5593_vm12 = vmmov %vm5592_vm0 }
 0x66a   : > { %4091 = vmatpush3.bf16.msra.mxu1 %v3315_v46  ;;  %3640 = vmatprep.subr.bf16.mxu0 %v3449_v48 }
 0x66b   : > { %4092 = vmatprep.subr.bf16.mxu1 %v3568_v56 }
 0x66c   : > { %v3469_v49 = vpop.permute.xlu0 %3468  ;;  %v3471_v63 = vpop.permute.xlu1 %3470 }
 0x66d   : > { %v3480_v18 = vsel %vm1045_vm2, %v3469_v49, %v3471_v63  ;;  %3641 = vmatpush1.bf16.msra.mxu0 %v3448_v7 }
 0x66e   : > { %4093 = vmatpush3.bf16.msra.mxu1 %v3317_v25  ;;  %3642 = vmatprep.subr.bf16.mxu0 %v3451_v61 }
 0x670   : > { %v3473_v42 = vpop.permute.xlu0 %3472  ;;  %v3371_v50 = vpop.permute.xlu1 %3370  ;;  %v3571_v51 = vld [vmem:[#allocation5 + $0x1f8] sm:$0xff] }
 0x671   : > { %v3481_v58 = vsel %vm1045_vm2, %v3471_v63, %v3473_v42  ;;  %3495 = vst.msk [vmem:[#allocation5 + $0x248] sm:$0xff] %vm1045_vm2, %v3473_v42  ;;  %v3379_v14 = vsel %vm5592_vm0, %v5476_v45, %v3371_v50  ;;  %4094 = vmatprep.subr.bf16.mxu1 %v3571_v51  ;;  %3643 = vmatpush1.bf16.msra.mxu0 %v3450_v41 }
 0x672   : > { %4095 = vmatpush3.bf16.msra.mxu1 %v3347_v31  ;;  %3644 = vmatprep.subr.bf16.mxu0 %v3481_v58 }
 0x673   : > { %4096 = vmatprep.subr.bf16.mxu1 %v3574_v19 }
 0x674   : > { %v3479_v39 = vpop.permute.xlu0 %3478  ;;  %v3377_v55 = vpop.permute.xlu1 %3376 }
 0x675   : > { %3499 = vst.msk [vmem:[#allocation5 + $0x270] sm:$0xff] %vm1045_vm2, %v3479_v39  ;;  %v3381_v52 = vsel %vm5593_vm12, %v5496_v60, %v3377_v55  ;;  %3645 = vmatpush1.bf16.msra.mxu0 %v3480_v18  ;;  %v3583_v60 = vld [vmem:[#allocation5 + $0x298] sm:$0xff] }
 0x676   : > { %4097 = vmatpush3.bf16.msra.mxu1 %v3349_v30 }
 0x678   : > { %v3475_v26 = vpop.permute.xlu0 %3474  ;;  %v3477_v54 = vpop.permute.xlu1 %3476  ;;  %v3577_v3 = vld [vmem:[#allocation5 + $0x248] sm:$0xff] }
 0x679   : > { %v3482_v45 = vsel %vm1045_vm2, %v3475_v26, %v3477_v54  ;;  %v3483_v40 = vsel %vm1045_vm2, %v3477_v54, %v3479_v39  ;;  %4098 = vmatprep.subr.bf16.mxu1 %v3577_v3 }
 0x67a   : > { %4099 = vmatpush3.bf16.msra.mxu1 %v3379_v14  ;;  %3646 = vmatprep.subr.bf16.mxu0 %v3483_v40 }
 0x67b   : > { %3647 = vmatpush1.bf16.msra.mxu0 %v3482_v45 }
 0x67c   : > { %v3580_v15 = vld [vmem:[#allocation5 + $0x270] sm:$0xff] }
 0x67d   : > { %4100 = vmatprep.subr.bf16.mxu1 %v3580_v15 }
 0x67e   : > { %4101 = vmatpush3.bf16.msra.mxu1 %v3381_v52  ;;  %3649 = vmatmul.mubr.bf16.vlgmr.msra.gmra.mrb[20].mxu0 %v5437_v35 }
 0x67f   : > { %4125 = vmatprep.subr.bf16.mxu1 %v4277_v1 }
 0x681   : > { %3731 = vmatmul.mubr.bf16.vlgmr.msra.gmra.mrb[48].mxu1 %v5437_v35 }
 0x682   : > { %4126 = vmatpush3.bf16.msra.mxu1 %v3583_v60  ;;  %4129 = vmatprep.mubr.msk.bf16.mxu1 %vm4284_vm1, %v4277_v1 }
 0x683   : > { %4127 = vmatprep.subr.bf16.mxu1 %v4277_v1 }
 0x686   : > { %4128 = vmatpush3.bf16.msra.mxu1 %v3586_v53 }
 0x689   : > { %4130 = vmatmul.mubr.msk.bf16.vlgmr.msra.gmra.mrb[52].mxu1 %vm3612_vm13, %v5403_v32  ;;  %v3591_v12 = vpop.permute.xlu1 %3590 }
 0x72d   : > { %v3691_v4 = vpop.f32.mrb[44].mxu1 }
 0x72e   : > { %v3693_v57 = vpop.f32.mrb[45].mxu1 }
 0x72f   : > { %v3695_v59 = vpop.f32.mrb[46].mxu1 }
 0x730   : > { %v3696_v13 = vpop.f32.mrb[47].mxu1 }
 0x751   : > { %v3650_v0 = vpop.f32.mrb[20].mxu0 }
 0x752   : > { %v3651_v35 = vadd.f32 %v3650_v0, %v3591_v12  ;;  %v3652_v37 = vpop.f32.mrb[21].mxu0 }
 0x753   : > { %v3653_v20 = vadd.f32 %v3652_v37, %v3591_v12  ;;  %v3654_v47 = vpop.f32.mrb[22].mxu0 }
 0x754   : > { %v4102_v36 = vpop.f32.mrb[48].mxu1  ;;  %v3692_v11 = vadd.f32 %v3691_v4, %v3651_v35  ;;  %v3655_v1 = vpop.f32.mrb[23].mxu0 }
 0x755   : > { %v4103_v44 = vpop.f32.mrb[49].mxu1  ;;  %v3694_v22 = vadd.f32 %v3693_v57, %v3653_v20 }
 0x756   : > { %v4104_v23 = vadd.f32 %v4103_v44, %v4102_v36  ;;  %v4105_v25 = vpop.f32.mrb[50].mxu1 }
 0x757   : > { %v4106_v32 = vpop.f32.mrb[51].mxu1  ;;  %v3780_v8 = vcombine.low %v3692_v11, %v3694_v22 }
 0x758   : > { %v3733_v27 = vadd.f32 %v4104_v23, %v3591_v12 }
 0x759   : > { %3782 = vst [vmem:[%s4361_s27] sm:$0x77] %v3780_v8 }
 0x75c   : > { %v3772_v29 = vpop.f32.mrb[52].mxu1 }
 0x75d   : > { %v3773_v16 = vadd.f32 %v3772_v29, %v3733_v27  ;;  %v4131_v10 = vpop.f32.mrb[53].mxu1 }
 0x75e   : > { %v3775_v28 = vpop.f32.mrb[54].mxu1 }
 0x75f   : > { %3783 = vst [vmem:[%s4361_s27 + $0x8] sm:$0x7] %v3773_v16  ;;  %v4132_v21 = vpop.f32.mrb[55].mxu1 }
 0x760 PF: > { %s20_s13 = sadd.s32 1, %s4265_s13  }
 0x761   : > { %p17_p5 = scmp.ge.s32.totalorder %s20_s13, 4  }
 0x763   :  { %19 = sbr.rel (!%p17_p5) target bundleno = 1 (0x1), region = 97 }

</bundles_post_ra>
